<compile_context>
chip_gen: v5e
topology: v5e:2x2
jax: 0.10.0
libtpu: 0.0.40
codegen_flags: <defaults>
</compile_context>

<pallas_src>
import functools
from collections import OrderedDict

import numpy as np
import jax
import jax.numpy as jnp
from jax.experimental import pallas as pl
from jax.experimental.pallas import tpu as pltpu


TASKS = ('segment', 'depth')
TASK_TO_CLASSES = {'segment': 5, 'depth': 1, 'sem_cont': 1, 'sur_nor': 3, 'ae': 3}
# stem_0 covers stages [0, 1]; each task then owns stage 2 (a deepcopy) + its head.
BRANCHING_INFO = OrderedDict(stem_0={'stage_range': [0, 1], 'branches': list(TASKS)})
TOTAL_STAGES = 2
STAGE_CHANNELS = {0: 8, 1: 16, 2: 32}
HEAD_HIDDEN = 16


# ---------------------------------------------------------------------------
# Pallas kernel 1: direct 3x3 conv (+bias, +ReLU) with in-VMEM 9-tap accumulation
# ---------------------------------------------------------------------------
def _conv3x3_kernel(x_ref, w_ref, b_ref, o_ref, *, stride, ho, wo, cin, relu):
    # x_ref: stride 1 -> (Hp, Wp, Cin); stride 2 -> (Hp/2, 2, Wp/2, 2*Cin) (phase layout).
    taps = []
    for kh in range(3):
        for kw in range(3):
            if stride == 1:
                t = x_ref[kh:kh + ho, kw:kw + wo, :]
            else:
                ph, pw = kh % 2, kw % 2
                rh, rw = kh // 2, kw // 2
                t = x_ref[rh:rh + ho, ph:ph + 1, rw:rw + wo,
                          pw * cin:(pw + 1) * cin].reshape(ho, wo, cin)
            taps.append(t)
    # im2col only as a VMEM value -> one wide-K bf16 GEMM, f32 accumulation.
    patches = jnp.concatenate(taps, axis=-1).reshape(ho * wo, 9 * cin)
    acc = jnp.dot(patches, w_ref[...], preferred_element_type=jnp.float32)
    acc = acc + b_ref[...]
    if relu:
        acc = jnp.maximum(acc, 0.0)
    o_ref[...] = acc.reshape(ho, wo, -1).astype(o_ref.dtype)


def conv2d_3x3(x, w2d, b, stride=1, relu=True, out_dtype=jnp.bfloat16):
    """x:(N,H,W,Cin); w2d:(9*Cin,Cout) bf16 (pre-reshaped at init); b:(1,Cout) f32.

    Direct conv: the padded input is read once; no 9x im2col tensor ever hits HBM.
    TODO(synk): for large feature maps add an output-row grid axis with a 2-row halo
    stream so the per-image block is not limited by VMEM.
    """
    n, h, w, cin = x.shape
    cout = w2d.shape[1]
    xp = jnp.pad(x.astype(jnp.bfloat16), ((0, 0), (1, 1), (1, 1), (0, 0)))
    hp, wp = h + 2, w + 2
    if stride == 1:
        ho, wo = h, w
        x_in = xp
        x_spec = pl.BlockSpec((pl.Squeezed(), hp, wp, cin), lambda i: (i, 0, 0, 0))
    else:
        ho = (h - 1) // 2 + 1
        wo = (w - 1) // 2 + 1
        hp_e, wp_e = hp + (hp % 2), wp + (wp % 2)
        if (hp_e, wp_e) != (hp, wp):
            xp = jnp.pad(xp, ((0, 0), (0, hp_e - hp), (0, wp_e - wp), (0, 0)))
        # Free reshape (adjacent-dim split/merge): phase-decompose H and W so every tap
        # inside the kernel is a contiguous static slice (no strided loads).
        x_in = xp.reshape(n, hp_e // 2, 2, wp_e // 2, 2 * cin)
        x_spec = pl.BlockSpec((pl.Squeezed(), hp_e // 2, 2, wp_e // 2, 2 * cin),
                              lambda i: (i, 0, 0, 0, 0))
    return pl.pallas_call(
        functools.partial(_conv3x3_kernel, stride=stride, ho=ho, wo=wo, cin=cin, relu=relu),
        out_shape=jax.ShapeDtypeStruct((n, ho, wo, cout), out_dtype),
        grid=(n,),
        in_specs=[x_spec,
                  pl.BlockSpec((9 * cin, cout), lambda i: (0, 0)),
                  pl.BlockSpec((1, cout), lambda i: (0, 0))],
        out_specs=pl.BlockSpec((pl.Squeezed(), ho, wo, cout), lambda i: (i, 0, 0, 0)),
        compiler_params=pltpu.CompilerParams(dimension_semantics=("parallel",)),
    )(x_in, w2d, b)


# ---------------------------------------------------------------------------
# Pallas kernel 2: fused multi-task head (direct 3x3 conv + ReLU -> 1x1 conv)
# ---------------------------------------------------------------------------
def _head_kernel(x_ref, w1_ref, b1_ref, w2_ref, b2_ref, o_ref, *, ho, wo, cin):
    taps = [x_ref[kh:kh + ho, kw:kw + wo, :] for kh in range(3) for kw in range(3)]
    patches = jnp.concatenate(taps, axis=-1).reshape(ho * wo, 9 * cin)
    h = jnp.dot(patches, w1_ref[...], preferred_element_type=jnp.float32)
    # Hidden stays in VMEM; bf16 operands into the second GEMM (f32 accumulation).
    h = jnp.maximum(h + b1_ref[...], 0.0).astype(jnp.bfloat16)
    o = jnp.dot(h, w2_ref[...], preferred_element_type=jnp.float32)
    o_ref[...] = (o + b2_ref[...]).reshape(ho, wo, -1)


def fused_heads(params, feats):
    """All task heads in one kernel (w1 concat along Cout, w2 block-diagonal)."""
    n, h, w, cin = feats.shape
    w1, b1 = params['headcat_w1'], params['headcat_b1']
    w2, b2 = params['headcat_w2'], params['headcat_b2']
    hc, ncls = w1.shape[1], w2.shape[1]
    xp = jnp.pad(feats.astype(jnp.bfloat16), ((0, 0), (1, 1), (1, 1), (0, 0)))
    # TODO(synk): for DeepLab-scale C_feat (>=1024) add a K grid axis + f32 accumulator
    # scratch so the resident (9*C_feat, Hc) w1 tile stays inside v7x's scoped VMEM.
    return pl.pallas_call(
        functools.partial(_head_kernel, ho=h, wo=w, cin=cin),
        out_shape=jax.ShapeDtypeStruct((n, h, w, ncls), jnp.float32),
        grid=(n,),
        in_specs=[pl.BlockSpec((pl.Squeezed(), h + 2, w + 2, cin), lambda i: (i, 0, 0, 0)),
                  pl.BlockSpec((9 * cin, hc), lambda i: (0, 0)),
                  pl.BlockSpec((1, hc), lambda i: (0, 0)),
                  pl.BlockSpec((hc, ncls), lambda i: (0, 0)),
                  pl.BlockSpec((1, ncls), lambda i: (0, 0))],
        out_specs=pl.BlockSpec((pl.Squeezed(), h, w, ncls), lambda i: (i, 0, 0, 0)),
        compiler_params=pltpu.CompilerParams(dimension_semantics=("parallel",)),
    )(xp, w1, b1, w2, b2)


# ---------------------------------------------------------------------------
# Pallas kernel 3: fused bilinear resize (W-mix GEMM then H-mix GEMM, one kernel)
# ---------------------------------------------------------------------------
def _interp_matrix(in_size, out_size):
    """torch F.interpolate(mode='bilinear', align_corners=False): half-pixel, clamped."""
    scale = in_size / out_size
    dst = np.arange(out_size)
    src = np.clip((dst + 0.5) * scale - 0.5, 0.0, None)
    i0 = np.minimum(np.floor(src).astype(np.int64), in_size - 1)
    i1 = np.minimum(i0 + 1, in_size - 1)
    lam = (src - i0).astype(np.float32)
    A = np.zeros((out_size, in_size), np.float32)
    A[np.arange(out_size), i0] += 1.0 - lam
    A[np.arange(out_size), i1] += lam
    return A


def _wmix_matrix(w_in, w_out, c):
    """Per-channel expanded W interp matrix: (w_in*C, w_out*C); contraction on W*C rows.
    Note: cost scales with C — fine at C=total classes (6); rethink if C is padded up."""
    A = _interp_matrix(w_in, w_out)
    M = np.zeros((w_in * c, w_out * c), np.float32)
    for ch in range(c):
        M[ch::c, ch::c] = A.T
    return M


def _resize_kernel(y_ref, mw_ref, ah_ref, o_ref):
    # W-mix first on the small pre-resize rows, then H-mix; bf16 MXU operands, f32 acc;
    # the (Hs, out_w*C) intermediate never leaves VMEM.
    t = jnp.dot(y_ref[...].astype(jnp.bfloat16), mw_ref[...],
                preferred_element_type=jnp.float32)
    o_ref[...] = jnp.dot(ah_ref[...], t.astype(jnp.bfloat16),
                         preferred_element_type=jnp.float32)


def bilinear_resize_nhwc(x, out_h, out_w):
    """F.interpolate bilinear (align_corners=False) as ONE fused Pallas kernel per image:
    lane-dense (out_w*C wide) stores, no HBM round trip, interp weights precomputed."""
    x = x.astype(jnp.float32)
    n, h, w, c = x.shape
    if h == out_h and w == out_w:
        return x
    mw = jnp.asarray(_wmix_matrix(w, out_w, c), jnp.bfloat16)      # (w*c, out_w*c)
    ah = jnp.asarray(_interp_matrix(h, out_h), jnp.bfloat16)       # (out_h, h)
    y = x.reshape(n, h, w * c)                                     # free reshape
    out = pl.pallas_call(
        _resize_kernel,
        out_shape=jax.ShapeDtypeStruct((n, out_h, out_w * c), jnp.float32),
        grid=(n,),
        in_specs=[pl.BlockSpec((pl.Squeezed(), h, w * c), lambda i: (i, 0, 0)),
                  pl.BlockSpec((w * c, out_w * c), lambda i: (0, 0)),
                  pl.BlockSpec((out_h, h), lambda i: (0, 0))],
        out_specs=pl.BlockSpec((pl.Squeezed(), out_h, out_w * c), lambda i: (i, 0, 0)),
        compiler_params=pltpu.CompilerParams(dimension_semantics=("parallel",)),
        # TODO(synk): for very large out_h add an output-row grid axis + a bf16 VMEM
        # scratch for the W-mixed rows so the per-image output block stays under VMEM.
    )(y, mw, ah)
    return out.reshape(n, out_h, out_w, c)


# ---------------------------------------------------------------------------
# Synthetic MTSLArch definition (stages / branching / fused heads)
# ---------------------------------------------------------------------------
def init_params(key, in_channels):
    params = {}
    keys = iter(jax.random.split(key, 64))

    def nconv(shape):
        return jax.random.normal(next(keys), shape, jnp.float32) * 0.1

    # Encoder stages: weights reshaped to matmul layout + cast to bf16 ONCE here.
    c_prev = in_channels
    for idx in range(TOTAL_STAGES + 1):
        name = 'en_stem_0' if idx == 0 else f'en_stage_{idx}'
        c = STAGE_CHANNELS[idx]
        params[f'{name}_w2d'] = nconv((3, 3, c_prev, c)).reshape(9 * c_prev, c).astype(jnp.bfloat16)
        params[f'{name}_b'] = nconv((1, c))
        c_prev = c
    # Note: task branch stages are deepcopies of en_stage_2 at init -> shared params here.

    # Per-task heads, fused at init: w1 concatenated along Cout, w2 block-diagonal (bf16).
    c_feat = STAGE_CHANNELS[TOTAL_STAGES]
    w1_list, b1_list, w2_list, b2_list = [], [], [], []
    for task in TASKS:
        ncls = TASK_TO_CLASSES[task]
        w1_list.append(nconv((3, 3, c_feat, HEAD_HIDDEN)).reshape(9 * c_feat, HEAD_HIDDEN))
        b1_list.append(nconv((HEAD_HIDDEN,)))
        w2_list.append(nconv((1, 1, HEAD_HIDDEN, ncls)).reshape(HEAD_HIDDEN, ncls))
        b2_list.append(nconv((ncls,)))
    total_cls = sum(TASK_TO_CLASSES[t] for t in TASKS)
    params['headcat_w1'] = jnp.concatenate(w1_list, axis=1).astype(jnp.bfloat16)
    params['headcat_b1'] = jnp.concatenate(b1_list, axis=0).reshape(1, -1)
    w2blk = jnp.zeros((HEAD_HIDDEN * len(TASKS), total_cls), jnp.float32)
    r0 = c0 = 0
    for task, w2 in zip(TASKS, w2_list):
        ncls = TASK_TO_CLASSES[task]
        w2blk = w2blk.at[r0:r0 + HEAD_HIDDEN, c0:c0 + ncls].set(w2)
        r0 += HEAD_HIDDEN
        c0 += ncls
    params['headcat_w2'] = w2blk.astype(jnp.bfloat16)
    params['headcat_b2'] = jnp.concatenate(b2_list, axis=0).reshape(1, -1)
    return params


def _run_stage(params, idx, x):
    name = 'en_stem_0' if idx == 0 else f'en_stage_{idx}'
    stride = 1 if idx == 0 else 2
    return conv2d_3x3(x, params[f'{name}_w2d'], params[f'{name}_b'], stride=stride, relu=True)


def shattered_stages(params, stage_range, x):
    for idx in range(stage_range[0], stage_range[1] + 1):
        x = _run_stage(params, idx, x)
    return x


def mtsl_forward(params, x_nchw, do_interpolate=True):
    image_size = list(x_nchw.shape[2:])
    # NCHW -> NHWC; activations kept bf16 between Pallas conv kernels (f32 accumulation).
    x = jnp.transpose(x_nchw, (0, 2, 3, 1)).astype(jnp.bfloat16)
    results = OrderedDict()
    activations = {}
    branch_to_inputs = {}
    for stem_name, info in BRANCHING_INFO.items():
        stem_in = branch_to_inputs.get(stem_name, x)
        if info['stage_range'][1] >= 0:
            stem_in = shattered_stages(params, info['stage_range'], stem_in)
        branch_tasks = [b for b in info['branches'] if b in TASKS]
        for branch in info['branches']:
            if branch not in TASKS:
                branch_to_inputs[branch] = stem_in
        if not branch_tasks:
            continue
        task_feats = stem_in
        if info['stage_range'][1] < TOTAL_STAGES:
            first_idx = info['stage_range'][1] + 1
            # Branch stages are deepcopy-at-init => weights tied, so compute ONCE and share
            # across all tasks of this stem (valid for forward while weights stay tied).
            task_feats = shattered_stages(params, [first_idx, TOTAL_STAGES], stem_in)
            # TODO(synk): generic_utils.register_forward_hooks is an external dep; record
            # the branch-stage output as each task's activation (same tensor, tied weights).
            act_nchw = jnp.transpose(task_feats.astype(jnp.float32), (0, 3, 1, 2))
            for branch in branch_tasks:
                activations[f'{branch}.en_stage_{first_idx}'] = act_nchw
        # One fused head + ONE fused bilinear resize for all tasks; split channels after.
        out = fused_heads(params, task_feats)                       # (N, h, w, sum_cls) f32
        if do_interpolate:
            out = bilinear_resize_nhwc(out, image_size[0], image_size[1])
        out_nchw = jnp.transpose(out, (0, 3, 1, 2))                 # back to NCHW
        start = 0
        for branch in branch_tasks:
            ncls = TASK_TO_CLASSES[branch]
            results[branch] = out_nchw[:, start:start + ncls]
            start += ncls
    results['activations'] = activations
    return results


# ---------------------------------------------------------------------------
if __name__ == "__main__":
    key = jax.random.PRNGKey(0)
    kx, kp = jax.random.split(key)
    x = jax.random.normal(kx, (2, 4, 16, 16), jnp.float32)   # NCHW input, like PyTorch
    params = init_params(kp, in_channels=4)

    fwd = jax.jit(mtsl_forward)
    out = fwd(params, x)
    jax.block_until_ready(jax.tree_util.tree_leaves(out))

    assert out['segment'].shape == (2, TASK_TO_CLASSES['segment'], 16, 16)
    assert out['depth'].shape == (2, TASK_TO_CLASSES['depth'], 16, 16)
    assert 'activations' in out
    assert bool(jnp.isfinite(out['segment']).all()) and bool(jnp.isfinite(out['depth']).all())
    print("KERNEL_OK")
</pallas_src>

<mosaic_0001>
module attributes {stable_mosaic.version = 11 : i64} {
  func.func @_conv3x3_kernel(%arg0: i32, %arg1: memref<1x18x18x4xbf16, #tpu.memory_space<vmem>>, %arg2: memref<36x8xbf16, #tpu.memory_space<vmem>>, %arg3: memref<1x8xf32, #tpu.memory_space<vmem>>, %arg4: memref<1x16x16x8xbf16, #tpu.memory_space<vmem>>) attributes {dimension_semantics = [#tpu.dimension_semantics<parallel>], iteration_bounds = array<i64: 2>, scalar_prefetch = 0 : i64, scratch_operands = 0 : i64, tpu.core_type = #tpu.core_type<tc>, window_params = [{transform_indices = @transform_0, window_bounds = array<i64: 1, 18, 18, 4>}, {pipeline_mode = #tpu.pipeline_mode<synchronous>, transform_indices = @transform_1, window_bounds = array<i64: 36, 8>}, {pipeline_mode = #tpu.pipeline_mode<synchronous>, transform_indices = @transform_2, window_bounds = array<i64: 1, 8>}, {transform_indices = @transform_3, window_bounds = array<i64: 1, 16, 16, 8>}]} {
    %c0 = arith.constant 0 : index
    %c0_0 = arith.constant 0 : index
    %c0_1 = arith.constant 0 : index
    %c0_2 = arith.constant 0 : index
    %0 = vector.load %arg1[%c0, %c0_0, %c0_1, %c0_2] : memref<1x18x18x4xbf16, #tpu.memory_space<vmem>>, vector<1x16x16x4xbf16>
    %1 = vector.shape_cast %0 : vector<1x16x16x4xbf16> to vector<16x16x4xbf16>
    %c0_3 = arith.constant 0 : index
    %c0_4 = arith.constant 0 : index
    %c1 = arith.constant 1 : index
    %c0_5 = arith.constant 0 : index
    %2 = vector.load %arg1[%c0_3, %c0_4, %c1, %c0_5] : memref<1x18x18x4xbf16, #tpu.memory_space<vmem>>, vector<1x16x16x4xbf16>
    %3 = vector.shape_cast %2 : vector<1x16x16x4xbf16> to vector<16x16x4xbf16>
    %c0_6 = arith.constant 0 : index
    %c0_7 = arith.constant 0 : index
    %c2 = arith.constant 2 : index
    %c0_8 = arith.constant 0 : index
    %4 = vector.load %arg1[%c0_6, %c0_7, %c2, %c0_8] : memref<1x18x18x4xbf16, #tpu.memory_space<vmem>>, vector<1x16x16x4xbf16>
    %5 = vector.shape_cast %4 : vector<1x16x16x4xbf16> to vector<16x16x4xbf16>
    %c0_9 = arith.constant 0 : index
    %c1_10 = arith.constant 1 : index
    %c0_11 = arith.constant 0 : index
    %c0_12 = arith.constant 0 : index
    %6 = vector.load %arg1[%c0_9, %c1_10, %c0_11, %c0_12] : memref<1x18x18x4xbf16, #tpu.memory_space<vmem>>, vector<1x16x16x4xbf16>
    %7 = vector.shape_cast %6 : vector<1x16x16x4xbf16> to vector<16x16x4xbf16>
    %c0_13 = arith.constant 0 : index
    %c1_14 = arith.constant 1 : index
    %c1_15 = arith.constant 1 : index
    %c0_16 = arith.constant 0 : index
    %8 = vector.load %arg1[%c0_13, %c1_14, %c1_15, %c0_16] : memref<1x18x18x4xbf16, #tpu.memory_space<vmem>>, vector<1x16x16x4xbf16>
    %9 = vector.shape_cast %8 : vector<1x16x16x4xbf16> to vector<16x16x4xbf16>
    %c0_17 = arith.constant 0 : index
    %c1_18 = arith.constant 1 : index
    %c2_19 = arith.constant 2 : index
    %c0_20 = arith.constant 0 : index
    %10 = vector.load %arg1[%c0_17, %c1_18, %c2_19, %c0_20] : memref<1x18x18x4xbf16, #tpu.memory_space<vmem>>, vector<1x16x16x4xbf16>
    %11 = vector.shape_cast %10 : vector<1x16x16x4xbf16> to vector<16x16x4xbf16>
    %c0_21 = arith.constant 0 : index
    %c2_22 = arith.constant 2 : index
    %c0_23 = arith.constant 0 : index
    %c0_24 = arith.constant 0 : index
    %12 = vector.load %arg1[%c0_21, %c2_22, %c0_23, %c0_24] : memref<1x18x18x4xbf16, #tpu.memory_space<vmem>>, vector<1x16x16x4xbf16>
    %13 = vector.shape_cast %12 : vector<1x16x16x4xbf16> to vector<16x16x4xbf16>
    %c0_25 = arith.constant 0 : index
    %c2_26 = arith.constant 2 : index
    %c1_27 = arith.constant 1 : index
    %c0_28 = arith.constant 0 : index
    %14 = vector.load %arg1[%c0_25, %c2_26, %c1_27, %c0_28] : memref<1x18x18x4xbf16, #tpu.memory_space<vmem>>, vector<1x16x16x4xbf16>
    %15 = vector.shape_cast %14 : vector<1x16x16x4xbf16> to vector<16x16x4xbf16>
    %c0_29 = arith.constant 0 : index
    %c2_30 = arith.constant 2 : index
    %c2_31 = arith.constant 2 : index
    %c0_32 = arith.constant 0 : index
    %16 = vector.load %arg1[%c0_29, %c2_30, %c2_31, %c0_32] : memref<1x18x18x4xbf16, #tpu.memory_space<vmem>>, vector<1x16x16x4xbf16>
    %17 = vector.shape_cast %16 : vector<1x16x16x4xbf16> to vector<16x16x4xbf16>
    %18 = tpu.concatenate %1, %3, %5, %7, %9, %11, %13, %15, %17 in 2 : vector<16x16x4xbf16>, vector<16x16x4xbf16>, vector<16x16x4xbf16>, vector<16x16x4xbf16>, vector<16x16x4xbf16>, vector<16x16x4xbf16>, vector<16x16x4xbf16>, vector<16x16x4xbf16>, vector<16x16x4xbf16> -> vector<16x16x36xbf16>
    %19 = vector.shape_cast %18 : vector<16x16x36xbf16> to vector<256x36xbf16>
    %c0_33 = arith.constant 0 : index
    %c0_34 = arith.constant 0 : index
    %20 = vector.load %arg2[%c0_33, %c0_34] : memref<36x8xbf16, #tpu.memory_space<vmem>>, vector<36x8xbf16>
    %cst = arith.constant dense<0.000000e+00> : vector<256x8xf32>
    %21 = tpu.matmul %19, %20, %cst {dimension_numbers = #tpu.dot_dimension_numbers<[1], [0], [0], [1], [0, 0, 1, 1], [], []>} : vector<256x36xbf16>, vector<36x8xbf16>, vector<256x8xf32> -> vector<256x8xf32>
    %c0_35 = arith.constant 0 : index
    %c0_36 = arith.constant 0 : index
    %22 = vector.load %arg3[%c0_35, %c0_36] : memref<1x8xf32, #tpu.memory_space<vmem>>, vector<1x8xf32>
    %23 = vector.broadcast %22 : vector<1x8xf32> to vector<256x8xf32>
    %24 = arith.addf %21, %23 : vector<256x8xf32>
    %cst_37 = arith.constant 0.000000e+00 : f32
    %25 = vector.broadcast %cst_37 : f32 to vector<256x8xf32>
    %26 = arith.maximumf %24, %25 : vector<256x8xf32>
    %27 = vector.shape_cast %26 : vector<256x8xf32> to vector<16x16x8xf32>
    %28 = arith.truncf %27 : vector<16x16x8xf32> to vector<16x16x8xbf16>
    %c0_38 = arith.constant 0 : index
    %c0_39 = arith.constant 0 : index
    %c0_40 = arith.constant 0 : index
    %c0_41 = arith.constant 0 : index
    %29 = vector.load %arg4[%c0_38, %c0_39, %c0_40, %c0_41] : memref<1x16x16x8xbf16, #tpu.memory_space<vmem>>, vector<1x16x16x8xbf16>
    %30 = vector.shape_cast %29 : vector<1x16x16x8xbf16> to vector<16x16x8xbf16>
    %31 = vector.shape_cast %28 : vector<16x16x8xbf16> to vector<1x16x16x8xbf16>
    tpu.vector_store %arg4[%c0_38, %c0_39, %c0_40, %c0_41], %31 {strides = array<i32>} : memref<1x16x16x8xbf16, #tpu.memory_space<vmem>>, vector<1x16x16x8xbf16>,
    return
  }
  func.func @transform_0(%arg0: i32) -> (i32, i32, i32, i32) {
    %c0_i32 = arith.constant 0 : i32
    %c0_i32_0 = arith.constant 0 : i32
    %c0_i32_1 = arith.constant 0 : i32
    %c0_i32_2 = arith.constant 0 : i32
    return %arg0, %c0_i32, %c0_i32_0, %c0_i32_1 : i32, i32, i32, i32
  }
  func.func @transform_1(%arg0: i32) -> (i32, i32) {
    %c0_i32 = arith.constant 0 : i32
    %c0_i32_0 = arith.constant 0 : i32
    %c0_i32_1 = arith.constant 0 : i32
    return %c0_i32, %c0_i32_0 : i32, i32
  }
  func.func @transform_2(%arg0: i32) -> (i32, i32) {
    %c0_i32 = arith.constant 0 : i32
    %c0_i32_0 = arith.constant 0 : i32
    %c0_i32_1 = arith.constant 0 : i32
    return %c0_i32, %c0_i32_0 : i32, i32
  }
  func.func @transform_3(%arg0: i32) -> (i32, i32, i32, i32) {
    %c0_i32 = arith.constant 0 : i32
    %c0_i32_0 = arith.constant 0 : i32
    %c0_i32_1 = arith.constant 0 : i32
    %c0_i32_2 = arith.constant 0 : i32
    return %arg0, %c0_i32, %c0_i32_0, %c0_i32_1 : i32, i32, i32, i32
  }
}

module attributes {stable_mosaic.version = 11 : i64} {
  func.func @_conv3x3_kernel(%arg0: i32, %arg1: memref<1x9x2x9x16xbf16, #tpu.memory_space<vmem>>, %arg2: memref<72x16xbf16, #tpu.memory_space<vmem>>, %arg3: memref<1x16xf32, #tpu.memory_space<vmem>>, %arg4: memref<1x8x8x16xbf16, #tpu.memory_space<vmem>>) attributes {dimension_semantics = [#tpu.dimension_semantics<parallel>], iteration_bounds = array<i64: 2>, scalar_prefetch = 0 : i64, scratch_operands = 0 : i64, tpu.core_type = #tpu.core_type<tc>, window_params = [{transform_indices = @transform_0, window_bounds = array<i64: 1, 9, 2, 9, 16>}, {pipeline_mode = #tpu.pipeline_mode<synchronous>, transform_indices = @transform_1, window_bounds = array<i64: 72, 16>}, {pipeline_mode = #tpu.pipeline_mode<synchronous>, transform_indices = @transform_2, window_bounds = array<i64: 1, 16>}, {transform_indices = @transform_3, window_bounds = array<i64: 1, 8, 8, 16>}]} {
    %c0 = arith.constant 0 : index
    %c0_0 = arith.constant 0 : index
    %c0_1 = arith.constant 0 : index
    %c0_2 = arith.constant 0 : index
    %c0_3 = arith.constant 0 : index
    %0 = vector.load %arg1[%c0, %c0_0, %c0_1, %c0_2, %c0_3] : memref<1x9x2x9x16xbf16, #tpu.memory_space<vmem>>, vector<1x8x1x8x8xbf16>
    %1 = vector.shape_cast %0 : vector<1x8x1x8x8xbf16> to vector<8x1x8x8xbf16>
    %2 = vector.shape_cast %1 : vector<8x1x8x8xbf16> to vector<8x8x8xbf16>
    %c0_4 = arith.constant 0 : index
    %c0_5 = arith.constant 0 : index
    %c0_6 = arith.constant 0 : index
    %c0_7 = arith.constant 0 : index
    %c8 = arith.constant 8 : index
    %3 = vector.load %arg1[%c0_4, %c0_5, %c0_6, %c0_7, %c8] : memref<1x9x2x9x16xbf16, #tpu.memory_space<vmem>>, vector<1x8x1x8x8xbf16>
    %4 = vector.shape_cast %3 : vector<1x8x1x8x8xbf16> to vector<8x1x8x8xbf16>
    %5 = vector.shape_cast %4 : vector<8x1x8x8xbf16> to vector<8x8x8xbf16>
    %c0_8 = arith.constant 0 : index
    %c0_9 = arith.constant 0 : index
    %c0_10 = arith.constant 0 : index
    %c1 = arith.constant 1 : index
    %c0_11 = arith.constant 0 : index
    %6 = vector.load %arg1[%c0_8, %c0_9, %c0_10, %c1, %c0_11] : memref<1x9x2x9x16xbf16, #tpu.memory_space<vmem>>, vector<1x8x1x8x8xbf16>
    %7 = vector.shape_cast %6 : vector<1x8x1x8x8xbf16> to vector<8x1x8x8xbf16>
    %8 = vector.shape_cast %7 : vector<8x1x8x8xbf16> to vector<8x8x8xbf16>
    %c0_12 = arith.constant 0 : index
    %c0_13 = arith.constant 0 : index
    %c1_14 = arith.constant 1 : index
    %c0_15 = arith.constant 0 : index
    %c0_16 = arith.constant 0 : index
    %9 = vector.load %arg1[%c0_12, %c0_13, %c1_14, %c0_15, %c0_16] : memref<1x9x2x9x16xbf16, #tpu.memory_space<vmem>>, vector<1x8x1x8x8xbf16>
    %10 = vector.shape_cast %9 : vector<1x8x1x8x8xbf16> to vector<8x1x8x8xbf16>
    %11 = vector.shape_cast %10 : vector<8x1x8x8xbf16> to vector<8x8x8xbf16>
    %c0_17 = arith.constant 0 : index
    %c0_18 = arith.constant 0 : index
    %c1_19 = arith.constant 1 : index
    %c0_20 = arith.constant 0 : index
    %c8_21 = arith.constant 8 : index
    %12 = vector.load %arg1[%c0_17, %c0_18, %c1_19, %c0_20, %c8_21] : memref<1x9x2x9x16xbf16, #tpu.memory_space<vmem>>, vector<1x8x1x8x8xbf16>
    %13 = vector.shape_cast %12 : vector<1x8x1x8x8xbf16> to vector<8x1x8x8xbf16>
    %14 = vector.shape_cast %13 : vector<8x1x8x8xbf16> to vector<8x8x8xbf16>
    %c0_22 = arith.constant 0 : index
    %c0_23 = arith.constant 0 : index
    %c1_24 = arith.constant 1 : index
    %c1_25 = arith.constant 1 : index
    %c0_26 = arith.constant 0 : index
    %15 = vector.load %arg1[%c0_22, %c0_23, %c1_24, %c1_25, %c0_26] : memref<1x9x2x9x16xbf16, #tpu.memory_space<vmem>>, vector<1x8x1x8x8xbf16>
    %16 = vector.shape_cast %15 : vector<1x8x1x8x8xbf16> to vector<8x1x8x8xbf16>
    %17 = vector.shape_cast %16 : vector<8x1x8x8xbf16> to vector<8x8x8xbf16>
    %c0_27 = arith.constant 0 : index
    %c1_28 = arith.constant 1 : index
    %c0_29 = arith.constant 0 : index
    %c0_30 = arith.constant 0 : index
    %c0_31 = arith.constant 0 : index
    %18 = vector.load %arg1[%c0_27, %c1_28, %c0_29, %c0_30, %c0_31] : memref<1x9x2x9x16xbf16, #tpu.memory_space<vmem>>, vector<1x8x1x8x8xbf16>
    %19 = vector.shape_cast %18 : vector<1x8x1x8x8xbf16> to vector<8x1x8x8xbf16>
    %20 = vector.shape_cast %19 : vector<8x1x8x8xbf16> to vector<8x8x8xbf16>
    %c0_32 = arith.constant 0 : index
    %c1_33 = arith.constant 1 : index
    %c0_34 = arith.constant 0 : index
    %c0_35 = arith.constant 0 : index
    %c8_36 = arith.constant 8 : index
    %21 = vector.load %arg1[%c0_32, %c1_33, %c0_34, %c0_35, %c8_36] : memref<1x9x2x9x16xbf16, #tpu.memory_space<vmem>>, vector<1x8x1x8x8xbf16>
    %22 = vector.shape_cast %21 : vector<1x8x1x8x8xbf16> to vector<8x1x8x8xbf16>
    %23 = vector.shape_cast %22 : vector<8x1x8x8xbf16> to vector<8x8x8xbf16>
    %c0_37 = arith.constant 0 : index
    %c1_38 = arith.constant 1 : index
    %c0_39 = arith.constant 0 : index
    %c1_40 = arith.constant 1 : index
    %c0_41 = arith.constant 0 : index
    %24 = vector.load %arg1[%c0_37, %c1_38, %c0_39, %c1_40, %c0_41] : memref<1x9x2x9x16xbf16, #tpu.memory_space<vmem>>, vector<1x8x1x8x8xbf16>
    %25 = vector.shape_cast %24 : vector<1x8x1x8x8xbf16> to vector<8x1x8x8xbf16>
    %26 = vector.shape_cast %25 : vector<8x1x8x8xbf16> to vector<8x8x8xbf16>
    %27 = tpu.concatenate %2, %5, %8, %11, %14, %17, %20, %23, %26 in 2 : vector<8x8x8xbf16>, vector<8x8x8xbf16>, vector<8x8x8xbf16>, vector<8x8x8xbf16>, vector<8x8x8xbf16>, vector<8x8x8xbf16>, vector<8x8x8xbf16>, vector<8x8x8xbf16>, vector<8x8x8xbf16> -> vector<8x8x72xbf16>
    %28 = vector.shape_cast %27 : vector<8x8x72xbf16> to vector<64x72xbf16>
    %c0_42 = arith.constant 0 : index
    %c0_43 = arith.constant 0 : index
    %29 = vector.load %arg2[%c0_42, %c0_43] : memref<72x16xbf16, #tpu.memory_space<vmem>>, vector<72x16xbf16>
    %cst = arith.constant dense<0.000000e+00> : vector<64x16xf32>
    %30 = tpu.matmul %28, %29, %cst {dimension_numbers = #tpu.dot_dimension_numbers<[1], [0], [0], [1], [0, 0, 1, 1], [], []>} : vector<64x72xbf16>, vector<72x16xbf16>, vector<64x16xf32> -> vector<64x16xf32>
    %c0_44 = arith.constant 0 : index
    %c0_45 = arith.constant 0 : index
    %31 = vector.load %arg3[%c0_44, %c0_45] : memref<1x16xf32, #tpu.memory_space<vmem>>, vector<1x16xf32>
    %32 = vector.broadcast %31 : vector<1x16xf32> to vector<64x16xf32>
    %33 = arith.addf %30, %32 : vector<64x16xf32>
    %cst_46 = arith.constant 0.000000e+00 : f32
    %34 = vector.broadcast %cst_46 : f32 to vector<64x16xf32>
    %35 = arith.maximumf %33, %34 : vector<64x16xf32>
    %36 = vector.shape_cast %35 : vector<64x16xf32> to vector<8x8x16xf32>
    %37 = arith.truncf %36 : vector<8x8x16xf32> to vector<8x8x16xbf16>
    %c0_47 = arith.constant 0 : index
    %c0_48 = arith.constant 0 : index
    %c0_49 = arith.constant 0 : index
    %c0_50 = arith.constant 0 : index
    %38 = vector.load %arg4[%c0_47, %c0_48, %c0_49, %c0_50] : memref<1x8x8x16xbf16, #tpu.memory_space<vmem>>, vector<1x8x8x16xbf16>
    %39 = vector.shape_cast %38 : vector<1x8x8x16xbf16> to vector<8x8x16xbf16>
    %40 = vector.shape_cast %37 : vector<8x8x16xbf16> to vector<1x8x8x16xbf16>
    tpu.vector_store %arg4[%c0_47, %c0_48, %c0_49, %c0_50], %40 {strides = array<i32>} : memref<1x8x8x16xbf16, #tpu.memory_space<vmem>>, vector<1x8x8x16xbf16>,
    return
  }
  func.func @transform_0(%arg0: i32) -> (i32, i32, i32, i32, i32) {
    %c0_i32 = arith.constant 0 : i32
    %c0_i32_0 = arith.constant 0 : i32
    %c0_i32_1 = arith.constant 0 : i32
    %c0_i32_2 = arith.constant 0 : i32
    %c0_i32_3 = arith.constant 0 : i32
    return %arg0, %c0_i32, %c0_i32_0, %c0_i32_1, %c0_i32_2 : i32, i32, i32, i32, i32
  }
  func.func @transform_1(%arg0: i32) -> (i32, i32) {
    %c0_i32 = arith.constant 0 : i32
    %c0_i32_0 = arith.constant 0 : i32
    %c0_i32_1 = arith.constant 0 : i32
    return %c0_i32, %c0_i32_0 : i32, i32
  }
  func.func @transform_2(%arg0: i32) -> (i32, i32) {
    %c0_i32 = arith.constant 0 : i32
    %c0_i32_0 = arith.constant 0 : i32
    %c0_i32_1 = arith.constant 0 : i32
    return %c0_i32, %c0_i32_0 : i32, i32
  }
  func.func @transform_3(%arg0: i32) -> (i32, i32, i32, i32) {
    %c0_i32 = arith.constant 0 : i32
    %c0_i32_0 = arith.constant 0 : i32
    %c0_i32_1 = arith.constant 0 : i32
    %c0_i32_2 = arith.constant 0 : i32
    return %arg0, %c0_i32, %c0_i32_0, %c0_i32_1 : i32, i32, i32, i32
  }
}

module attributes {stable_mosaic.version = 11 : i64} {
  func.func @_conv3x3_kernel(%arg0: i32, %arg1: memref<1x5x2x5x32xbf16, #tpu.memory_space<vmem>>, %arg2: memref<144x32xbf16, #tpu.memory_space<vmem>>, %arg3: memref<1x32xf32, #tpu.memory_space<vmem>>, %arg4: memref<1x4x4x32xbf16, #tpu.memory_space<vmem>>) attributes {dimension_semantics = [#tpu.dimension_semantics<parallel>], iteration_bounds = array<i64: 2>, scalar_prefetch = 0 : i64, scratch_operands = 0 : i64, tpu.core_type = #tpu.core_type<tc>, window_params = [{transform_indices = @transform_0, window_bounds = array<i64: 1, 5, 2, 5, 32>}, {pipeline_mode = #tpu.pipeline_mode<synchronous>, transform_indices = @transform_1, window_bounds = array<i64: 144, 32>}, {pipeline_mode = #tpu.pipeline_mode<synchronous>, transform_indices = @transform_2, window_bounds = array<i64: 1, 32>}, {transform_indices = @transform_3, window_bounds = array<i64: 1, 4, 4, 32>}]} {
    %c0 = arith.constant 0 : index
    %c0_0 = arith.constant 0 : index
    %c0_1 = arith.constant 0 : index
    %c0_2 = arith.constant 0 : index
    %c0_3 = arith.constant 0 : index
    %0 = vector.load %arg1[%c0, %c0_0, %c0_1, %c0_2, %c0_3] : memref<1x5x2x5x32xbf16, #tpu.memory_space<vmem>>, vector<1x4x1x4x16xbf16>
    %1 = vector.shape_cast %0 : vector<1x4x1x4x16xbf16> to vector<4x1x4x16xbf16>
    %2 = vector.shape_cast %1 : vector<4x1x4x16xbf16> to vector<4x4x16xbf16>
    %c0_4 = arith.constant 0 : index
    %c0_5 = arith.constant 0 : index
    %c0_6 = arith.constant 0 : index
    %c0_7 = arith.constant 0 : index
    %c16 = arith.constant 16 : index
    %3 = vector.load %arg1[%c0_4, %c0_5, %c0_6, %c0_7, %c16] : memref<1x5x2x5x32xbf16, #tpu.memory_space<vmem>>, vector<1x4x1x4x16xbf16>
    %4 = vector.shape_cast %3 : vector<1x4x1x4x16xbf16> to vector<4x1x4x16xbf16>
    %5 = vector.shape_cast %4 : vector<4x1x4x16xbf16> to vector<4x4x16xbf16>
    %c0_8 = arith.constant 0 : index
    %c0_9 = arith.constant 0 : index
    %c0_10 = arith.constant 0 : index
    %c1 = arith.constant 1 : index
    %c0_11 = arith.constant 0 : index
    %6 = vector.load %arg1[%c0_8, %c0_9, %c0_10, %c1, %c0_11] : memref<1x5x2x5x32xbf16, #tpu.memory_space<vmem>>, vector<1x4x1x4x16xbf16>
    %7 = vector.shape_cast %6 : vector<1x4x1x4x16xbf16> to vector<4x1x4x16xbf16>
    %8 = vector.shape_cast %7 : vector<4x1x4x16xbf16> to vector<4x4x16xbf16>
    %c0_12 = arith.constant 0 : index
    %c0_13 = arith.constant 0 : index
    %c1_14 = arith.constant 1 : index
    %c0_15 = arith.constant 0 : index
    %c0_16 = arith.constant 0 : index
    %9 = vector.load %arg1[%c0_12, %c0_13, %c1_14, %c0_15, %c0_16] : memref<1x5x2x5x32xbf16, #tpu.memory_space<vmem>>, vector<1x4x1x4x16xbf16>
    %10 = vector.shape_cast %9 : vector<1x4x1x4x16xbf16> to vector<4x1x4x16xbf16>
    %11 = vector.shape_cast %10 : vector<4x1x4x16xbf16> to vector<4x4x16xbf16>
    %c0_17 = arith.constant 0 : index
    %c0_18 = arith.constant 0 : index
    %c1_19 = arith.constant 1 : index
    %c0_20 = arith.constant 0 : index
    %c16_21 = arith.constant 16 : index
    %12 = vector.load %arg1[%c0_17, %c0_18, %c1_19, %c0_20, %c16_21] : memref<1x5x2x5x32xbf16, #tpu.memory_space<vmem>>, vector<1x4x1x4x16xbf16>
    %13 = vector.shape_cast %12 : vector<1x4x1x4x16xbf16> to vector<4x1x4x16xbf16>
    %14 = vector.shape_cast %13 : vector<4x1x4x16xbf16> to vector<4x4x16xbf16>
    %c0_22 = arith.constant 0 : index
    %c0_23 = arith.constant 0 : index
    %c1_24 = arith.constant 1 : index
    %c1_25 = arith.constant 1 : index
    %c0_26 = arith.constant 0 : index
    %15 = vector.load %arg1[%c0_22, %c0_23, %c1_24, %c1_25, %c0_26] : memref<1x5x2x5x32xbf16, #tpu.memory_space<vmem>>, vector<1x4x1x4x16xbf16>
    %16 = vector.shape_cast %15 : vector<1x4x1x4x16xbf16> to vector<4x1x4x16xbf16>
    %17 = vector.shape_cast %16 : vector<4x1x4x16xbf16> to vector<4x4x16xbf16>
    %c0_27 = arith.constant 0 : index
    %c1_28 = arith.constant 1 : index
    %c0_29 = arith.constant 0 : index
    %c0_30 = arith.constant 0 : index
    %c0_31 = arith.constant 0 : index
    %18 = vector.load %arg1[%c0_27, %c1_28, %c0_29, %c0_30, %c0_31] : memref<1x5x2x5x32xbf16, #tpu.memory_space<vmem>>, vector<1x4x1x4x16xbf16>
    %19 = vector.shape_cast %18 : vector<1x4x1x4x16xbf16> to vector<4x1x4x16xbf16>
    %20 = vector.shape_cast %19 : vector<4x1x4x16xbf16> to vector<4x4x16xbf16>
    %c0_32 = arith.constant 0 : index
    %c1_33 = arith.constant 1 : index
    %c0_34 = arith.constant 0 : index
    %c0_35 = arith.constant 0 : index
    %c16_36 = arith.constant 16 : index
    %21 = vector.load %arg1[%c0_32, %c1_33, %c0_34, %c0_35, %c16_36] : memref<1x5x2x5x32xbf16, #tpu.memory_space<vmem>>, vector<1x4x1x4x16xbf16>
    %22 = vector.shape_cast %21 : vector<1x4x1x4x16xbf16> to vector<4x1x4x16xbf16>
    %23 = vector.shape_cast %22 : vector<4x1x4x16xbf16> to vector<4x4x16xbf16>
    %c0_37 = arith.constant 0 : index
    %c1_38 = arith.constant 1 : index
    %c0_39 = arith.constant 0 : index
    %c1_40 = arith.constant 1 : index
    %c0_41 = arith.constant 0 : index
    %24 = vector.load %arg1[%c0_37, %c1_38, %c0_39, %c1_40, %c0_41] : memref<1x5x2x5x32xbf16, #tpu.memory_space<vmem>>, vector<1x4x1x4x16xbf16>
    %25 = vector.shape_cast %24 : vector<1x4x1x4x16xbf16> to vector<4x1x4x16xbf16>
    %26 = vector.shape_cast %25 : vector<4x1x4x16xbf16> to vector<4x4x16xbf16>
    %27 = tpu.concatenate %2, %5, %8, %11, %14, %17, %20, %23, %26 in 2 : vector<4x4x16xbf16>, vector<4x4x16xbf16>, vector<4x4x16xbf16>, vector<4x4x16xbf16>, vector<4x4x16xbf16>, vector<4x4x16xbf16>, vector<4x4x16xbf16>, vector<4x4x16xbf16>, vector<4x4x16xbf16> -> vector<4x4x144xbf16>
    %28 = vector.shape_cast %27 : vector<4x4x144xbf16> to vector<16x144xbf16>
    %c0_42 = arith.constant 0 : index
    %c0_43 = arith.constant 0 : index
    %29 = vector.load %arg2[%c0_42, %c0_43] : memref<144x32xbf16, #tpu.memory_space<vmem>>, vector<144x32xbf16>
    %cst = arith.constant dense<0.000000e+00> : vector<16x32xf32>
    %30 = tpu.matmul %28, %29, %cst {dimension_numbers = #tpu.dot_dimension_numbers<[1], [0], [0], [1], [0, 0, 1, 1], [], []>} : vector<16x144xbf16>, vector<144x32xbf16>, vector<16x32xf32> -> vector<16x32xf32>
    %c0_44 = arith.constant 0 : index
    %c0_45 = arith.constant 0 : index
    %31 = vector.load %arg3[%c0_44, %c0_45] : memref<1x32xf32, #tpu.memory_space<vmem>>, vector<1x32xf32>
    %32 = vector.broadcast %31 : vector<1x32xf32> to vector<16x32xf32>
    %33 = arith.addf %30, %32 : vector<16x32xf32>
    %cst_46 = arith.constant 0.000000e+00 : f32
    %34 = vector.broadcast %cst_46 : f32 to vector<16x32xf32>
    %35 = arith.maximumf %33, %34 : vector<16x32xf32>
    %36 = vector.shape_cast %35 : vector<16x32xf32> to vector<4x4x32xf32>
    %37 = arith.truncf %36 : vector<4x4x32xf32> to vector<4x4x32xbf16>
    %c0_47 = arith.constant 0 : index
    %c0_48 = arith.constant 0 : index
    %c0_49 = arith.constant 0 : index
    %c0_50 = arith.constant 0 : index
    %38 = vector.load %arg4[%c0_47, %c0_48, %c0_49, %c0_50] : memref<1x4x4x32xbf16, #tpu.memory_space<vmem>>, vector<1x4x4x32xbf16>
    %39 = vector.shape_cast %38 : vector<1x4x4x32xbf16> to vector<4x4x32xbf16>
    %40 = vector.shape_cast %37 : vector<4x4x32xbf16> to vector<1x4x4x32xbf16>
    tpu.vector_store %arg4[%c0_47, %c0_48, %c0_49, %c0_50], %40 {strides = array<i32>} : memref<1x4x4x32xbf16, #tpu.memory_space<vmem>>, vector<1x4x4x32xbf16>,
    return
  }
  func.func @transform_0(%arg0: i32) -> (i32, i32, i32, i32, i32) {
    %c0_i32 = arith.constant 0 : i32
    %c0_i32_0 = arith.constant 0 : i32
    %c0_i32_1 = arith.constant 0 : i32
    %c0_i32_2 = arith.constant 0 : i32
    %c0_i32_3 = arith.constant 0 : i32
    return %arg0, %c0_i32, %c0_i32_0, %c0_i32_1, %c0_i32_2 : i32, i32, i32, i32, i32
  }
  func.func @transform_1(%arg0: i32) -> (i32, i32) {
    %c0_i32 = arith.constant 0 : i32
    %c0_i32_0 = arith.constant 0 : i32
    %c0_i32_1 = arith.constant 0 : i32
    return %c0_i32, %c0_i32_0 : i32, i32
  }
  func.func @transform_2(%arg0: i32) -> (i32, i32) {
    %c0_i32 = arith.constant 0 : i32
    %c0_i32_0 = arith.constant 0 : i32
    %c0_i32_1 = arith.constant 0 : i32
    return %c0_i32, %c0_i32_0 : i32, i32
  }
  func.func @transform_3(%arg0: i32) -> (i32, i32, i32, i32) {
    %c0_i32 = arith.constant 0 : i32
    %c0_i32_0 = arith.constant 0 : i32
    %c0_i32_1 = arith.constant 0 : i32
    %c0_i32_2 = arith.constant 0 : i32
    return %arg0, %c0_i32, %c0_i32_0, %c0_i32_1 : i32, i32, i32, i32
  }
}

module attributes {stable_mosaic.version = 11 : i64} {
  func.func @_head_kernel(%arg0: i32, %arg1: memref<1x6x6x32xbf16, #tpu.memory_space<vmem>>, %arg2: memref<288x32xbf16, #tpu.memory_space<vmem>>, %arg3: memref<1x32xf32, #tpu.memory_space<vmem>>, %arg4: memref<32x6xbf16, #tpu.memory_space<vmem>>, %arg5: memref<1x6xf32, #tpu.memory_space<vmem>>, %arg6: memref<1x4x4x6xf32, #tpu.memory_space<vmem>>) attributes {dimension_semantics = [#tpu.dimension_semantics<parallel>], iteration_bounds = array<i64: 2>, scalar_prefetch = 0 : i64, scratch_operands = 0 : i64, tpu.core_type = #tpu.core_type<tc>, window_params = [{transform_indices = @transform_0, window_bounds = array<i64: 1, 6, 6, 32>}, {pipeline_mode = #tpu.pipeline_mode<synchronous>, transform_indices = @transform_1, window_bounds = array<i64: 288, 32>}, {pipeline_mode = #tpu.pipeline_mode<synchronous>, transform_indices = @transform_2, window_bounds = array<i64: 1, 32>}, {pipeline_mode = #tpu.pipeline_mode<synchronous>, transform_indices = @transform_3, window_bounds = array<i64: 32, 6>}, {pipeline_mode = #tpu.pipeline_mode<synchronous>, transform_indices = @transform_4, window_bounds = array<i64: 1, 6>}, {transform_indices = @transform_5, window_bounds = array<i64: 1, 4, 4, 6>}]} {
    %c0 = arith.constant 0 : index
    %c0_0 = arith.constant 0 : index
    %c0_1 = arith.constant 0 : index
    %c0_2 = arith.constant 0 : index
    %0 = vector.load %arg1[%c0, %c0_0, %c0_1, %c0_2] : memref<1x6x6x32xbf16, #tpu.memory_space<vmem>>, vector<1x4x4x32xbf16>
    %1 = vector.shape_cast %0 : vector<1x4x4x32xbf16> to vector<4x4x32xbf16>
    %c0_3 = arith.constant 0 : index
    %c0_4 = arith.constant 0 : index
    %c1 = arith.constant 1 : index
    %c0_5 = arith.constant 0 : index
    %2 = vector.load %arg1[%c0_3, %c0_4, %c1, %c0_5] : memref<1x6x6x32xbf16, #tpu.memory_space<vmem>>, vector<1x4x4x32xbf16>
    %3 = vector.shape_cast %2 : vector<1x4x4x32xbf16> to vector<4x4x32xbf16>
    %c0_6 = arith.constant 0 : index
    %c0_7 = arith.constant 0 : index
    %c2 = arith.constant 2 : index
    %c0_8 = arith.constant 0 : index
    %4 = vector.load %arg1[%c0_6, %c0_7, %c2, %c0_8] : memref<1x6x6x32xbf16, #tpu.memory_space<vmem>>, vector<1x4x4x32xbf16>
    %5 = vector.shape_cast %4 : vector<1x4x4x32xbf16> to vector<4x4x32xbf16>
    %c0_9 = arith.constant 0 : index
    %c1_10 = arith.constant 1 : index
    %c0_11 = arith.constant 0 : index
    %c0_12 = arith.constant 0 : index
    %6 = vector.load %arg1[%c0_9, %c1_10, %c0_11, %c0_12] : memref<1x6x6x32xbf16, #tpu.memory_space<vmem>>, vector<1x4x4x32xbf16>
    %7 = vector.shape_cast %6 : vector<1x4x4x32xbf16> to vector<4x4x32xbf16>
    %c0_13 = arith.constant 0 : index
    %c1_14 = arith.constant 1 : index
    %c1_15 = arith.constant 1 : index
    %c0_16 = arith.constant 0 : index
    %8 = vector.load %arg1[%c0_13, %c1_14, %c1_15, %c0_16] : memref<1x6x6x32xbf16, #tpu.memory_space<vmem>>, vector<1x4x4x32xbf16>
    %9 = vector.shape_cast %8 : vector<1x4x4x32xbf16> to vector<4x4x32xbf16>
    %c0_17 = arith.constant 0 : index
    %c1_18 = arith.constant 1 : index
    %c2_19 = arith.constant 2 : index
    %c0_20 = arith.constant 0 : index
    %10 = vector.load %arg1[%c0_17, %c1_18, %c2_19, %c0_20] : memref<1x6x6x32xbf16, #tpu.memory_space<vmem>>, vector<1x4x4x32xbf16>
    %11 = vector.shape_cast %10 : vector<1x4x4x32xbf16> to vector<4x4x32xbf16>
    %c0_21 = arith.constant 0 : index
    %c2_22 = arith.constant 2 : index
    %c0_23 = arith.constant 0 : index
    %c0_24 = arith.constant 0 : index
    %12 = vector.load %arg1[%c0_21, %c2_22, %c0_23, %c0_24] : memref<1x6x6x32xbf16, #tpu.memory_space<vmem>>, vector<1x4x4x32xbf16>
    %13 = vector.shape_cast %12 : vector<1x4x4x32xbf16> to vector<4x4x32xbf16>
    %c0_25 = arith.constant 0 : index
    %c2_26 = arith.constant 2 : index
    %c1_27 = arith.constant 1 : index
    %c0_28 = arith.constant 0 : index
    %14 = vector.load %arg1[%c0_25, %c2_26, %c1_27, %c0_28] : memref<1x6x6x32xbf16, #tpu.memory_space<vmem>>, vector<1x4x4x32xbf16>
    %15 = vector.shape_cast %14 : vector<1x4x4x32xbf16> to vector<4x4x32xbf16>
    %c0_29 = arith.constant 0 : index
    %c2_30 = arith.constant 2 : index
    %c2_31 = arith.constant 2 : index
    %c0_32 = arith.constant 0 : index
    %16 = vector.load %arg1[%c0_29, %c2_30, %c2_31, %c0_32] : memref<1x6x6x32xbf16, #tpu.memory_space<vmem>>, vector<1x4x4x32xbf16>
    %17 = vector.shape_cast %16 : vector<1x4x4x32xbf16> to vector<4x4x32xbf16>
    %18 = tpu.concatenate %1, %3, %5, %7, %9, %11, %13, %15, %17 in 2 : vector<4x4x32xbf16>, vector<4x4x32xbf16>, vector<4x4x32xbf16>, vector<4x4x32xbf16>, vector<4x4x32xbf16>, vector<4x4x32xbf16>, vector<4x4x32xbf16>, vector<4x4x32xbf16>, vector<4x4x32xbf16> -> vector<4x4x288xbf16>
    %19 = vector.shape_cast %18 : vector<4x4x288xbf16> to vector<16x288xbf16>
    %c0_33 = arith.constant 0 : index
    %c0_34 = arith.constant 0 : index
    %20 = vector.load %arg2[%c0_33, %c0_34] : memref<288x32xbf16, #tpu.memory_space<vmem>>, vector<288x32xbf16>
    %cst = arith.constant dense<0.000000e+00> : vector<16x32xf32>
    %21 = tpu.matmul %19, %20, %cst {dimension_numbers = #tpu.dot_dimension_numbers<[1], [0], [0], [1], [0, 0, 1, 1], [], []>} : vector<16x288xbf16>, vector<288x32xbf16>, vector<16x32xf32> -> vector<16x32xf32>
    %c0_35 = arith.constant 0 : index
    %c0_36 = arith.constant 0 : index
    %22 = vector.load %arg3[%c0_35, %c0_36] : memref<1x32xf32, #tpu.memory_space<vmem>>, vector<1x32xf32>
    %23 = vector.broadcast %22 : vector<1x32xf32> to vector<16x32xf32>
    %24 = arith.addf %21, %23 : vector<16x32xf32>
    %cst_37 = arith.constant 0.000000e+00 : f32
    %25 = vector.broadcast %cst_37 : f32 to vector<16x32xf32>
    %26 = arith.maximumf %24, %25 : vector<16x32xf32>
    %27 = arith.truncf %26 : vector<16x32xf32> to vector<16x32xbf16>
    %c0_38 = arith.constant 0 : index
    %c0_39 = arith.constant 0 : index
    %28 = vector.load %arg4[%c0_38, %c0_39] : memref<32x6xbf16, #tpu.memory_space<vmem>>, vector<32x6xbf16>
    %cst_40 = arith.constant dense<0.000000e+00> : vector<16x6xf32>
    %29 = tpu.matmul %27, %28, %cst_40 {dimension_numbers = #tpu.dot_dimension_numbers<[1], [0], [0], [1], [0, 0, 1, 1], [], []>} : vector<16x32xbf16>, vector<32x6xbf16>, vector<16x6xf32> -> vector<16x6xf32>
    %c0_41 = arith.constant 0 : index
    %c0_42 = arith.constant 0 : index
    %30 = vector.load %arg5[%c0_41, %c0_42] : memref<1x6xf32, #tpu.memory_space<vmem>>, vector<1x6xf32>
    %31 = vector.broadcast %30 : vector<1x6xf32> to vector<16x6xf32>
    %32 = arith.addf %29, %31 : vector<16x6xf32>
    %33 = vector.shape_cast %32 : vector<16x6xf32> to vector<4x4x6xf32>
    %c0_43 = arith.constant 0 : index
    %c0_44 = arith.constant 0 : index
    %c0_45 = arith.constant 0 : index
    %c0_46 = arith.constant 0 : index
    %34 = vector.load %arg6[%c0_43, %c0_44, %c0_45, %c0_46] : memref<1x4x4x6xf32, #tpu.memory_space<vmem>>, vector<1x4x4x6xf32>
    %35 = vector.shape_cast %34 : vector<1x4x4x6xf32> to vector<4x4x6xf32>
    %36 = vector.shape_cast %33 : vector<4x4x6xf32> to vector<1x4x4x6xf32>
    tpu.vector_store %arg6[%c0_43, %c0_44, %c0_45, %c0_46], %36 {strides = array<i32>} : memref<1x4x4x6xf32, #tpu.memory_space<vmem>>, vector<1x4x4x6xf32>,
    return
  }
  func.func @transform_0(%arg0: i32) -> (i32, i32, i32, i32) {
    %c0_i32 = arith.constant 0 : i32
    %c0_i32_0 = arith.constant 0 : i32
    %c0_i32_1 = arith.constant 0 : i32
    %c0_i32_2 = arith.constant 0 : i32
    return %arg0, %c0_i32, %c0_i32_0, %c0_i32_1 : i32, i32, i32, i32
  }
  func.func @transform_1(%arg0: i32) -> (i32, i32) {
    %c0_i32 = arith.constant 0 : i32
    %c0_i32_0 = arith.constant 0 : i32
    %c0_i32_1 = arith.constant 0 : i32
    return %c0_i32, %c0_i32_0 : i32, i32
  }
  func.func @transform_2(%arg0: i32) -> (i32, i32) {
    %c0_i32 = arith.constant 0 : i32
    %c0_i32_0 = arith.constant 0 : i32
    %c0_i32_1 = arith.constant 0 : i32
    return %c0_i32, %c0_i32_0 : i32, i32
  }
  func.func @transform_3(%arg0: i32) -> (i32, i32) {
    %c0_i32 = arith.constant 0 : i32
    %c0_i32_0 = arith.constant 0 : i32
    %c0_i32_1 = arith.constant 0 : i32
    return %c0_i32, %c0_i32_0 : i32, i32
  }
  func.func @transform_4(%arg0: i32) -> (i32, i32) {
    %c0_i32 = arith.constant 0 : i32
    %c0_i32_0 = arith.constant 0 : i32
    %c0_i32_1 = arith.constant 0 : i32
    return %c0_i32, %c0_i32_0 : i32, i32
  }
  func.func @transform_5(%arg0: i32) -> (i32, i32, i32, i32) {
    %c0_i32 = arith.constant 0 : i32
    %c0_i32_0 = arith.constant 0 : i32
    %c0_i32_1 = arith.constant 0 : i32
    %c0_i32_2 = arith.constant 0 : i32
    return %arg0, %c0_i32, %c0_i32_0, %c0_i32_1 : i32, i32, i32, i32
  }
}

module attributes {stable_mosaic.version = 11 : i64} {
  func.func @_resize_kernel(%arg0: i32, %arg1: memref<1x4x24xf32, #tpu.memory_space<vmem>>, %arg2: memref<24x96xbf16, #tpu.memory_space<vmem>>, %arg3: memref<16x4xbf16, #tpu.memory_space<vmem>>, %arg4: memref<1x16x96xf32, #tpu.memory_space<vmem>>) attributes {dimension_semantics = [#tpu.dimension_semantics<parallel>], iteration_bounds = array<i64: 2>, scalar_prefetch = 0 : i64, scratch_operands = 0 : i64, tpu.core_type = #tpu.core_type<tc>, window_params = [{transform_indices = @transform_0, window_bounds = array<i64: 1, 4, 24>}, {pipeline_mode = #tpu.pipeline_mode<synchronous>, transform_indices = @transform_1, window_bounds = array<i64: 24, 96>}, {pipeline_mode = #tpu.pipeline_mode<synchronous>, transform_indices = @transform_2, window_bounds = array<i64: 16, 4>}, {transform_indices = @transform_3, window_bounds = array<i64: 1, 16, 96>}]} {
    %c0 = arith.constant 0 : index
    %c0_0 = arith.constant 0 : index
    %c0_1 = arith.constant 0 : index
    %0 = vector.load %arg1[%c0, %c0_0, %c0_1] : memref<1x4x24xf32, #tpu.memory_space<vmem>>, vector<1x4x24xf32>
    %1 = vector.shape_cast %0 : vector<1x4x24xf32> to vector<4x24xf32>
    %2 = arith.truncf %1 : vector<4x24xf32> to vector<4x24xbf16>
    %c0_2 = arith.constant 0 : index
    %c0_3 = arith.constant 0 : index
    %3 = vector.load %arg2[%c0_2, %c0_3] : memref<24x96xbf16, #tpu.memory_space<vmem>>, vector<24x96xbf16>
    %cst = arith.constant dense<0.000000e+00> : vector<4x96xf32>
    %4 = tpu.matmul %2, %3, %cst {dimension_numbers = #tpu.dot_dimension_numbers<[1], [0], [0], [1], [0, 0, 1, 1], [], []>} : vector<4x24xbf16>, vector<24x96xbf16>, vector<4x96xf32> -> vector<4x96xf32>
    %c0_4 = arith.constant 0 : index
    %c0_5 = arith.constant 0 : index
    %5 = vector.load %arg3[%c0_4, %c0_5] : memref<16x4xbf16, #tpu.memory_space<vmem>>, vector<16x4xbf16>
    %6 = arith.truncf %4 : vector<4x96xf32> to vector<4x96xbf16>
    %cst_6 = arith.constant dense<0.000000e+00> : vector<16x96xf32>
    %7 = tpu.matmul %5, %6, %cst_6 {dimension_numbers = #tpu.dot_dimension_numbers<[1], [0], [0], [1], [0, 0, 1, 1], [], []>} : vector<16x4xbf16>, vector<4x96xbf16>, vector<16x96xf32> -> vector<16x96xf32>
    %c0_7 = arith.constant 0 : index
    %c0_8 = arith.constant 0 : index
    %c0_9 = arith.constant 0 : index
    %8 = vector.load %arg4[%c0_7, %c0_8, %c0_9] : memref<1x16x96xf32, #tpu.memory_space<vmem>>, vector<1x16x96xf32>
    %9 = vector.shape_cast %8 : vector<1x16x96xf32> to vector<16x96xf32>
    %10 = vector.shape_cast %7 : vector<16x96xf32> to vector<1x16x96xf32>
    tpu.vector_store %arg4[%c0_7, %c0_8, %c0_9], %10 {strides = array<i32>} : memref<1x16x96xf32, #tpu.memory_space<vmem>>, vector<1x16x96xf32>,
    return
  }
  func.func @transform_0(%arg0: i32) -> (i32, i32, i32) {
    %c0_i32 = arith.constant 0 : i32
    %c0_i32_0 = arith.constant 0 : i32
    %c0_i32_1 = arith.constant 0 : i32
    return %arg0, %c0_i32, %c0_i32_0 : i32, i32, i32
  }
  func.func @transform_1(%arg0: i32) -> (i32, i32) {
    %c0_i32 = arith.constant 0 : i32
    %c0_i32_0 = arith.constant 0 : i32
    %c0_i32_1 = arith.constant 0 : i32
    return %c0_i32, %c0_i32_0 : i32, i32
  }
  func.func @transform_2(%arg0: i32) -> (i32, i32) {
    %c0_i32 = arith.constant 0 : i32
    %c0_i32_0 = arith.constant 0 : i32
    %c0_i32_1 = arith.constant 0 : i32
    return %c0_i32, %c0_i32_0 : i32, i32
  }
  func.func @transform_3(%arg0: i32) -> (i32, i32, i32) {
    %c0_i32 = arith.constant 0 : i32
    %c0_i32_0 = arith.constant 0 : i32
    %c0_i32_1 = arith.constant 0 : i32
    return %arg0, %c0_i32, %c0_i32_0 : i32, i32, i32
  }
}

</mosaic_0001>

<bundles_post_ra>
// kernel: mtsl_forward.7
= control target key start
LH: loop header
LB: loop body
LE: loop exit
PB: predicated region body
PF: predicated region fallthrough
CT: control target
= control target key end

     0   :  { %s745_s12 = smov 0   ;;  %s872_s0 = inlined_call_operand.vmem [shape: bf16[2,5,2,5,32], index: 0, kind: input, shape index: {}]   ;;  %s873_s1 = inlined_call_operand.vmem [shape: bf16[144,32], index: 1, kind: input, shape index: {}]   ;;  %s874_s2 = inlined_call_operand.vmem [shape: f32[1,32], index: 2, kind: input, shape index: {}]   ;;  %s875_s3 = inlined_call_operand.vmem [shape: bf16[2,4,4,32], index: 3, kind: output, shape index: {}]  }
   0x1 LB: > { %s626_s13 = sadd.s32 4294967295, %s719_s12   ;;  %p630_p0 = scmp.ge.s32.totalorder %s719_s12, 1  ;;  %s719_s12 = sphi %s745_s12, %s13_s12  }
   0x2   : > { %p137_p1 = scmp.lt.s32.totalorder %s719_s12, 3 }
   0x4   : > { %p138_p2 = pnand %p630_p0, %p137_p1 }
   0x5   : > { %p161_p3 = scmp.lt.s32.totalorder (!%p138_p2), %s626_s13, 1  ;;  %s721_s18 = smov (!%p138_p2), 48  }
   0x6   : > { %141 = sbr.rel (%p138_p2) target bundleno = 331 (0x14b), region = 32  ;;  %s722_s19 = smov (!%p138_p2), 32  }
   0x7   : > { %s723_s20 = smov (!%p138_p2), 80   ;;  %s724_s21 = smov (!%p138_p2), 96  }
   0xb   : > { %s877_s13 = smov (!%p161_p3, %s626_s13), 1  ;;  %vm379_vm0 = vcmask 261120   ;;  %vm388_vm1 = vcmask 392192   ;;  %vm397_vm2 = vcmask 523264   ;;  %vm411_vm3 = vcmask 785408  }
   0xc   : > { %s699_s14 = smul.u32 40, %s877_s13  ;;  %vm402_vm4 = vcmask 654336   ;;  %vm420_vm5 = vcmask 916480   ;;  %vm429_vm6 = vcmask 1041408   ;;  %vm374_vm7 = vcmask 130048  }
   0xd   : > { %vm566_vm8 = vcmask 254976  }
   0xe   : > { %s759_s17 = scalar_lea.vmem %s872_s0, %s699_s14 }
   0xf   : > { %v637_v0 = vld [vmem:[%s759_s17 + $0x1c] sm:$0x3]  ;;  %v636_v1 = vld [vmem:[%s759_s17 + $0x14] sm:$0x3]  ;;  %v178_v2 = vld [vmem:[%s759_s17 + $0x10] sm:$0x7] }
  0x10   : > { %v253_v3 = vunpack.c.l.b16 %v637_v0  ;;  %v252_v4 = vunpack.c.l.b16 %v636_v1  ;;  %v204_v5 = vunpack.c.l.b16 %v178_v2  ;;  %v176_v6 = vld [vmem:[%s759_s17] sm:$0x7]  ;;  %v179_v7 = vld [vmem:[%s759_s17 + $0x18] sm:$0x7]  ;;  %v177_v8 = vld [vmem:[%s759_s17 + $0x8] sm:$0x7] }
  0x11   : > { %v202_v9 = vunpack.c.l.b16 %v176_v6  ;;  %v205_v10 = vunpack.c.l.b16 %v179_v7  ;;  %v203_v11 = vunpack.c.l.b16 %v177_v8  ;;  %v634_v12 = vld [vmem:[%s759_s17 + $0x4] sm:$0x3]  ;;  %v640_v23 = vld [vmem:[%s759_s17 + $0x14] sm:$0x7]  ;;  %v635_v24 = vld [vmem:[%s759_s17 + $0xc] sm:$0x3] }
  0x12   : > { %v257_v13 = vpack.c.b16 %v253_v3, %v253_v3  ;;  %v256_v14 = vpack.c.b16 %v252_v4, %v252_v4  ;;  %v208_v15 = vpack.c.b16 %v204_v5, %v204_v5  ;;  %v250_v16 = vunpack.c.l.b16 %v634_v12  ;;  %v639_v27 = vld [vmem:[%s759_s17 + $0xc] sm:$0x7]  ;;  %v638_v36 = vld [vmem:[%s759_s17 + $0x4] sm:$0x7]  ;;  %v641_v38 = vld [vmem:[%s759_s17 + $0x1c] sm:$0x7] }
  0x13   : > { %v206_v17 = vpack.c.b16 %v202_v9, %v202_v9  ;;  %v209_v18 = vpack.c.b16 %v205_v10, %v205_v10  ;;  %v207_v21 = vpack.c.b16 %v203_v11, %v203_v11  ;;  %v272_v30 = vunpack.c.l.b16 %v640_v23  ;;  %v643_v3 = vld [vmem:[%s759_s17 + $0x10] sm:$0x3]  ;;  %v642_v4 = vld [vmem:[%s759_s17 + $0x8] sm:$0x3]  ;;  %v644_v6 = vld [vmem:[%s759_s17 + $0x18] sm:$0x3] }
  0x14   : > { %264 = vrot.lane.b32.xlu1 %v257_v13, %s721_s18  ;;  %262 = vrot.lane.b32.xlu0 %v256_v14, %s721_s18  ;;  %v225_v19 = vshrl.u32 %v208_v15, 16  ;;  %v227_v20 = vshll.u32 %v208_v15, 16  ;;  %v254_v22 = vpack.c.b16 %v250_v16, %v250_v16  ;;  %v251_v31 = vunpack.c.l.b16 %v635_v24  ;;  %v645_v12 = vld [vmem:[%s759_s17 + $0x20] sm:$0x3]  ;;  %v648_v24 = vld [vmem:[%s759_s17 + $0x18] sm:$0x7] }
  0x15   : > { %v211_v25 = vshrl.u32 %v206_v17, 16  ;;  %v213_v26 = vshll.u32 %v206_v17, 16  ;;  %v234_v33 = vshll.u32 %v209_v18, 16  ;;  %v220_v34 = vshll.u32 %v207_v21, 16  ;;  %v697_v17 = vld [vmem:[%s873_s1 + $0x38] sm:$0xff]  ;;  %v694_v23 = vld [vmem:[%s873_s1 + $0x20] sm:$0xff] }
  0x16   : > { %v229_v28 = vrot.slane %v227_v20, 1  ;;  %258 = vrot.lane.b32.xlu2 %v254_v22, %s721_s18  ;;  %v271_v35 = vunpack.c.l.b16 %v639_v27  ;;  %v255_v39 = vpack.c.b16 %v251_v31, %v251_v31  ;;  %v232_v40 = vshrl.u32 %v209_v18, 16  ;;  %526 = vmatpush.bf16.msra.mxu0 %v697_v17  ;;  %v696_v18 = vld [vmem:[%s873_s1 + $0x30] sm:$0xff]  ;;  %v695_v20 = vld [vmem:[%s873_s1 + $0x28] sm:$0xff]  ;;  %v693_v27 = vld [vmem:[%s873_s1 + $0x18] sm:$0xff] }
  0x17   : > { %v215_v29 = vrot.slane %v213_v26, 1  ;;  %v218_v41 = vshrl.u32 %v207_v21, 16  ;;  %v276_v42 = vpack.c.b16 %v272_v30, %v272_v30  ;;  %v270_v43 = vunpack.c.l.b16 %v638_v36 }
  0x18   : > { %v230_v32 = vor.u32 %v229_v28, %v225_v19  ;;  %v236_v44 = vrot.slane %v234_v33, 1  ;;  %v222_v45 = vrot.slane %v220_v34, 1  ;;  %v275_v46 = vpack.c.b16 %v271_v35, %v271_v35  ;;  %v647_v28 = vld [vmem:[%s759_s17 + $0x10] sm:$0x7] }
  0x19   : > { %v216_v37 = vor.u32 %v215_v29, %v211_v25  ;;  %v273_v47 = vunpack.c.l.b16 %v641_v38  ;;  %v274_v48 = vpack.c.b16 %v270_v43, %v270_v43  ;;  %v295_v54 = vshll.u32 %v276_v42, 16  ;;  %v646_v29 = vld [vmem:[%s759_s17 + $0x8] sm:$0x7]  ;;  %v692_v33 = vld [vmem:[%s873_s1 + $0x10] sm:$0xff]  ;;  %v698_v38 = vld [vmem:[%s873_s1 + $0x40] sm:$0xff] }
  0x1a   : > { %v237_v52 = vor.u32 %v236_v44, %v232_v40  ;;  %v223_v53 = vor.u32 %v222_v45, %v218_v41  ;;  %v288_v55 = vshll.u32 %v275_v46, 16  ;;  %v293_v59 = vshrl.u32 %v276_v42, 16  ;;  %527 = vmatpush.bf16.msra.mxu0 %v696_v18  ;;  %v690_v42 = vld [vmem:[%s873_s1] sm:$0xff]  ;;  %547 = vmatpush.bf16.msra.mxu1 %v698_v38  ;;  %v174_v43 = vld [vmem:[%s759_s17 + $0x10] sm:$0x3] }
  0x1b   : > { %v277_v49 = vpack.c.b16 %v273_v47, %v273_v47  ;;  %v279_v50 = vshrl.u32 %v274_v48, 16  ;;  %v281_v51 = vshll.u32 %v274_v48, 16  ;;  %v297_v60 = vrot.slane %v295_v54, 1  ;;  %v649_v48 = vld [vmem:[%s759_s17 + $0x20] sm:$0x7] }
  0x1c   : > { %242 = vrot.lane.b32.xlu1 %v230_v32, %s722_s19  ;;  %238 = vrot.lane.b32.xlu0 %v216_v37, %s722_s19  ;;  %v286_v61 = vshrl.u32 %v275_v46, 16  ;;  %v290_v62 = vrot.slane %v288_v55, 1  ;;  %v319_v7 = vunpack.c.l.b16 %v643_v3  ;;  %v318_v8 = vunpack.c.l.b16 %v642_v4  ;;  %v691_v37 = vld [vmem:[%s873_s1 + $0x8] sm:$0xff] }
  0x1d   : > { %v283_v56 = vrot.slane %v281_v51, 1  ;;  %v302_v57 = vshll.u32 %v277_v49, 16  ;;  %v300_v63 = vshrl.u32 %v277_v49, 16  ;;  %v298_v1 = vor.u32 %v297_v60, %v293_v59 }
  0x1e   : > { %260 = vrot.lane.b32.xlu2 %v255_v39, %s721_s18  ;;  %v291_v2 = vor.u32 %v290_v62, %v286_v61  ;;  %v320_v9 = vunpack.c.l.b16 %v644_v6  ;;  %v323_v10 = vpack.c.b16 %v319_v7, %v319_v7  ;;  %v322_v11 = vpack.c.b16 %v318_v8, %v318_v8  ;;  %528 = vmatpush.bf16.msra.mxu0 %v695_v20 }
  0x1f   : > { %v284_v58 = vor.u32 %v283_v56, %v279_v50  ;;  %v304_v0 = vrot.slane %v302_v57, 1  ;;  %v321_v14 = vunpack.c.l.b16 %v645_v12  ;;  %v340_v26 = vunpack.c.l.b16 %v648_v24  ;;  %v173_v56 = vld [vmem:[%s759_s17 + $0x8] sm:$0x3]  ;;  %v175_v12 = vld [vmem:[%s759_s17 + $0x18] sm:$0x3] }
  0x20   : > { %v324_v13 = vpack.c.b16 %v320_v9, %v320_v9  ;;  %v339_v34 = vunpack.c.l.b16 %v647_v28  ;;  %v338_v35 = vunpack.c.l.b16 %v646_v29 }
  0x21   : > { %v305_v5 = vor.u32 %v304_v0, %v300_v63  ;;  %v325_v15 = vpack.c.b16 %v321_v14, %v321_v14  ;;  %v344_v32 = vpack.c.b16 %v340_v26, %v340_v26 }
  0x22   : > { %529 = vmatpush.bf16.msra.mxu0 %v694_v23  ;;  %v343_v40 = vpack.c.b16 %v339_v34, %v339_v34  ;;  %v342_v41 = vpack.c.b16 %v338_v35, %v338_v35 }
  0x23   : > { %v363_v36 = vshll.u32 %v344_v32, 16  ;;  %v361_v46 = vshrl.u32 %v344_v32, 16 }
  0x24   : > { %244 = vrot.lane.b32.xlu1 %v237_v52, %s722_s19  ;;  %240 = vrot.lane.b32.xlu0 %v223_v53, %s722_s19  ;;  %v356_v50 = vshll.u32 %v343_v40, 16  ;;  %v349_v51 = vshll.u32 %v342_v41, 16  ;;  %v341_v52 = vunpack.c.l.b16 %v649_v48  ;;  %v172_v53 = vld [vmem:[%s759_s17] sm:$0x3]  ;;  %v354_v57 = vshrl.u32 %v343_v40, 16  ;;  %s689_s17 = sshll.u32 %s877_s13, 3 }
  0x25   : > { %v365_v47 = vrot.slane %v363_v36, 1  ;;  %v347_v59 = vshrl.u32 %v342_v41, 16 }
  0x26   : > { %306 = vrot.lane.b32.xlu2 %v284_v58, %s723_s20  ;;  %530 = vmatpush.bf16.msra.mxu0 %v693_v27  ;;  %v358_v58 = vrot.slane %v356_v50, 1  ;;  %v351_v60 = vrot.slane %v349_v51, 1  ;;  %v345_v63 = vpack.c.b16 %v341_v52, %v341_v52 }
  0x27   : > { %v366_v54 = vor.u32 %v365_v47, %v361_v46 }
  0x28   : > { %v359_v8 = vor.u32 %v358_v58, %v354_v57  ;;  %v352_v9 = vor.u32 %v351_v60, %v347_v59  ;;  %v368_v23 = vshrl.u32 %v345_v63, 16 }
  0x29   : > { %v427_v3 = vrot.slane %v366_v54, 6 }
  0x2a   : > { %531 = vmatpush.bf16.msra.mxu0 %v692_v33  ;;  %v426_v17 = vrot.slane %v359_v8, 6  ;;  %v425_v18 = vrot.slane %v352_v9, 6 }
  0x2c   : > { %310 = vrot.lane.b32.xlu1 %v298_v1, %s723_s20  ;;  %308 = vrot.lane.b32.xlu0 %v291_v2, %s723_s20 }
  0x2e   : > { %312 = vrot.lane.b32.xlu2 %v305_v5, %s723_s20  ;;  %532 = vmatpush.bf16.msra.mxu0 %v691_v37  ;;  %s170_s20 = scalar_lea.vmem %s875_s3, %s689_s17 }
  0x32   : > { %533 = vmatpush.bf16.msra.mxu0 %v690_v42 }
  0x34   : > { %328 = vrot.lane.b32.xlu1 %v323_v10, %s724_s21  ;;  %326 = vrot.lane.b32.xlu0 %v322_v11, %s724_s21  ;;  %v370_v11 = vshll.u32 %v345_v63, 16 }
  0x36   : > { %330 = vrot.lane.b32.xlu2 %v324_v13, %s724_s21  ;;  %v372_v24 = vrot.slane %v370_v11, 1 }
  0x3c   : > { %332 = vrot.lane.b32.xlu0 %v325_v15, %s724_s21 }
  0x70   : > { %v781_v16 = vpop.permute.xlu2 %258 }
  0x78   : > { %v789_v19 = vpop.permute.xlu2 %260 }
  0x80   : > { %v800_v25 = vpop.permute.xlu2 %306 }
  0x86   : > { %v794_v21 = vpop.permute.xlu1 %264  ;;  %v263_v22 = vpop.permute.xlu0 %262 }
  0x88   : > { %v816_v39 = vpop.permute.xlu2 %312 }
  0x8e   : > { %v243_v30 = vpop.permute.xlu1 %242  ;;  %v239_v31 = vpop.permute.xlu0 %238 }
  0x8f   : > { %v385_v49 = vsel %vm379_vm0, %v174_v43, %v243_v30  ;;  %v381_v61 = vsel %vm379_vm0, %v172_v53, %v239_v31 }
  0x90   : > { %v394_v55 = vsel %vm388_vm1, %v385_v49, %v263_v22  ;;  %v331_v62 = vpop.permute.xlu2 %330  ;;  %v390_v6 = vsel %vm388_vm1, %v381_v61, %v781_v16 }
  0x91   : > { %v400_v1 = vsel %vm397_vm2, %v394_v55, %v263_v22  ;;  %v398_v15 = vsel %vm397_vm2, %v390_v6, %v781_v16 }
  0x92   : > { %v404_v26 = vsel %vm402_vm4, %v398_v15, %v800_v25  ;;  %v373_v25 = vor.u32 %v372_v24, %v368_v23 }
  0x94   : > { %v428_v36 = vrot.slane %v373_v25, 6 }
  0x96   : > { %v245_v44 = vpop.permute.xlu1 %244  ;;  %v241_v45 = vpop.permute.xlu0 %240 }
  0x97   : > { %v383_v4 = vsel %vm379_vm0, %v173_v56, %v241_v45  ;;  %v387_v20 = vsel %vm379_vm0, %v175_v12, %v245_v44 }
  0x98   : > { %v392_v13 = vsel %vm388_vm1, %v383_v4, %v789_v19  ;;  %v396_v31 = vsel %vm388_vm1, %v387_v20, %v794_v21 }
  0x99   : > { %v399_v22 = vsel %vm397_vm2, %v392_v13, %v789_v19  ;;  %v401_v35 = vsel %vm397_vm2, %v396_v31, %v794_v21  ;;  %v712_v21 = vld [vmem:[%s874_s2] ss:$0 sm:$0xff] }
  0x9a   : > { %v410_v37 = vsel %vm402_vm4, %v401_v35, %v816_v39 }
  0x9e   : > { %v311_v0 = vpop.permute.xlu1 %310  ;;  %v309_v2 = vpop.permute.xlu0 %308 }
  0x9f   : > { %v408_v5 = vsel %vm402_vm4, %v400_v1, %v311_v0  ;;  %v406_v27 = vsel %vm402_vm4, %v399_v22, %v309_v2 }
  0xa0   : > { %v417_v7 = vsel %vm411_vm3, %v408_v5, %v331_v62 }
  0xa1   : > { %v423_v10 = vsel %vm420_vm5, %v417_v7, %v331_v62 }
  0xa2   : > { %v435_v14 = vsel %vm429_vm6, %v423_v10, %v427_v3 }
  0xa3   : > { %464 = vst [vmem:[#allocation1 + $0x2] ss:$4 sm:$0xff] %v435_v14 }
  0xa6   : > { %v329_v28 = vpop.permute.xlu1 %328  ;;  %v327_v29 = vpop.permute.xlu0 %326 }
  0xa7   : > { %v415_v30 = vsel %vm411_vm3, %v406_v27, %v329_v28  ;;  %v413_v16 = vsel %vm411_vm3, %v404_v26, %v327_v29 }
  0xa8   : > { %v422_v32 = vsel %vm420_vm5, %v415_v30, %v329_v28  ;;  %v421_v19 = vsel %vm420_vm5, %v413_v16, %v327_v29 }
  0xa9   : > { %v433_v33 = vsel %vm429_vm6, %v422_v32, %v426_v17  ;;  %v431_v34 = vsel %vm429_vm6, %v421_v19, %v425_v18 }
  0xaa   : > { %462 = vst [vmem:[#allocation1 + $0x1] ss:$4 sm:$0xff] %v433_v33 }
  0xab   : > { %460 = vst [vmem:[#allocation1] ss:$4 sm:$0xff] %v431_v34 }
  0xae   : > { %v333_v38 = vpop.permute.xlu0 %332 }
  0xaf   : > { %v419_v40 = vsel %vm411_vm3, %v410_v37, %v333_v38 }
  0xb0   : > { %v424_v41 = vsel %vm420_vm5, %v419_v40, %v333_v38 }
  0xb1   : > { %v437_v42 = vsel %vm429_vm6, %v424_v41, %v428_v36 }
  0xb2   : > { %466 = vst [vmem:[#allocation1 + $0x3] ss:$4 sm:$0xff] %v437_v42 }
  0xb9   : > { %v467_v43 = vld.sshfl [vmem:[#allocation1] sm:$0xff pattern:$0x73625140]  ;;  %v468_v44 = vld.sshfl [vmem:[#allocation1 + $0x8] sm:$0xff pattern:$0x73625140] }
  0xba   : > { %534 = vmatmul.bf16.vlgmr.msra.gmra.mxu0 %v467_v43  ;;  %686 = vmatmul.msk.bf16.vlgmr.msra.gmra.mxu1 %vm374_vm7, %v468_v44 }
 0x137   : > { %v535_v45 = vpop.f32.mrf.mxu0  ;;  %v549_v46 = vpop.f32.mrf.mxu1 }
 0x138   : > { %v536_v39 = vadd.f32 %v712_v21, %v535_v45 }
 0x13a   : > { %v550_v47 = vadd.f32 %v549_v46, %v536_v39 }
 0x13c   : > { %v554_v48 = vmax.f32 %v550_v47, 0.0 }
 0x13e   : > { %v558_v49 = vrot.slane %v554_v48, 4  ;;  %v562_v50 = vpack.c.bf16 %v554_v48, %v554_v48 }
 0x13f   : > { %v537_v51 = vpop.f32.mrf.mxu0  ;;  %v551_v54 = vpop.f32.mrf.mxu1 }
 0x140   : > { %v563_v52 = vpack.c.bf16 %v558_v49, %v558_v49  ;;  %567 = vst.msk [vmem:[%s170_s20] sm:$0x3] %vm566_vm8, %v562_v50  ;;  %v538_v53 = vadd.f32 %v712_v21, %v537_v51 }
 0x142   : > { %568 = vst.msk [vmem:[%s170_s20 + $0x2] sm:$0x3] %vm566_vm8, %v563_v52  ;;  %v552_v55 = vadd.f32 %v551_v54, %v538_v53 }
 0x144   : > { %v555_v56 = vmax.f32 %v552_v55, 0.0 }
 0x146   : > { %v559_v57 = vrot.slane %v555_v56, 4  ;;  %v564_v58 = vpack.c.bf16 %v555_v56, %v555_v56 }
 0x148   : > { %v565_v59 = vpack.c.bf16 %v559_v57, %v559_v57  ;;  %569 = vst.msk [vmem:[%s170_s20 + $0x4] sm:$0x3] %vm566_vm8, %v564_v58 }
 0x14a   : > { %570 = vst.msk [vmem:[%s170_s20 + $0x6] sm:$0x3] %vm566_vm8, %v565_v59 }
 0x14b PF: > { %s13_s12 = sadd.s32 1, %s719_s12  }
 0x14c   : > { %p10_p4 = scmp.ge.s32.totalorder %s13_s12, 4  }
 0x14e   :  { %12 = sbr.rel (!%p10_p4) target bundleno = 1 (0x1), region = 67 }

// kernel: mtsl_forward.6
= control target key start
LH: loop header
LB: loop body
LE: loop exit
PB: predicated region body
PF: predicated region fallthrough
CT: control target
= control target key end

     0   :  { %s1073_s12 = smov 0   ;;  %s1306_s0 = inlined_call_operand.vmem [shape: bf16[2,9,2,9,16], index: 0, kind: input, shape index: {}]   ;;  %s1307_s1 = inlined_call_operand.vmem [shape: bf16[72,16], index: 1, kind: input, shape index: {}]   ;;  %s1308_s2 = inlined_call_operand.vmem [shape: f32[1,16], index: 2, kind: input, shape index: {}]   ;;  %s1309_s3 = inlined_call_operand.vmem [shape: bf16[2,8,8,16], index: 3, kind: output, shape index: {}]  }
   0x1 LB: > { %s903_s13 = sadd.s32 4294967295, %s1046_s12   ;;  %p907_p0 = scmp.ge.s32.totalorder %s1046_s12, 1  ;;  %s1046_s12 = sphi %s1073_s12, %s13_s12  }
   0x2   : > { %p137_p1 = scmp.lt.s32.totalorder %s1046_s12, 3 }
   0x4   : > { %p138_p2 = pnand %p907_p0, %p137_p1 }
   0x5   : > { %p161_p3 = scmp.lt.s32.totalorder (!%p138_p2), %s903_s13, 1  ;;  %s1048_s18 = smov (!%p138_p2), 24  }
   0x6   : > { %141 = sbr.rel (%p138_p2) target bundleno = 385 (0x181), region = 32  ;;  %s1049_s19 = smov (!%p138_p2), 16  }
   0x7   : > { %s1050_s20 = smov (!%p138_p2), 40   ;;  %s1051_s21 = smov (!%p138_p2), 48  }
   0x8   : > { %s1052_s22 = smov (!%p138_p2), 64  }
   0xb   : > { %s1311_s13 = smov (!%p161_p3, %s903_s13), 1  ;;  %vm790_vm0 = vcmask 1043456   ;;  %vm614_vm1 = vcmask 130048   ;;  %vm631_vm2 = vcmask 195584   ;;  %vm648_vm3 = vcmask 261120  }
   0xc   : > { %s1025_s14 = smul.u32 144, %s1311_s13  ;;  %vm657_vm4 = vcmask 326656   ;;  %vm674_vm5 = vcmask 392192   ;;  %vm691_vm6 = vcmask 457728   ;;  %vm700_vm7 = vcmask 523264   ;;  %s997_s8 = sshll.u32 %s1311_s13, 5 }
   0xd   : > { %vm777_vm8 = vcmask 588800   ;;  %s1285_s11 = scalar_lea.vmem %s1309_s3, %s997_s8  ;;  %vm839_vm9 = vcmask 125952  }
   0xe   : > { %s1087_s17 = scalar_lea.vmem %s1306_s0, %s1025_s14 }
   0xf   : > { %v918_v0 = vld [vmem:[%s1087_s17 + $0x78] sm:$0xf]  ;;  %v917_v1 = vld [vmem:[%s1087_s17 + $0x68] sm:$0xf]  ;;  %v969_v4 = vld [vmem:[%s1087_s17 + $0x60] sm:$0xf] }
  0x10   : > { %v349_v2 = vunpack.c.l.b16 %v918_v0  ;;  %v348_v3 = vunpack.c.l.b16 %v917_v1  ;;  %v1004_v5 = vld [vmem:[%s1087_s17 + $0x60] sm:$0x10]  ;;  %v961_v7 = vld [vmem:[%s1087_s17 + $0x40] sm:$0xf]  ;;  %v915_v9 = vld [vmem:[%s1087_s17 + $0x48] sm:$0xf] }
  0x11   : > { %v970_v6 = vor.u32 %v1004_v5, %v969_v4  ;;  %v1002_v8 = vld [vmem:[%s1087_s17 + $0x40] sm:$0x10]  ;;  %v923_v13 = vld [vmem:[%s1087_s17 + $0x4c] sm:$0x1]  ;;  %v973_v14 = vld [vmem:[%s1087_s17 + $0x70] sm:$0xf]  ;;  %v346_v18 = vunpack.c.l.b16 %v915_v9 }
  0x12   : > { %v357_v10 = vpack.c.b16 %v349_v2, %v349_v2  ;;  %v356_v11 = vpack.c.b16 %v348_v3, %v348_v3  ;;  %v962_v12 = vor.u32 %v1002_v8, %v961_v7  ;;  %v1005_v15 = vld [vmem:[%s1087_s17 + $0x70] sm:$0x10]  ;;  %v965_v19 = vld [vmem:[%s1087_s17 + $0x50] sm:$0xf]  ;;  %v925_v21 = vld [vmem:[%s1087_s17 + $0x6c] sm:$0x1]  ;;  %v386_v24 = vunpack.c.l.b16 %v923_v13 }
  0x13   : > { %v305_v16 = vshrl.u32 %v970_v6, 16  ;;  %v307_v17 = vshll.u32 %v970_v6, 16  ;;  %v1003_v20 = vld [vmem:[%s1087_s17 + $0x50] sm:$0x10]  ;;  %v974_v25 = vor.u32 %v1005_v15, %v973_v14  ;;  %v916_v26 = vld [vmem:[%s1087_s17 + $0x58] sm:$0xf]  ;;  %v354_v28 = vpack.c.b16 %v346_v18, %v346_v18 }
  0x14   : > { %372 = vrot.lane.b32.xlu1 %v357_v10, %s1048_s18  ;;  %370 = vrot.lane.b32.xlu0 %v356_v11, %s1048_s18  ;;  %v291_v22 = vshrl.u32 %v962_v12, 16  ;;  %v293_v23 = vshll.u32 %v962_v12, 16  ;;  %v966_v29 = vor.u32 %v1003_v20, %v965_v19  ;;  %v924_v31 = vld [vmem:[%s1087_s17 + $0x5c] sm:$0x1]  ;;  %v388_v33 = vunpack.c.l.b16 %v925_v21  ;;  %v931_v4 = vld [vmem:[%s1087_s17 + $0x50] sm:$0xf] }
  0x15   : > { %v309_v27 = vrot.slane %v307_v17, 1  ;;  %v926_v32 = vld [vmem:[%s1087_s17 + $0x7c] sm:$0x1]  ;;  %v394_v34 = vpack.c.b16 %v386_v24, %v346_v18  ;;  %366 = vrot.lane.b32.xlu2 %v354_v28, %s1048_s18  ;;  %v347_v35 = vunpack.c.l.b16 %v916_v26  ;;  %v314_v38 = vshll.u32 %v974_v25, 16  ;;  %v945_v5 = vld [vmem:[%s1087_s17] sm:$0xf] }
  0x16   : > { %v295_v30 = vrot.slane %v293_v23, 1  ;;  %v300_v39 = vshll.u32 %v966_v29, 16  ;;  %v387_v40 = vunpack.c.l.b16 %v924_v31  ;;  %v389_v41 = vunpack.c.l.b16 %v926_v32  ;;  %v998_v6 = vld [vmem:[%s1087_s17] sm:$0x10]  ;;  %v933_v8 = vld [vmem:[%s1087_s17 + $0x70] sm:$0xf] }
  0x17   : > { %v310_v36 = vor.u32 %v309_v27, %v305_v16  ;;  %v396_v42 = vpack.c.b16 %v388_v33, %v348_v3  ;;  %v312_v43 = vshrl.u32 %v974_v25, 16  ;;  %v355_v44 = vpack.c.b16 %v347_v35, %v347_v35  ;;  %v932_v3 = vld [vmem:[%s1087_s17 + $0x60] sm:$0xf]  ;;  %v949_v12 = vld [vmem:[%s1087_s17 + $0x10] sm:$0xf] }
  0x18   : > { %v296_v37 = vor.u32 %v295_v30, %v291_v22  ;;  %v429_v45 = vshll.u32 %v394_v34, 16  ;;  %v316_v46 = vrot.slane %v314_v38, 1  ;;  %v298_v47 = vshrl.u32 %v966_v29, 16  ;;  %v999_v13 = vld [vmem:[%s1087_s17 + $0x10] sm:$0x10] }
  0x19   : > { %v302_v48 = vrot.slane %v300_v39, 1  ;;  %v395_v49 = vpack.c.b16 %v387_v40, %v347_v35  ;;  %v397_v50 = vpack.c.b16 %v389_v41, %v349_v2  ;;  %v427_v51 = vshrl.u32 %v394_v34, 16  ;;  %v934_v14 = vld [vmem:[%s1087_s17 + $0x80] sm:$0xf]  ;;  %v1000_v21 = vld [vmem:[%s1087_s17 + $0x20] sm:$0x10] }
  0x1a   : > { %v431_v52 = vrot.slane %v429_v45, 1  ;;  %v317_v53 = vor.u32 %v316_v46, %v312_v43  ;;  %v443_v55 = vshll.u32 %v396_v42, 16  ;;  %v441_v59 = vshrl.u32 %v396_v42, 16  ;;  %v953_v16 = vld [vmem:[%s1087_s17 + $0x20] sm:$0xf] }
  0x1b   : > { %v303_v54 = vor.u32 %v302_v48, %v298_v47  ;;  %v436_v56 = vshll.u32 %v395_v49, 16  ;;  %v450_v58 = vshll.u32 %v397_v50, 16  ;;  %v434_v61 = vshrl.u32 %v395_v49, 16  ;;  %v939_v22 = vld [vmem:[%s1087_s17 + $0x54] sm:$0x1] }
  0x1c   : > { %330 = vrot.lane.b32.xlu1 %v310_v36, %s1049_s19  ;;  %326 = vrot.lane.b32.xlu0 %v296_v37, %s1049_s19  ;;  %v432_v57 = vor.u32 %v431_v52, %v427_v51  ;;  %v445_v60 = vrot.slane %v443_v55, 1  ;;  %v448_v63 = vshrl.u32 %v397_v50, 16  ;;  %v483_v9 = vunpack.c.l.b16 %v932_v3  ;;  %v957_v23 = vld [vmem:[%s1087_s17 + $0x30] sm:$0xf]  ;;  %v1001_v24 = vld [vmem:[%s1087_s17 + $0x30] sm:$0x10] }
  0x1d   : > { %368 = vrot.lane.b32.xlu2 %v355_v44, %s1048_s18  ;;  %v438_v62 = vrot.slane %v436_v56, 1  ;;  %v452_v0 = vrot.slane %v450_v58, 1  ;;  %v482_v10 = vunpack.c.l.b16 %v931_v4  ;;  %v946_v11 = vor.u32 %v998_v6, %v945_v5  ;;  %v940_v33 = vld [vmem:[%s1087_s17 + $0x64] sm:$0x1]  ;;  %v941_v34 = vld [vmem:[%s1087_s17 + $0x74] sm:$0x1] }
  0x1e   : > { %v446_v1 = vor.u32 %v445_v60, %v441_v59  ;;  %v484_v15 = vunpack.c.l.b16 %v933_v8  ;;  %v950_v17 = vor.u32 %v999_v13, %v949_v12  ;;  %v491_v18 = vpack.c.b16 %v483_v9, %v483_v9  ;;  %v942_v44 = vld [vmem:[%s1087_s17 + $0x84] sm:$0x1]  ;;  %v919_v3 = vld [vmem:[%s1087_s17 + $0xc] sm:$0x1]  ;;  %v911_v4 = vld [vmem:[%s1087_s17 + $0x8] sm:$0xf] }
  0x1f   : > { %v439_v2 = vor.u32 %v438_v62, %v434_v61  ;;  %v453_v7 = vor.u32 %v452_v0, %v448_v63  ;;  %v490_v19 = vpack.c.b16 %v482_v10, %v482_v10  ;;  %v265_v20 = vshll.u32 %v946_v11, 16 }
  0x20   : > { %v485_v25 = vunpack.c.l.b16 %v934_v14  ;;  %v492_v26 = vpack.c.b16 %v484_v15, %v484_v15  ;;  %v954_v27 = vor.u32 %v1000_v21, %v953_v16  ;;  %v272_v28 = vshll.u32 %v950_v17, 16 }
  0x21   : > { %v522_v29 = vunpack.c.l.b16 %v939_v22  ;;  %v263_v30 = vshrl.u32 %v946_v11, 16  ;;  %v267_v31 = vrot.slane %v265_v20, 1  ;;  %v958_v32 = vor.u32 %v1001_v24, %v957_v23  ;;  %v912_v11 = vld [vmem:[%s1087_s17 + $0x18] sm:$0xf] }
  0x22   : > { %v493_v35 = vpack.c.b16 %v485_v25, %v485_v25  ;;  %v279_v36 = vshll.u32 %v954_v27, 16  ;;  %v270_v37 = vshrl.u32 %v950_v17, 16  ;;  %v274_v38 = vrot.slane %v272_v28, 1  ;;  %v913_v17 = vld [vmem:[%s1087_s17 + $0x28] sm:$0xf] }
  0x23   : > { %v530_v39 = vpack.c.b16 %v522_v29, %v482_v10  ;;  %v268_v40 = vor.u32 %v267_v31, %v263_v30  ;;  %v286_v41 = vshll.u32 %v958_v32, 16  ;;  %v523_v42 = vunpack.c.l.b16 %v940_v33  ;;  %v920_v10 = vld [vmem:[%s1087_s17 + $0x1c] sm:$0x1]  ;;  %v914_v20 = vld [vmem:[%s1087_s17 + $0x38] sm:$0xf] }
  0x24   : > { %332 = vrot.lane.b32.xlu1 %v317_v53, %s1049_s19  ;;  %328 = vrot.lane.b32.xlu0 %v303_v54, %s1049_s19  ;;  %v524_v43 = vunpack.c.l.b16 %v941_v34  ;;  %v277_v45 = vshrl.u32 %v954_v27, 16  ;;  %v284_v46 = vshrl.u32 %v958_v32, 16  ;;  %v275_v47 = vor.u32 %v274_v38, %v270_v37 }
  0x25   : > { %462 = vrot.lane.b32.xlu2 %v432_v57, %s1050_s20  ;;  %v565_v48 = vshll.u32 %v530_v39, 16  ;;  %v525_v49 = vunpack.c.l.b16 %v942_v44  ;;  %v281_v50 = vrot.slane %v279_v36, 1  ;;  %v288_v51 = vrot.slane %v286_v41, 1 }
  0x26   : > { %v531_v52 = vpack.c.b16 %v523_v42, %v483_v9  ;;  %v532_v53 = vpack.c.b16 %v524_v43, %v484_v15  ;;  %v563_v54 = vshrl.u32 %v530_v39, 16  ;;  %v382_v9 = vunpack.c.l.b16 %v919_v3 }
  0x27   : > { %v567_v55 = vrot.slane %v565_v48, 1  ;;  %v533_v56 = vpack.c.b16 %v525_v49, %v485_v25  ;;  %v282_v57 = vor.u32 %v281_v50, %v277_v45  ;;  %v289_v58 = vor.u32 %v288_v51, %v284_v46  ;;  %v927_v46 = vld [vmem:[%s1087_s17 + $0x10] sm:$0xf]  ;;  %v936_v48 = vld [vmem:[%s1087_s17 + $0x24] sm:$0x1] }
  0x28   : > { %v572_v59 = vshll.u32 %v531_v52, 16  ;;  %v579_v60 = vshll.u32 %v532_v53, 16  ;;  %v570_v63 = vshrl.u32 %v531_v52, 16  ;;  %v342_v12 = vunpack.c.l.b16 %v911_v4  ;;  %v928_v50 = vld [vmem:[%s1087_s17 + $0x20] sm:$0xf] }
  0x29   : > { %v568_v61 = vor.u32 %v567_v55, %v563_v54  ;;  %v586_v62 = vshll.u32 %v533_v56, 16  ;;  %v584_v5 = vshrl.u32 %v533_v56, 16  ;;  %v383_v14 = vunpack.c.l.b16 %v920_v10  ;;  %v929_v52 = vld [vmem:[%s1087_s17 + $0x30] sm:$0xf]  ;;  %v937_v56 = vld [vmem:[%s1087_s17 + $0x34] sm:$0x1] }
  0x2a   : > { %v574_v0 = vrot.slane %v572_v59, 1  ;;  %v343_v15 = vunpack.c.l.b16 %v912_v11  ;;  %v390_v16 = vpack.c.b16 %v382_v9, %v342_v12  ;;  %v344_v21 = vunpack.c.l.b16 %v913_v17 }
  0x2b   : > { %v588_v6 = vrot.slane %v586_v62, 1  ;;  %v350_v24 = vpack.c.b16 %v342_v12, %v342_v12  ;;  %v345_v28 = vunpack.c.l.b16 %v914_v20  ;;  %v519_v55 = vunpack.c.l.b16 %v936_v48  ;;  %v176_v48 = vld [vmem:[%s1087_s17 + $0x40] sm:$0xf] }
  0x2c   : > { %466 = vrot.lane.b32.xlu1 %v446_v1, %s1050_s20  ;;  %464 = vrot.lane.b32.xlu0 %v439_v2, %s1050_s20  ;;  %v577_v1 = vshrl.u32 %v532_v53, 16  ;;  %v581_v2 = vrot.slane %v579_v60, 1  ;;  %v391_v23 = vpack.c.b16 %v383_v14, %v343_v15  ;;  %v351_v25 = vpack.c.b16 %v343_v15, %v343_v15 }
  0x2d   : > { %468 = vrot.lane.b32.xlu2 %v453_v7, %s1050_s20  ;;  %v575_v7 = vor.u32 %v574_v0, %v570_v63  ;;  %v589_v13 = vor.u32 %v588_v6, %v584_v5  ;;  %v352_v29 = vpack.c.b16 %v344_v21, %v344_v21  ;;  %v399_v32 = vshrl.u32 %v390_v16, 16  ;;  %v930_v63 = vld [vmem:[%s1087_s17 + $0x40] sm:$0xf]  ;;  %v938_v0 = vld [vmem:[%s1087_s17 + $0x44] sm:$0x1] }
  0x2e   : > { %v582_v8 = vor.u32 %v581_v2, %v577_v1  ;;  %v408_v31 = vshll.u32 %v391_v23, 16  ;;  %v406_v36 = vshrl.u32 %v391_v23, 16  ;;  %v353_v38 = vpack.c.b16 %v345_v28, %v345_v28 }
  0x2f   : > { %v478_v53 = vunpack.c.l.b16 %v927_v46  ;;  %v520_v60 = vunpack.c.l.b16 %v937_v56  ;;  %v481_v6 = vunpack.c.l.b16 %v930_v63 }
  0x30   : > { %v410_v37 = vrot.slane %v408_v31, 1 }
  0x31   : > { %v486_v59 = vpack.c.b16 %v478_v53, %v478_v53  ;;  %v489_v9 = vpack.c.b16 %v481_v6, %v481_v6 }
  0x32   : > { %v411_v43 = vor.u32 %v410_v37, %v406_v36  ;;  %v1009_v36 = vld [vmem:[%s1307_s1 + $0x18] sm:$0xff] }
  0x34   : > { %504 = vrot.lane.b32.xlu1 %v491_v18, %s1051_s21  ;;  %502 = vrot.lane.b32.xlu0 %v490_v19, %s1051_s21  ;;  %v921_v18 = vld [vmem:[%s1087_s17 + $0x2c] sm:$0x1]  ;;  %v922_v19 = vld [vmem:[%s1087_s17 + $0x3c] sm:$0x1] }
  0x35   : > { %506 = vrot.lane.b32.xlu2 %v492_v26, %s1051_s21  ;;  %v384_v22 = vunpack.c.l.b16 %v921_v18  ;;  %v401_v26 = vshll.u32 %v390_v16, 16  ;;  %v385_v27 = vunpack.c.l.b16 %v922_v19 }
  0x37   : > { %v392_v30 = vpack.c.b16 %v384_v22, %v344_v21  ;;  %v403_v33 = vrot.slane %v401_v26, 1  ;;  %v393_v34 = vpack.c.b16 %v385_v27, %v345_v28 }
  0x39   : > { %v404_v39 = vor.u32 %v403_v33, %v399_v32  ;;  %v413_v41 = vshrl.u32 %v392_v30, 16  ;;  %v420_v44 = vshrl.u32 %v393_v34, 16 }
  0x3c   : > { %508 = vrot.lane.b32.xlu0 %v493_v35, %s1051_s21  ;;  %318 = vrot.lane.b32.xlu1 %v268_v40, %s1049_s19  ;;  %v415_v35 = vshll.u32 %v392_v30, 16  ;;  %v422_v40 = vshll.u32 %v393_v34, 16 }
  0x3d   : > { %320 = vrot.lane.b32.xlu2 %v275_v47, %s1049_s19  ;;  %v935_v47 = vld [vmem:[%s1087_s17 + $0x14] sm:$0x1] }
  0x3e   : > { %v417_v42 = vrot.slane %v415_v35, 1  ;;  %v424_v45 = vrot.slane %v422_v40, 1  ;;  %v518_v54 = vunpack.c.l.b16 %v935_v47  ;;  %v1007_v40 = vld [vmem:[%s1307_s1 + $0x8] sm:$0xff] }
  0x40   : > { %v418_v49 = vor.u32 %v417_v42, %v413_v41  ;;  %v425_v51 = vor.u32 %v424_v45, %v420_v44  ;;  %v1006_v44 = vld [vmem:[%s1307_s1] sm:$0xff] }
  0x44   : > { %322 = vrot.lane.b32.xlu0 %v282_v57, %s1049_s19  ;;  %324 = vrot.lane.b32.xlu1 %v289_v58, %s1049_s19  ;;  %v479_v57 = vunpack.c.l.b16 %v928_v50  ;;  %v480_v58 = vunpack.c.l.b16 %v929_v52  ;;  %v178_v52 = vld [vmem:[%s1087_s17 + $0x60] sm:$0xf] }
  0x45   : > { %598 = vrot.lane.b32.xlu2 %v568_v61, %s1052_s22  ;;  %v526_v61 = vpack.c.b16 %v518_v54, %v478_v53 }
  0x46   : > { %v527_v62 = vpack.c.b16 %v519_v55, %v479_v57  ;;  %v487_v1 = vpack.c.b16 %v479_v57, %v479_v57  ;;  %v488_v2 = vpack.c.b16 %v480_v58, %v480_v58  ;;  %v528_v3 = vpack.c.b16 %v520_v60, %v480_v58  ;;  %v177_v58 = vld [vmem:[%s1087_s17 + $0x50] sm:$0xf] }
  0x47   : > { %v537_v4 = vshll.u32 %v526_v61, 16 }
  0x48   : > { %v544_v5 = vshll.u32 %v527_v62, 16  ;;  %v551_v10 = vshll.u32 %v528_v3, 16  ;;  %v542_v12 = vshrl.u32 %v527_v62, 16  ;;  %v549_v15 = vshrl.u32 %v528_v3, 16 }
  0x49   : > { %v539_v11 = vrot.slane %v537_v4, 1 }
  0x4a   : > { %v553_v16 = vrot.slane %v551_v10, 1 }
  0x4c   : > { %600 = vrot.lane.b32.xlu0 %v575_v7, %s1052_s22  ;;  %602 = vrot.lane.b32.xlu1 %v582_v8, %s1052_s22  ;;  %v521_v7 = vunpack.c.l.b16 %v938_v0  ;;  %v535_v8 = vshrl.u32 %v526_v61, 16  ;;  %v554_v21 = vor.u32 %v553_v16, %v549_v15 }
  0x4d   : > { %604 = vrot.lane.b32.xlu2 %v589_v13, %s1052_s22  ;;  %v546_v13 = vrot.slane %v544_v5, 1 }
  0x4e   : > { %v529_v14 = vpack.c.b16 %v521_v7, %v481_v6  ;;  %v540_v17 = vor.u32 %v539_v11, %v535_v8 }
  0x4f   : > { %v547_v18 = vor.u32 %v546_v13, %v542_v12 }
  0x50   : > { %v558_v19 = vshll.u32 %v529_v14, 16  ;;  %v556_v22 = vshrl.u32 %v529_v14, 16 }
  0x52   : > { %v560_v23 = vrot.slane %v558_v19, 1 }
  0x54   : > { %358 = vrot.lane.b32.xlu0 %v350_v24, %s1048_s18  ;;  %360 = vrot.lane.b32.xlu1 %v351_v25, %s1048_s18  ;;  %v561_v24 = vor.u32 %v560_v23, %v556_v22 }
  0x55   : > { %362 = vrot.lane.b32.xlu2 %v352_v29, %s1048_s18  ;;  %v725_v29 = vld [vmem:[%s1307_s1 + $0x20] sm:$0xf] }
  0x56   : > { %v767_v30 = vunpack.c.l.b16 %v725_v29 }
  0x58   : > { %v772_v33 = vpack.c.b16 %v767_v30, %v767_v30 }
  0x5a   : > { %v792_v34 = vsel %vm790_vm0, %v772_v33, 0 }
  0x5b   : > { %1011 = vmatpush.bf16.msra.mxu2 %v792_v34  ;;  %1012 = vmatpush.bf16.msra.mxu3 %v792_v34 }
  0x5c   : > { %364 = vrot.lane.b32.xlu0 %v353_v38, %s1048_s18  ;;  %454 = vrot.lane.b32.xlu1 %v404_v39, %s1050_s20  ;;  %v1008_v39 = vld [vmem:[%s1307_s1 + $0x10] sm:$0xff] }
  0x5d   : > { %456 = vrot.lane.b32.xlu2 %v411_v43, %s1050_s20  ;;  %797 = vmatpush.bf16.msra.mxu0 %v792_v34 }
  0x5e   : > { %1010 = vmatpush.bf16.msra.mxu1 %v792_v34 }
  0x5f   : > { %1014 = vmatpush.bf16.msra.mxu2 %v1009_v36  ;;  %1015 = vmatpush.bf16.msra.mxu3 %v1009_v36 }
  0x61   : > { %798 = vmatpush.bf16.msra.mxu0 %v1009_v36 }
  0x62   : > { %1013 = vmatpush.bf16.msra.mxu1 %v1009_v36 }
  0x63   : > { %1017 = vmatpush.bf16.msra.mxu2 %v1008_v39  ;;  %1018 = vmatpush.bf16.msra.mxu3 %v1008_v39 }
  0x64   : > { %458 = vrot.lane.b32.xlu0 %v418_v49, %s1050_s20  ;;  %460 = vrot.lane.b32.xlu1 %v425_v51, %s1050_s20  ;;  %v179_v49 = vld [vmem:[%s1087_s17 + $0x70] sm:$0xf] }
  0x65   : > { %494 = vrot.lane.b32.xlu2 %v486_v59, %s1051_s21  ;;  %799 = vmatpush.bf16.msra.mxu0 %v1008_v39 }
  0x66   : > { %1016 = vmatpush.bf16.msra.mxu1 %v1008_v39  ;;  %v173_v39 = vld [vmem:[%s1087_s17 + $0x10] sm:$0xf] }
  0x67   : > { %1020 = vmatpush.bf16.msra.mxu2 %v1007_v40  ;;  %1021 = vmatpush.bf16.msra.mxu3 %v1007_v40 }
  0x69   : > { %800 = vmatpush.bf16.msra.mxu0 %v1007_v40 }
  0x6a   : > { %1019 = vmatpush.bf16.msra.mxu1 %v1007_v40  ;;  %v172_v40 = vld [vmem:[%s1087_s17] sm:$0xf] }
  0x6b   : > { %1023 = vmatpush.bf16.msra.mxu2 %v1006_v44  ;;  %1024 = vmatpush.bf16.msra.mxu3 %v1006_v44 }
  0x6c   : > { %496 = vrot.lane.b32.xlu0 %v487_v1, %s1051_s21  ;;  %498 = vrot.lane.b32.xlu1 %v488_v2, %s1051_s21 }
  0x6d   : > { %500 = vrot.lane.b32.xlu2 %v489_v9, %s1051_s21  ;;  %801 = vmatpush.bf16.msra.mxu0 %v1006_v44 }
  0x6e   : > { %1022 = vmatpush.bf16.msra.mxu1 %v1006_v44 }
  0x6f   : > { %v1173_v20 = vpop.permute.xlu2 %366 }
  0x74   : > { %590 = vrot.lane.b32.xlu0 %v540_v17, %s1052_s22  ;;  %592 = vrot.lane.b32.xlu1 %v547_v18, %s1052_s22 }
  0x75   : > { %594 = vrot.lane.b32.xlu2 %v554_v21, %s1052_s22 }
  0x77   : > { %v1179_v25 = vpop.permute.xlu2 %368 }
  0x7c   : > { %596 = vrot.lane.b32.xlu0 %v561_v24, %s1052_s22 }
  0x7f   : > { %v1183_v28 = vpop.permute.xlu2 %462 }
  0x86   : > { %v373_v26 = vpop.permute.xlu1 %372  ;;  %v1181_v27 = vpop.permute.xlu0 %370 }
  0x87   : > { %v469_v35 = vpop.permute.xlu2 %468 }
  0x8e   : > { %v331_v31 = vpop.permute.xlu1 %330  ;;  %v327_v32 = vpop.permute.xlu0 %326 }
  0x8f   : > { %v507_v41 = vpop.permute.xlu2 %506  ;;  %v624_v50 = vsel %vm614_vm1, %v176_v48, %v327_v32  ;;  %v628_v59 = vsel %vm614_vm1, %v178_v52, %v331_v31  ;;  %v175_v52 = vld [vmem:[%s1087_s17 + $0x30] sm:$0xf] }
  0x90   : > { %v641_v56 = vsel %vm631_vm2, %v624_v50, %v1173_v20  ;;  %v645_v63 = vsel %vm631_vm2, %v628_v59, %v1181_v27 }
  0x91   : > { %v653_v61 = vsel %vm648_vm3, %v641_v56, %v1173_v20  ;;  %v655_v5 = vsel %vm648_vm3, %v645_v63, %v1181_v27 }
  0x92   : > { %v667_v1 = vsel %vm657_vm4, %v653_v61, %v1183_v28 }
  0x96   : > { %v333_v37 = vpop.permute.xlu1 %332  ;;  %v329_v38 = vpop.permute.xlu0 %328 }
  0x97   : > { %v1200_v45 = vpop.permute.xlu2 %320  ;;  %v630_v51 = vsel %vm614_vm1, %v179_v49, %v333_v37  ;;  %v626_v60 = vsel %vm614_vm1, %v177_v58, %v329_v38 }
  0x98   : > { %v647_v57 = vsel %vm631_vm2, %v630_v51, %v373_v26  ;;  %v643_v0 = vsel %vm631_vm2, %v626_v60, %v1179_v25 }
  0x99   : > { %v656_v62 = vsel %vm648_vm3, %v647_v57, %v373_v26  ;;  %v654_v9 = vsel %vm648_vm3, %v643_v0, %v1179_v25 }
  0x9a   : > { %v673_v2 = vsel %vm657_vm4, %v656_v62, %v469_v35 }
  0x9e   : > { %v467_v42 = vpop.permute.xlu1 %466  ;;  %v465_v43 = vpop.permute.xlu0 %464 }
  0x9f   : > { %v599_v55 = vpop.permute.xlu2 %598  ;;  %v671_v8 = vsel %vm657_vm4, %v655_v5, %v467_v42  ;;  %v669_v11 = vsel %vm657_vm4, %v654_v9, %v465_v43  ;;  %v174_v43 = vld [vmem:[%s1087_s17 + $0x20] sm:$0xf] }
  0xa0   : > { %v688_v14 = vsel %vm674_vm5, %v671_v8, %v507_v41 }
  0xa1   : > { %v698_v20 = vsel %vm691_vm6, %v688_v14, %v507_v41  ;;  %v618_v41 = vsel %vm614_vm1, %v173_v39, %v1200_v45 }
  0xa6   : > { %v505_v46 = vpop.permute.xlu1 %504  ;;  %v503_v47 = vpop.permute.xlu0 %502 }
  0xa7   : > { %v684_v6 = vsel %vm674_vm5, %v667_v1, %v503_v47  ;;  %v605_v10 = vpop.permute.xlu2 %604  ;;  %v686_v15 = vsel %vm674_vm5, %v669_v11, %v505_v46 }
  0xa8   : > { %v696_v12 = vsel %vm691_vm6, %v684_v6, %v503_v47  ;;  %v697_v18 = vsel %vm691_vm6, %v686_v15, %v505_v46 }
  0xa9   : > { %v710_v16 = vsel %vm700_vm7, %v696_v12, %v599_v55 }
  0xaa   : > { %v742_v24 = vunpack.c.l.b16 %v710_v16 }
  0xae   : > { %v509_v53 = vpop.permute.xlu0 %508  ;;  %v319_v54 = vpop.permute.xlu1 %318 }
  0xaf   : > { %v690_v7 = vsel %vm674_vm5, %v673_v2, %v509_v53  ;;  %v363_v30 = vpop.permute.xlu2 %362  ;;  %v616_v42 = vsel %vm614_vm1, %v172_v40, %v319_v54 }
  0xb0   : > { %v699_v13 = vsel %vm691_vm6, %v690_v7, %v509_v53 }
  0xb1   : > { %v716_v17 = vsel %vm700_vm7, %v699_v13, %v605_v10 }
  0xb2   : > { %v745_v25 = vunpack.c.l.b16 %v716_v17 }
  0xb6   : > { %v323_v3 = vpop.permute.xlu0 %322  ;;  %v325_v4 = vpop.permute.xlu1 %324 }
  0xb7   : > { %v457_v33 = vpop.permute.xlu2 %456  ;;  %v620_v49 = vsel %vm614_vm1, %v174_v43, %v323_v3  ;;  %v622_v56 = vsel %vm614_vm1, %v175_v52, %v325_v4 }
  0xb8   : > { %v637_v45 = vsel %vm631_vm2, %v620_v49, %v363_v30 }
  0xb9   : > { %v651_v60 = vsel %vm648_vm3, %v637_v45, %v363_v30 }
  0xbe   : > { %v601_v19 = vpop.permute.xlu0 %600  ;;  %v603_v21 = vpop.permute.xlu1 %602 }
  0xbf   : > { %v712_v22 = vsel %vm700_vm7, %v697_v18, %v601_v19  ;;  %v714_v23 = vsel %vm700_vm7, %v698_v20, %v603_v21  ;;  %v495_v36 = vpop.permute.xlu2 %494  ;;  %v1039_v20 = vld [vmem:[%s1308_s2] ss:$0 sm:$0xff] }
  0xc0   : > { %v743_v26 = vunpack.c.l.b16 %v712_v22  ;;  %v744_v27 = vunpack.c.l.b16 %v714_v23 }
  0xc2   : > { %v748_v28 = vpack.c.b16 %v743_v26, %v742_v24  ;;  %v749_v29 = vpack.c.b16 %v745_v25, %v744_v27 }
  0xc4   : > { %993 = vmatmul.msk.bf16.vlgmr.msra.gmra.mxu2 %vm777_vm8, %v748_v28  ;;  %994 = vmatmul.msk.bf16.vlgmr.msra.gmra.mxu3 %vm777_vm8, %v749_v29 }
  0xc6   : > { %v359_v31 = vpop.permute.xlu0 %358  ;;  %v361_v32 = vpop.permute.xlu1 %360 }
  0xc7   : > { %v633_v44 = vsel %vm631_vm2, %v616_v42, %v359_v31  ;;  %v635_v46 = vsel %vm631_vm2, %v618_v41, %v361_v32  ;;  %v501_v55 = vpop.permute.xlu2 %500 }
  0xc8   : > { %v649_v50 = vsel %vm648_vm3, %v633_v44, %v359_v31  ;;  %v650_v51 = vsel %vm648_vm3, %v635_v46, %v361_v32 }
  0xc9   : > { %v661_v54 = vsel %vm657_vm4, %v650_v51, %v457_v33 }
  0xce   : > { %v365_v34 = vpop.permute.xlu0 %364  ;;  %v455_v35 = vpop.permute.xlu1 %454 }
  0xcf   : > { %v659_v53 = vsel %vm657_vm4, %v649_v50, %v455_v35  ;;  %v639_v59 = vsel %vm631_vm2, %v622_v56, %v365_v34  ;;  %v595_v10 = vpop.permute.xlu2 %594 }
  0xd0   : > { %v676_v57 = vsel %vm674_vm5, %v659_v53, %v495_v36  ;;  %v652_v2 = vsel %vm648_vm3, %v639_v59, %v365_v34 }
  0xd1   : > { %v692_v61 = vsel %vm691_vm6, %v676_v57, %v495_v36 }
  0xd6   : > { %v459_v37 = vpop.permute.xlu0 %458  ;;  %v461_v38 = vpop.permute.xlu1 %460 }
  0xd7   : > { %v663_v62 = vsel %vm657_vm4, %v651_v60, %v459_v37  ;;  %v665_v6 = vsel %vm657_vm4, %v652_v2, %v461_v38 }
  0xd8   : > { %v682_v12 = vsel %vm674_vm5, %v665_v6, %v501_v55 }
  0xd9   : > { %v695_v14 = vsel %vm691_vm6, %v682_v12, %v501_v55 }
  0xde   : > { %v497_v47 = vpop.permute.xlu0 %496  ;;  %v499_v48 = vpop.permute.xlu1 %498 }
  0xdf   : > { %v678_v58 = vsel %vm674_vm5, %v661_v54, %v497_v47  ;;  %v680_v3 = vsel %vm674_vm5, %v663_v62, %v499_v48 }
  0xe0   : > { %v693_v63 = vsel %vm691_vm6, %v678_v58, %v497_v47  ;;  %v694_v9 = vsel %vm691_vm6, %v680_v3, %v499_v48 }
  0xe1   : > { %v706_v13 = vsel %vm700_vm7, %v694_v9, %v595_v10 }
  0xe2   : > { %v740_v17 = vunpack.c.l.b16 %v706_v13 }
  0xe6   : > { %v591_v0 = vpop.permute.xlu0 %590  ;;  %v593_v1 = vpop.permute.xlu1 %592 }
  0xe7   : > { %v702_v4 = vsel %vm700_vm7, %v692_v61, %v591_v0  ;;  %v704_v5 = vsel %vm700_vm7, %v693_v63, %v593_v1 }
  0xe8   : > { %v738_v7 = vunpack.c.l.b16 %v702_v4  ;;  %v739_v8 = vunpack.c.l.b16 %v704_v5 }
  0xea   : > { %v746_v11 = vpack.c.b16 %v739_v8, %v738_v7 }
  0xec   : > { %991 = vmatmul.msk.bf16.vlgmr.msra.gmra.mxu0 %vm777_vm8, %v746_v11 }
  0xee   : > { %v597_v15 = vpop.permute.xlu0 %596 }
  0xef   : > { %v708_v16 = vsel %vm700_vm7, %v695_v14, %v597_v15 }
  0xf0   : > { %v741_v18 = vunpack.c.l.b16 %v708_v16 }
  0xf2   : > { %v747_v19 = vpack.c.b16 %v741_v18, %v740_v17 }
  0xf4   : > { %992 = vmatmul.msk.bf16.vlgmr.msra.gmra.mxu1 %vm777_vm8, %v747_v19 }
 0x147   : > { %v813_v21 = vpop.f32.mrf.mxu2  ;;  %v818_v22 = vpop.f32.mrf.mxu3 }
 0x148   : > { %v814_v23 = vadd.f32 %v1039_v20, %v813_v21  ;;  %v819_v24 = vadd.f32 %v1039_v20, %v818_v22 }
 0x14a   : > { %v827_v25 = vmax.f32 %v814_v23, 0.0  ;;  %v829_v26 = vmax.f32 %v819_v24, 0.0 }
 0x14c   : > { %v835_v27 = vpack.c.bf16 %v827_v25, %v827_v25  ;;  %v837_v28 = vpack.c.bf16 %v829_v26, %v829_v26 }
 0x14e   : > { %844 = vst.msk [vmem:[%s1285_s11 + $0x10] sm:$0xf] %vm839_vm9, %v835_v27 }
 0x14f   : > { %846 = vst.msk [vmem:[%s1285_s11 + $0x18] sm:$0xf] %vm839_vm9, %v837_v28  ;;  %v815_v29 = vpop.f32.mrf.mxu2  ;;  %v820_v30 = vpop.f32.mrf.mxu3 }
 0x150   : > { %v816_v31 = vadd.f32 %v1039_v20, %v815_v29  ;;  %v821_v32 = vadd.f32 %v1039_v20, %v820_v30 }
 0x152   : > { %v828_v33 = vmax.f32 %v816_v31, 0.0  ;;  %v830_v34 = vmax.f32 %v821_v32, 0.0 }
 0x154   : > { %v836_v35 = vpack.c.bf16 %v828_v33, %v828_v33  ;;  %v838_v36 = vpack.c.bf16 %v830_v34, %v830_v34 }
 0x156   : > { %845 = vst.msk [vmem:[%s1285_s11 + $0x14] sm:$0xf] %vm839_vm9, %v836_v35 }
 0x157   : > { %847 = vst.msk [vmem:[%s1285_s11 + $0x1c] sm:$0xf] %vm839_vm9, %v838_v36 }
 0x169   : > { %v803_v37 = vpop.f32.mrf.mxu0 }
 0x16a   : > { %v804_v38 = vadd.f32 %v1039_v20, %v803_v37 }
 0x16c   : > { %v823_v39 = vmax.f32 %v804_v38, 0.0 }
 0x16e   : > { %v831_v40 = vpack.c.bf16 %v823_v39, %v823_v39 }
 0x170   : > { %840 = vst.msk [vmem:[%s1285_s11] sm:$0xf] %vm839_vm9, %v831_v40 }
 0x171   : > { %v805_v41 = vpop.f32.mrf.mxu0  ;;  %v808_v42 = vpop.f32.mrf.mxu1 }
 0x172   : > { %v806_v43 = vadd.f32 %v1039_v20, %v805_v41  ;;  %v809_v44 = vadd.f32 %v1039_v20, %v808_v42 }
 0x174   : > { %v824_v46 = vmax.f32 %v806_v43, 0.0  ;;  %v825_v47 = vmax.f32 %v809_v44, 0.0 }
 0x176   : > { %v832_v48 = vpack.c.bf16 %v824_v46, %v824_v46  ;;  %v833_v49 = vpack.c.bf16 %v825_v47, %v825_v47 }
 0x178   : > { %841 = vst.msk [vmem:[%s1285_s11 + $0x4] sm:$0xf] %vm839_vm9, %v832_v48 }
 0x179   : > { %842 = vst.msk [vmem:[%s1285_s11 + $0x8] sm:$0xf] %vm839_vm9, %v833_v49  ;;  %v810_v50 = vpop.f32.mrf.mxu1 }
 0x17a   : > { %v811_v51 = vadd.f32 %v1039_v20, %v810_v50 }
 0x17c   : > { %v826_v52 = vmax.f32 %v811_v51, 0.0 }
 0x17e   : > { %v834_v53 = vpack.c.bf16 %v826_v52, %v826_v52 }
 0x180   : > { %843 = vst.msk [vmem:[%s1285_s11 + $0xc] sm:$0xf] %vm839_vm9, %v834_v53 }
 0x181 PF: > { %s13_s12 = sadd.s32 1, %s1046_s12  }
 0x182   : > { %p10_p4 = scmp.ge.s32.totalorder %s13_s12, 4  }
 0x184   :  { %12 = sbr.rel (!%p10_p4) target bundleno = 1 (0x1), region = 64 }

// kernel: mtsl_forward.5
= control target key start
LH: loop header
LB: loop body
LE: loop exit
PB: predicated region body
PF: predicated region fallthrough
CT: control target
= control target key end

     0   :  { %s2934_s12 = smov 0   ;;  %s4198_s0 = inlined_call_operand.vmem [shape: bf16[2,18,18,4], index: 0, kind: input, shape index: {}]   ;;  %s4199_s1 = inlined_call_operand.vmem [shape: bf16[36,8], index: 1, kind: input, shape index: {}]   ;;  %s4200_s2 = inlined_call_operand.vmem [shape: f32[1,8], index: 2, kind: input, shape index: {}]   ;;  %s4201_s3 = inlined_call_operand.vmem [shape: bf16[2,16,16,8], index: 3, kind: output, shape index: {}]  }
   0x1 LB: > { %s2438_s13 = sadd.s32 4294967295, %s2904_s12   ;;  %p2442_p0 = scmp.ge.s32.totalorder %s2904_s12, 1  ;;  %s2904_s12 = sphi %s2934_s12, %s13_s12  }
   0x2   : > { %p137_p1 = scmp.lt.s32.totalorder %s2904_s12, 3 }
   0x4   : > { %p138_p2 = pnand %p2442_p0, %p137_p1 }
   0x6   : > { %141 = sbr.rel (%p138_p2) target bundleno = 622 (0x26e), region = 32 }
   0xb   : > { %p161_p3 = scmp.lt.s32.totalorder %s2438_s13, 1  ;;  %vm494_vm0 = vsmask.f32 7424  ;;  %s2906_s18 = smov 4   ;;  %vm767_vm1 = vcmask 1046528   ;;  %vm1872_vm2 = vcmask 31744  }
   0xc   : > { %s2907_s19 = smov 8   ;;  %s2908_s20 = smov 12   ;;  %vm1905_vm3 = vcmask 64512   ;;  %vm1938_vm4 = vcmask 97280   ;;  %vm2193_vm5 = vcmask 1041408   ;;  %vm1971_vm6 = vcmask 130048  }
   0xd   : > { %s4209_s13 = smov (!%p161_p3, %s2438_s13), 1  ;;  %s2909_s21 = smov 16   ;;  %vm2004_vm7 = vcmask 162816   ;;  %vm2037_vm8 = vcmask 195584   ;;  %vm2070_vm9 = vcmask 228352   ;;  %vm2103_vm10 = vcmask 261120  }
   0xe   : > { %s2803_s14 = smul.u32 216, %s4209_s13  ;;  %s2910_s22 = smov 24   ;;  %vm2160_vm11 = vcmask 293888   ;;  %vm2350_vm12 = vcmask 60416  }
   0xf   : > { %s2911_s23 = smov 20   ;;  %s2912_s24 = smov 28  }
  0x10   : > { %s2948_s17 = scalar_lea.vmem %s4198_s0, %s2803_s14  ;;  %s2913_s25 = smov 32  }
  0x11   : > { %v2951_v0 = vld [vmem:[%s2948_s17 + $0x30] sm:$0xff]   ;;  %v208_v1 = vld [vmem:[%s2948_s17 + $0x38] sm:$0x1]  ;;  %v206_v6 = vld [vmem:[%s2948_s17 + $0x20] sm:$0x1]  ;;  %s2600_s7 = sshll.u32 %s4209_s13, 7 }
  0x12   : > { %v2955_v2 = vld [vmem:[%s2948_s17 + $0x18] sm:$0xff]   ;;  %v466_v3 = vunpack.c.l.b16 %v208_v1  ;;  %v544_v4 = vshrl.u32 %v2951_v0, 16  ;;  %v546_v5 = vshll.u32 %v2951_v0, 16  ;;  %v2604_v8 = vld [vmem:[%s2948_s17] sm:$0xff]   ;;  %v464_v9 = vunpack.c.l.b16 %v206_v6  ;;  %v204_v11 = vld [vmem:[%s2948_s17 + $0x8] sm:$0x1]  ;;  %s4071_s10 = scalar_lea.vmem %s4201_s3, %s2600_s7 }
  0x13   : > { %v520_v7 = vshrl.u32 %v2955_v2, 16  ;;  %v522_v10 = vshll.u32 %v2955_v2, 16  ;;  %v496_v12 = vshrl.u32 %v2604_v8, 16  ;;  %v498_v13 = vshll.u32 %v2604_v8, 16  ;;  %v2965_v14 = vld [vmem:[%s2948_s17 + $0x60] sm:$0xff]   ;;  %v2995_v42 = vld [vmem:[%s2948_s17 + $0x48] sm:$0xff]  }
  0x14   : > { %v2967_v15 = vpack.c.b16 %v466_v3, %v466_v3  ;;  %v548_v16 = vrot.slane %v546_v5, 1  ;;  %v462_v17 = vunpack.c.l.b16 %v204_v11  ;;  %v212_v18 = vld [vmem:[%s2948_s17 + $0x68] sm:$0x1]  ;;  %v592_v19 = vshrl.u32 %v2965_v14, 16  ;;  %v207_v30 = vld [vmem:[%s2948_s17 + $0x2c] sm:$0x1] }
  0x15   : > { %v2971_v20 = vpack.c.b16 %v464_v9, %v464_v9  ;;  %v524_v21 = vrot.slane %v522_v10, 1  ;;  %v500_v22 = vrot.slane %v498_v13, 1  ;;  %v470_v23 = vunpack.c.l.b16 %v212_v18  ;;  %v2974_v24 = vld [vmem:[%s2948_s17 + $0x24] sm:$0xff]   ;;  %v210_v35 = vld [vmem:[%s2948_s17 + $0x50] sm:$0x1]  ;;  %v3007_v50 = vld [vmem:[%s2948_s17 + $0x3c] sm:$0xff]  }
  0x16   : > { %v2977_v25 = vld [vmem:[%s2948_s17 + $0x24] sm:$0xf0]  ;;  %v2979_v26 = vor.u32 %v548_v16, %v544_v4  ;;  %v551_v27 = vshll.u32 %v2967_v15, 16  ;;  %v2982_v28 = vpack.c.b16 %v462_v17, %v462_v17  ;;  %v594_v29 = vshll.u32 %v2965_v14, 16  ;;  %v3010_v51 = vld [vmem:[%s2948_s17 + $0x3c] sm:$0xf0] }
  0x17   : > { %v2986_v31 = vor.u32 %v524_v21, %v520_v7  ;;  %v527_v32 = vshll.u32 %v2971_v20, 16  ;;  %v501_v33 = vor.u32 %v500_v22, %v496_v12  ;;  %v2989_v34 = vpack.c.b16 %v470_v23, %v470_v23  ;;  %v209_v56 = vld [vmem:[%s2948_s17 + $0x44] sm:$0x1]  ;;  %v3020_v57 = vld [vmem:[%s2948_s17 + $0x54] sm:$0xff]   ;;  %v211_v3 = vld [vmem:[%s2948_s17 + $0x5c] sm:$0x1] }
  0x18   : > { %4204 = vst [vmem:[#allocation2_spill] sm:$0xff] %v2979_v26  ;;  %v553_v36 = vrot.slane %v551_v27, 1  ;;  %v503_v37 = vshll.u32 %v2982_v28, 16  ;;  %v596_v38 = vrot.slane %v594_v29, 1  ;;  %v465_v41 = vunpack.c.l.b16 %v207_v30  ;;  %v3023_v58 = vld [vmem:[%s2948_s17 + $0x54] sm:$0xf0] }
  0x19   : > { %v529_v39 = vrot.slane %v527_v32, 1  ;;  %v599_v40 = vshll.u32 %v2989_v34, 16  ;;  %v468_v46 = vunpack.c.l.b16 %v210_v35  ;;  %v568_v54 = vshrl.u32 %v2995_v42, 16  ;;  %v3034_v4 = vld [vmem:[%s2948_s17 + $0xc] sm:$0xff]   ;;  %v205_v16 = vld [vmem:[%s2948_s17 + $0x14] sm:$0x1] }
  0x1a   : > { %v554_v43 = vsel %vm494_vm0, %v2979_v26, %v553_v36  ;;  %v505_v44 = vrot.slane %v503_v37, 1  ;;  %v2999_v45 = vor.u32 %v596_v38, %v592_v19  ;;  %v3004_v49 = vpack.c.b16 %v465_v41, %v465_v41  ;;  %v3037_v5 = vld [vmem:[%s2948_s17 + $0xc] sm:$0xf0]  ;;  %v3049_v21 = vld [vmem:[%s2948_s17 + $0x84] sm:$0xff]   ;;  %v215_v36 = vld [vmem:[%s2948_s17 + $0x8c] sm:$0x1] }
  0x1b   : > { %695 = vrot.lane.b32.xlu2 %v554_v43, %s2906_s18  ;;  %v530_v47 = vsel %vm494_vm0, %v2986_v31, %v529_v39  ;;  %v601_v48 = vrot.slane %v599_v40, 1  ;;  %v3014_v53 = vpack.c.b16 %v468_v46, %v468_v46  ;;  %v570_v55 = vshll.u32 %v2995_v42, 16  ;;  %v3052_v22 = vld [vmem:[%s2948_s17 + $0x84] sm:$0xf0]  ;;  %v214_v43 = vld [vmem:[%s2948_s17 + $0x80] sm:$0x1] }
  0x1c   : > { %4205 = vst [vmem:[#allocation3_spill] sm:$0xff] %v2999_v45  ;;  %691 = vrot.lane.b32.xlu1 %v530_v47, %s2906_s18  ;;  %v506_v52 = vsel %vm494_vm0, %v501_v33, %v505_v44  ;;  %v532_v60 = vshrl.u32 %v2974_v24, 16  ;;  %v534_v61 = vshll.u32 %v2974_v24, 16  ;;  %v539_v62 = vshll.u32 %v3004_v49, 16 }
  0x1d   : > { %687 = vrot.lane.b32.xlu0 %v506_v52, %s2906_s18  ;;  %v602_v59 = vsel %vm494_vm0, %v2999_v45, %v601_v48  ;;  %v572_v63 = vrot.slane %v570_v55, 1  ;;  %v575_v1 = vshll.u32 %v3014_v53, 16  ;;  %v467_v8 = vunpack.c.l.b16 %v209_v56  ;;  %v3073_v56 = vld [vmem:[%s2948_s17 + $0x78] sm:$0xff]   ;;  %v2830_v45 = vld [vmem:[%s2948_s17 + $0x24] sm:$0xe] }
  0x1e   : > { %v536_v6 = vrot.slane %v534_v61, 1  ;;  %v541_v7 = vrot.slane %v539_v62, 1  ;;  %v469_v13 = vunpack.c.l.b16 %v211_v3  ;;  %v556_v18 = vshrl.u32 %v3007_v50, 16  ;;  %v213_v3 = vld [vmem:[%s2948_s17 + $0x74] sm:$0x1] }
  0x1f   : > { %v3039_v9 = vor.u32 %v572_v63, %v568_v54  ;;  %v577_v10 = vrot.slane %v575_v1, 1  ;;  %v3041_v12 = vpack.c.b16 %v467_v8, %v467_v8  ;;  %v558_v19 = vshll.u32 %v3007_v50, 16  ;;  %v3079_v63 = vld [vmem:[%s2948_s17 + $0x6c] sm:$0xff]  }
  0x20   : > { %v537_v11 = vor.u32 %v536_v6, %v532_v60  ;;  %v3057_v29 = vpack.c.b16 %v469_v13, %v469_v13  ;;  %v580_v32 = vshrl.u32 %v3020_v57, 16  ;;  %v582_v33 = vshll.u32 %v3020_v57, 16  ;;  %v3082_v1 = vld [vmem:[%s2948_s17 + $0x6c] sm:$0xf0] }
  0x21   : > { %v578_v17 = vsel %vm494_vm0, %v3039_v9, %v577_v10  ;;  %v563_v27 = vshll.u32 %v3041_v12, 16  ;;  %v560_v30 = vrot.slane %v558_v19, 1  ;;  %v463_v35 = vunpack.c.l.b16 %v205_v16 }
  0x22   : > { %v542_v23 = vsel %vm494_vm0, %v537_v11, %v541_v7  ;;  %v587_v38 = vshll.u32 %v3057_v29, 16  ;;  %v584_v40 = vrot.slane %v582_v33, 1  ;;  %v508_v46 = vshrl.u32 %v3034_v4, 16 }
  0x23   : > { %703 = vrot.lane.b32.xlu2 %v602_v59, %s2906_s18  ;;  %v565_v37 = vrot.slane %v563_v27, 1  ;;  %v561_v39 = vor.u32 %v560_v30, %v556_v18  ;;  %v3065_v41 = vpack.c.b16 %v463_v35, %v463_v35  ;;  %v510_v47 = vshll.u32 %v3034_v4, 16  ;;  %v218_v18 = vld [vmem:[%s2948_s17 + $0xb0] sm:$0x1]  ;;  %v3096_v27 = vld [vmem:[%s2948_s17 + $0xa8] sm:$0xff]  }
  0x24   : > { %693 = vrot.lane.b32.xlu1 %v542_v23, %s2906_s18  ;;  %v589_v44 = vrot.slane %v587_v38, 1  ;;  %v473_v48 = vunpack.c.l.b16 %v215_v36  ;;  %v585_v54 = vor.u32 %v584_v40, %v580_v32  ;;  %v472_v61 = vunpack.c.l.b16 %v214_v43  ;;  %v3107_v40 = vld [vmem:[%s2948_s17 + $0x9c] sm:$0xf0] }
  0x25   : > { %699 = vrot.lane.b32.xlu0 %v578_v17, %s2906_s18  ;;  %v566_v52 = vsel %vm494_vm0, %v561_v39, %v565_v37  ;;  %v515_v55 = vshll.u32 %v3065_v41, 16  ;;  %v512_v59 = vrot.slane %v510_v47, 1  ;;  %v616_v62 = vshrl.u32 %v3073_v56, 16  ;;  %v3104_v39 = vld [vmem:[%s2948_s17 + $0x9c] sm:$0xff]  }
  0x26   : > { %v3075_v60 = vpack.c.b16 %v473_v48, %v473_v48  ;;  %v590_v6 = vsel %vm494_vm0, %v585_v54, %v589_v44  ;;  %v628_v8 = vshrl.u32 %v3049_v21, 16  ;;  %v630_v10 = vshll.u32 %v3049_v21, 16  ;;  %v217_v48 = vld [vmem:[%s2948_s17 + $0xa4] sm:$0x1] }
  0x27   : > { %v517_v7 = vrot.slane %v515_v55, 1  ;;  %v513_v11 = vor.u32 %v512_v59, %v508_v46  ;;  %v3090_v16 = vpack.c.b16 %v472_v61, %v472_v61  ;;  %v618_v17 = vshll.u32 %v3073_v56, 16  ;;  %v216_v61 = vld [vmem:[%s2948_s17 + $0x98] sm:$0x1] }
  0x28   : > { %v635_v13 = vshll.u32 %v3075_v60, 16  ;;  %v632_v19 = vrot.slane %v630_v10, 1  ;;  %v471_v23 = vunpack.c.l.b16 %v213_v3  ;;  %v476_v38 = vunpack.c.l.b16 %v218_v18 }
  0x29   : > { %v518_v30 = vsel %vm494_vm0, %v513_v11, %v517_v7  ;;  %v620_v33 = vrot.slane %v618_v17, 1  ;;  %v623_v35 = vshll.u32 %v3090_v16, 16  ;;  %v664_v46 = vshrl.u32 %v3096_v27, 16  ;;  %v3124_v7 = vld [vmem:[%s2948_s17 + $0x90] sm:$0xff]  }
  0x2a   : > { %v637_v32 = vrot.slane %v635_v13, 1  ;;  %v633_v36 = vor.u32 %v632_v19, %v628_v8  ;;  %v3101_v37 = vpack.c.b16 %v471_v23, %v471_v23  ;;  %v666_v47 = vshll.u32 %v3096_v27, 16  ;;  %v2827_v13 = vld [vmem:[%s2948_s17 + $0xc] sm:$0xe] }
  0x2b   : > { %697 = vrot.lane.b32.xlu2 %v566_v52, %s2906_s18  ;;  %v3109_v43 = vor.u32 %v620_v33, %v616_v62  ;;  %v625_v44 = vrot.slane %v623_v35, 1  ;;  %v604_v54 = vshrl.u32 %v3079_v63, 16  ;;  %v606_v55 = vshll.u32 %v3079_v63, 16 }
  0x2c   : > { %701 = vrot.lane.b32.xlu1 %v590_v6, %s2906_s18  ;;  %v638_v52 = vsel %vm494_vm0, %v633_v36, %v637_v32  ;;  %v611_v59 = vshll.u32 %v3101_v37, 16  ;;  %v3121_v3 = vpack.c.b16 %v476_v38, %v476_v38  ;;  %v668_v6 = vrot.slane %v666_v47, 1 }
  0x2d   : > { %689 = vrot.lane.b32.xlu0 %v518_v30, %s2906_s18  ;;  %v626_v62 = vsel %vm494_vm0, %v3109_v43, %v625_v44  ;;  %v608_v8 = vrot.slane %v606_v55, 1  ;;  %v475_v11 = vunpack.c.l.b16 %v217_v48  ;;  %v474_v19 = vunpack.c.l.b16 %v216_v61  ;;  %v3143_v48 = vld [vmem:[%s2948_s17 + $0xb4] sm:$0xff]   ;;  %v2723_v61 = vld [vmem:[%s2948_s17] sm:$0xe] }
  0x2e   : > { %v613_v10 = vrot.slane %v611_v59, 1  ;;  %v3128_v17 = vor.u32 %v668_v6, %v664_v46  ;;  %v671_v18 = vshll.u32 %v3121_v3, 16  ;;  %v642_v32 = vshll.u32 %v3124_v7, 16  ;;  %v2722_v59 = vld [vmem:[%s2948_s17] sm:$0xf0] }
  0x2f   : > { %v609_v23 = vor.u32 %v608_v8, %v604_v54  ;;  %v3132_v30 = vpack.c.b16 %v475_v11, %v475_v11  ;;  %v3135_v35 = vpack.c.b16 %v474_v19, %v474_v19  ;;  %v640_v36 = vshrl.u32 %v3124_v7, 16  ;;  %v219_v11 = vld [vmem:[%s2948_s17 + $0xbc] sm:$0x1] }
  0x30   : > { %v673_v33 = vrot.slane %v671_v18, 1  ;;  %v652_v44 = vshrl.u32 %v3104_v39, 16  ;;  %v654_v46 = vshll.u32 %v3104_v39, 16  ;;  %v644_v54 = vrot.slane %v642_v32, 1 }
  0x31   : > { %v614_v38 = vsel %vm494_vm0, %v609_v23, %v613_v10  ;;  %v659_v47 = vshll.u32 %v3132_v30, 16  ;;  %v647_v55 = vshll.u32 %v3135_v35, 16  ;;  %v2828_v10 = vor.u32 %v2827_v13, %v3037_v5 }
  0x32   : > { %v656_v6 = vrot.slane %v654_v46, 1  ;;  %v3156_v18 = vor.u32 %v644_v54, %v640_v36  ;;  %v2724_v32 = vor.u32 %v2723_v61, %v2722_v59  ;;  %v477_v26 = vunpack.c.l.b16 %v219_v11 }
  0x33   : > { %709 = vrot.lane.b32.xlu2 %v638_v52, %s2906_s18  ;;  %v3146_v52 = vld [vmem:[%s2948_s17 + $0xb4] sm:$0xf0]  ;;  %v661_v8 = vrot.slane %v659_v47, 1  ;;  %v649_v19 = vrot.slane %v647_v55, 1  ;;  %v771_v5 = vrot.slane %v2828_v10, 1  ;;  %v769_v13 = vrot.slane %v2982_v28, 1 }
  0x34   : > { %707 = vrot.lane.b32.xlu1 %v626_v62, %s2906_s18  ;;  %v674_v62 = vsel %vm494_vm0, %v3128_v17, %v673_v33  ;;  %v657_v23 = vor.u32 %v656_v6, %v652_v44  ;;  %v3166_v36 = vpack.c.b16 %v477_v26, %v477_v26  ;;  %v2728_v44 = vld [vmem:[%s2948_s17 + $0x30] sm:$0xf0]  ;;  %v768_v47 = vrot.slane %v2724_v32, 1  ;;  %v2726_v26 = vld [vmem:[%s2948_s17 + $0x18] sm:$0xe] }
  0x35   : > { %705 = vrot.lane.b32.xlu0 %v614_v38, %s2906_s18  ;;  %v772_v38 = vrot.slane %v3065_v41, 1  ;;  %v650_v46 = vsel %vm494_vm0, %v3156_v18, %v649_v19  ;;  %v2729_v41 = vld [vmem:[%s2948_s17 + $0x30] sm:$0xe]  ;;  %v676_v54 = vshrl.u32 %v3143_v48, 16  ;;  %v678_v55 = vshll.u32 %v3143_v48, 16 }
  0x36   : > { %v662_v33 = vsel %vm494_vm0, %v657_v23, %v661_v8  ;;  %v683_v59 = vshll.u32 %v3166_v36, 16  ;;  %v2730_v6 = vor.u32 %v2729_v41, %v2728_v44  ;;  %v2725_v8 = vld [vmem:[%s2948_s17 + $0x18] sm:$0xf0]  ;;  %v2833_v10 = vld [vmem:[%s2948_s17 + $0x54] sm:$0xe]  ;;  %v770_v11 = vsel %vm767_vm1, %v768_v47, %v769_v13 }
  0x37   : > { %v773_v61 = vsel %vm767_vm1, %v771_v5, %v772_v38  ;;  %v2831_v23 = vor.u32 %v2830_v45, %v2977_v25  ;;  %v781_v32 = vrot.slane %v2967_v15, 1  ;;  %v2836_v5 = vld [vmem:[%s2948_s17 + $0x3c] sm:$0xe]  ;;  %v778_v13 = vrot.slane %v3004_v49, 1  ;;  %v2731_v45 = vld [vmem:[%s2948_s17 + $0x48] sm:$0xf0] }
  0x38   : > { %v685_v28 = vrot.slane %v683_v59, 1  ;;  %v775_v25 = vrot.slane %v2971_v20, 1  ;;  %v2732_v41 = vld [vmem:[%s2948_s17 + $0x48] sm:$0xe]  ;;  %v2839_v49 = vld [vmem:[%s2948_s17 + $0x6c] sm:$0xe] }
  0x39   : > { %v777_v44 = vrot.slane %v2831_v23, 1  ;;  %v2733_v59 = vor.u32 %v2732_v41, %v2731_v45  ;;  %v793_v45 = vrot.slane %v2989_v34, 1  ;;  %v2741_v41 = vld [vmem:[%s2948_s17 + $0x90] sm:$0xe] }
  0x3b   : > { %715 = vrot.lane.b32.xlu2 %v674_v62, %s2906_s18  ;;  %v680_v62 = vrot.slane %v678_v55, 1  ;;  %v779_v55 = vsel %vm767_vm1, %v777_v44, %v778_v13 }
  0x3c   : > { %713 = vrot.lane.b32.xlu1 %v662_v33, %s2906_s18  ;;  %v780_v33 = vrot.slane %v2730_v6, 1  ;;  %v2837_v6 = vor.u32 %v2836_v5, %v3010_v51  ;;  %v2842_v51 = vld [vmem:[%s2948_s17 + $0x9c] sm:$0xe] }
  0x3d   : > { %711 = vrot.lane.b32.xlu0 %v650_v46, %s2906_s18  ;;  %v681_v19 = vor.u32 %v680_v62, %v676_v54  ;;  %v2727_v46 = vor.u32 %v2726_v26, %v2725_v8  ;;  %v2834_v54 = vor.u32 %v2833_v10, %v3023_v58  ;;  %v790_v62 = vrot.slane %v3057_v29, 1  ;;  %v2737_v8 = vld [vmem:[%s2948_s17 + $0x78] sm:$0xf0]  ;;  %v2738_v58 = vld [vmem:[%s2948_s17 + $0x78] sm:$0xe] }
  0x3e   : > { %v782_v15 = vsel %vm767_vm1, %v780_v33, %v781_v32  ;;  %v787_v26 = vrot.slane %v3014_v53, 1  ;;  %v2739_v23 = vor.u32 %v2738_v58, %v2737_v8  ;;  %v2734_v32 = vld [vmem:[%s2948_s17 + $0x60] sm:$0xf0]  ;;  %v2735_v29 = vld [vmem:[%s2948_s17 + $0x60] sm:$0xe]  ;;  %v2840_v33 = vor.u32 %v2839_v49, %v3082_v1  ;;  %v3234_v58 = vld [vmem:[%s2948_s17 + $0xc] sm:$0xff]  }
  0x3f   : > { %v686_v38 = vsel %vm494_vm0, %v681_v19, %v685_v28  ;;  %v774_v47 = vrot.slane %v2727_v46, 1  ;;  %v789_v20 = vrot.slane %v2834_v54, 1  ;;  %v786_v28 = vrot.slane %v2733_v59, 1  ;;  %v2740_v1 = vld [vmem:[%s2948_s17 + $0x90] sm:$0xf0] }
  0x40   : > { %v784_v19 = vrot.slane %v3041_v12, 1  ;;  %v799_v53 = vrot.slane %v3090_v16, 1  ;;  %v798_v5 = vrot.slane %v2739_v23, 1  ;;  %v2736_v44 = vor.u32 %v2735_v29, %v2734_v32  ;;  %v2845_v12 = vld [vmem:[%s2948_s17 + $0x84] sm:$0xe] }
  0x41   : > { %v791_v10 = vsel %vm767_vm1, %v789_v20, %v790_v62  ;;  %v795_v13 = vrot.slane %v2840_v33, 1  ;;  %v808_v49 = vrot.slane %v3132_v30, 1  ;;  %v805_v20 = vrot.slane %v3135_v35, 1  ;;  %v2743_v30 = vld [vmem:[%s2948_s17 + $0xa8] sm:$0xf0]  ;;  %v3251_v29 = vld [vmem:[%s2948_s17 + $0x24] sm:$0xff]  }
  0x42   : > { %v792_v16 = vrot.slane %v2736_v44, 1  ;;  %v802_v8 = vrot.slane %v3075_v60, 1  ;;  %v811_v32 = vrot.slane %v3121_v3, 1  ;;  %v3262_v3 = vld [vmem:[%s2948_s17 + $0x54] sm:$0xff]   ;;  %v3270_v33 = vld [vmem:[%s2948_s17 + $0x3c] sm:$0xff]  }
  0x43   : > { %818 = vrot.lane.b32.xlu2 %v773_v61, %s2907_s19  ;;  %v776_v61 = vsel %vm767_vm1, %v774_v47, %v775_v25  ;;  %v796_v25 = vrot.slane %v3101_v37, 1  ;;  %v2843_v47 = vor.u32 %v2842_v51, %v3107_v40  ;;  %v2848_v37 = vld [vmem:[%s2948_s17 + $0xb4] sm:$0xe]  ;;  %v3254_v51 = vld [vmem:[%s2948_s17 + $0x24] sm:$0xf0] }
  0x44   : > { %816 = vrot.lane.b32.xlu1 %v770_v11, %s2907_s19  ;;  %v783_v11 = vrot.slane %v2837_v6, 1  ;;  %v794_v59 = vsel %vm767_vm1, %v792_v16, %v793_v45  ;;  %v3283_v44 = vld [vmem:[%s2948_s17 + $0x6c] sm:$0xf0]  ;;  %v3303_v45 = vld [vmem:[%s2948_s17 + $0x84] sm:$0xf0] }
  0x45   : > { %717 = vrot.lane.b32.xlu0 %v686_v38, %s2906_s18  ;;  %v788_v38 = vsel %vm767_vm1, %v786_v28, %v787_v26  ;;  %v797_v54 = vsel %vm767_vm1, %v795_v13, %v796_v25  ;;  %v807_v34 = vrot.slane %v2843_v47, 1  ;;  %v3237_v28 = vld [vmem:[%s2948_s17 + $0xc] sm:$0xf0]  ;;  %v2470_v13 = vld [vmem:[%s2948_s17 + $0x9c] sm:$0xff]   ;;  %v3300_v25 = vld [vmem:[%s2948_s17 + $0x84] sm:$0xff]  }
  0x46   : > { %v785_v46 = vsel %vm767_vm1, %v783_v11, %v784_v19  ;;  %v814_v19 = vrot.slane %v3166_v36, 1  ;;  %v2478_v16 = vld [vmem:[%s2948_s17 + $0x14] sm:$0x1] }
  0x47   : > { %v809_v62 = vsel %vm767_vm1, %v807_v34, %v808_v49  ;;  %v3314_v47 = vld [vmem:[%s2948_s17 + $0xb4] sm:$0xff]   ;;  %v976_v34 = vunpack.c.l.b16 %v2478_v16 }
  0x4b   : > { %824 = vrot.lane.b32.xlu2 %v782_v15, %s2907_s19  ;;  %v800_v15 = vsel %vm767_vm1, %v798_v5, %v799_v53  ;;  %v3273_v53 = vld [vmem:[%s2948_s17 + $0x3c] sm:$0xf0]  ;;  %v2462_v5 = vld [vmem:[%s2948_s17 + $0x6c] sm:$0xff]  }
  0x4c   : > { %822 = vrot.lane.b32.xlu1 %v779_v55, %s2907_s19  ;;  %v2742_v55 = vor.u32 %v2741_v41, %v2740_v1  ;;  %v2486_v41 = vld [vmem:[%s2948_s17 + $0x74] sm:$0x1] }
  0x4d   : > { %820 = vrot.lane.b32.xlu0 %v776_v61, %s2907_s19  ;;  %v2846_v61 = vor.u32 %v2845_v12, %v3052_v22  ;;  %v2744_v22 = vld [vmem:[%s2948_s17 + $0xa8] sm:$0xe] }
  0x4e   : > { %v804_v40 = vrot.slane %v2742_v55, 1  ;;  %v2745_v11 = vor.u32 %v2744_v22, %v2743_v30  ;;  %v984_v55 = vunpack.c.l.b16 %v2486_v41 }
  0x4f   : > { %v801_v6 = vrot.slane %v2846_v61, 1 }
  0x50   : > { %v806_v26 = vsel %vm767_vm1, %v804_v40, %v805_v20  ;;  %v810_v23 = vrot.slane %v2745_v11, 1  ;;  %v3328_v40 = vpack.c.b16 %v984_v55, %v984_v55  ;;  %v1011_v20 = vshll.u32 %v3234_v58, 16 }
  0x51   : > { %v803_v35 = vsel %vm767_vm1, %v801_v6, %v802_v8  ;;  %v3336_v6 = vld [vmem:[%s2948_s17 + $0xc0] sm:$0xff]   ;;  %v1153_v8 = vshrl.u32 %v2470_v13, 16 }
  0x52   : > { %v812_v36 = vsel %vm767_vm1, %v810_v23, %v811_v32  ;;  %v1112_v11 = vshll.u32 %v3328_v40, 16  ;;  %v2851_v23 = vld [vmem:[%s2948_s17 + $0x9c] sm:$0xe] }
  0x53   : > { %830 = vrot.lane.b32.xlu2 %v791_v10, %s2907_s19  ;;  %v2849_v10 = vor.u32 %v2848_v37, %v3146_v52  ;;  %v1155_v37 = vshll.u32 %v2470_v13, 16 }
  0x54   : > { %828 = vrot.lane.b32.xlu1 %v788_v38, %s2907_s19  ;;  %v3265_v38 = vld [vmem:[%s2948_s17 + $0x54] sm:$0xf0]  ;;  %v1114_v16 = vrot.slane %v1112_v11, 1 }
  0x55   : > { %826 = vrot.lane.b32.xlu0 %v785_v46, %s2907_s19  ;;  %v813_v60 = vrot.slane %v2849_v10, 1  ;;  %v1157_v30 = vrot.slane %v1155_v37, 1  ;;  %v1105_v10 = vshrl.u32 %v2462_v5, 16  ;;  %v2550_v37 = vld [vmem:[%s2948_s17 + $0x80] sm:$0x1] }
  0x57   : > { %v815_v52 = vsel %vm767_vm1, %v813_v60, %v814_v19  ;;  %v1009_v60 = vshrl.u32 %v3234_v58, 16  ;;  %v1013_v19 = vrot.slane %v1011_v20, 1  ;;  %v1158_v32 = vor.u32 %v1157_v30, %v1153_v8 }
  0x59   : > { %v1014_v55 = vor.u32 %v1013_v19, %v1009_v60  ;;  %v2482_v19 = vld [vmem:[%s2948_s17 + $0x44] sm:$0x1] }
  0x5b   : > { %836 = vrot.lane.b32.xlu2 %v800_v15, %s2907_s19 }
  0x5c   : > { %834 = vrot.lane.b32.xlu1 %v797_v54, %s2907_s19  ;;  %v3317_v54 = vld [vmem:[%s2948_s17 + $0xb4] sm:$0xf0] }
  0x5d   : > { %832 = vrot.lane.b32.xlu0 %v794_v59, %s2907_s19 }
  0x63   : > { %842 = vrot.lane.b32.xlu2 %v809_v62, %s2907_s19 }
  0x64   : > { %840 = vrot.lane.b32.xlu1 %v806_v26, %s2907_s19  ;;  %v3339_v26 = vpack.c.b16 %v976_v34, %v976_v34 }
  0x65   : > { %838 = vrot.lane.b32.xlu0 %v803_v35, %s2907_s19 }
  0x6b   : > { %928 = vrot.lane.b32.xlu2 %v3234_v58, %s2908_s20 }
  0x6c   : > { %846 = vrot.lane.b32.xlu1 %v815_v52, %s2907_s19 }
  0x6d   : > { %844 = vrot.lane.b32.xlu0 %v812_v36, %s2907_s19  ;;  %v1016_v36 = vshll.u32 %v3339_v26, 16 }
  0x73   : > { %934 = vrot.lane.b32.xlu2 %v2951_v0, %s2908_s20 }
  0x74   : > { %932 = vrot.lane.b32.xlu1 %v3251_v29, %s2908_s20 }
  0x75   : > { %v3277_v46 = vpop.permute.xlu2 %695  ;;  %930 = vrot.lane.b32.xlu0 %v2955_v2, %s2908_s20  ;;  %v3295_v2 = vld [vmem:[%s2948_s17 + $0x9c] sm:$0xf0] }
  0x76   : > { %v2852_v30 = vor.u32 %v2851_v23, %v3295_v2 }
  0x7b   : > { %940 = vrot.lane.b32.xlu2 %v3262_v3, %s2908_s20 }
  0x7c   : > { %938 = vrot.lane.b32.xlu1 %v2995_v42, %s2908_s20  ;;  %v2490_v42 = vld [vmem:[%s2948_s17 + $0xa4] sm:$0x1] }
  0x7d   : > { %v3289_v12 = vpop.permute.xlu2 %703  ;;  %936 = vrot.lane.b32.xlu0 %v3270_v33, %s2908_s20  ;;  %v988_v15 = vunpack.c.l.b16 %v2490_v42  ;;  %v2554_v42 = vld [vmem:[%s2948_s17 + $0xb0] sm:$0x1] }
  0x7e   : > { %v1500_v20 = vunpack.c.l.b16 %v2554_v42 }
  0x7f   : > { %v3320_v59 = vpack.c.b16 %v988_v15, %v988_v15 }
  0x80   : > { %v3366_v11 = vpack.c.b16 %v1500_v20, %v1500_v20 }
  0x81   : > { %v1160_v22 = vshll.u32 %v3320_v59, 16 }
  0x83   : > { %946 = vrot.lane.b32.xlu2 %v3073_v56, %s2908_s20  ;;  %v1162_v52 = vrot.slane %v1160_v22, 1  ;;  %v1496_v22 = vunpack.c.l.b16 %v2550_v37 }
  0x84   : > { %944 = vrot.lane.b32.xlu1 %v2462_v5, %s2908_s20 }
  0x85   : > { %v3306_v1 = vpop.permute.xlu2 %697  ;;  %942 = vrot.lane.b32.xlu0 %v2965_v14, %s2908_s20  ;;  %v1107_v14 = vshll.u32 %v2462_v5, 16  ;;  %v2854_v5 = vld [vmem:[%s2948_s17 + $0x6c] sm:$0xe]  ;;  %v1163_v34 = vsel %vm494_vm0, %v1158_v32, %v1162_v52  ;;  %v1316_v52 = vrot.slane %v2852_v30, 1  ;;  %v3371_v42 = vpack.c.b16 %v1496_v22, %v1496_v22 }
  0x87   : > { %v1109_v35 = vrot.slane %v1107_v14, 1  ;;  %v1018_v14 = vrot.slane %v1016_v36, 1  ;;  %v1317_v36 = vrot.slane %v3320_v59, 1  ;;  %v1624_v59 = vshll.u32 %v3371_v42, 16 }
  0x89   : > { %v1110_v15 = vor.u32 %v1109_v35, %v1105_v10  ;;  %v1019_v10 = vsel %vm494_vm0, %v1014_v55, %v1018_v14  ;;  %v2855_v35 = vor.u32 %v2854_v5, %v3283_v44  ;;  %v1305_v44 = vrot.slane %v3328_v40, 1 }
  0x8a   : > { %v1672_v5 = vshll.u32 %v3366_v11, 16  ;;  %v1318_v55 = vsel %vm767_vm1, %v1316_v52, %v1317_v36  ;;  %v1059_v40 = vshll.u32 %v3270_v33, 16 }
  0x8b   : > { %952 = vrot.lane.b32.xlu2 %v2470_v13, %s2908_s20  ;;  %v1115_v8 = vsel %vm494_vm0, %v1110_v15, %v1114_v16  ;;  %v1304_v23 = vrot.slane %v2855_v35, 1  ;;  %v980_v15 = vunpack.c.l.b16 %v2482_v19  ;;  %v2788_v35 = vld [vmem:[%s2948_s17 + $0xa8] sm:$0xf0] }
  0x8c   : > { %950 = vrot.lane.b32.xlu1 %v3124_v7, %s2908_s20  ;;  %v1674_v14 = vrot.slane %v1672_v5, 1 }
  0x8d   : > { %v3324_v49 = vpop.permute.xlu2 %709  ;;  %948 = vrot.lane.b32.xlu0 %v3300_v25, %s2908_s20  ;;  %v3387_v20 = vpack.c.b16 %v980_v15, %v980_v15  ;;  %v2857_v15 = vld [vmem:[%s2948_s17 + $0x3c] sm:$0xe] }
  0x8e   : > { %v3326_v61 = vpop.permute.xlu1 %691  ;;  %v1675_v19 = vsel %vm494_vm0, %v3128_v17, %v1674_v14  ;;  %v2546_v14 = vld [vmem:[%s2948_s17 + $0x50] sm:$0x1] }
  0x8f   : > { %v3333_v62 = vpop.permute.xlu0 %687  ;;  %v1064_v52 = vshll.u32 %v3387_v20, 16 }
  0x93   : > { %958 = vrot.lane.b32.xlu2 %v3336_v6, %s2908_s20 }
  0x94   : > { %956 = vrot.lane.b32.xlu1 %v3314_v47, %s2908_s20 }
  0x95   : > { %v3349_v13 = vpop.permute.xlu2 %715  ;;  %954 = vrot.lane.b32.xlu0 %v3096_v27, %s2908_s20 }
  0x96   : > { %v3353_v41 = vpop.permute.xlu1 %693 }
  0x97   : > { %v3357_v58 = vpop.permute.xlu0 %699 }
  0x9b   : > { %1224 = vrot.lane.b32.xlu2 %v1163_v34, %s2909_s21  ;;  %v1306_v34 = vsel %vm767_vm1, %v1304_v23, %v1305_v44  ;;  %v2783_v23 = vld [vmem:[%s2948_s17 + $0x78] sm:$0xe] }
  0x9c   : > { %1216 = vrot.lane.b32.xlu1 %v1115_v8, %s2909_s21 }
  0x9d   : > { %v819_v60 = vpop.permute.xlu2 %818  ;;  %1200 = vrot.lane.b32.xlu0 %v1019_v10, %s2909_s21  ;;  %v1626_v10 = vrot.slane %v1624_v59, 1  ;;  %v2860_v59 = vld [vmem:[%s2948_s17 + $0xc] sm:$0xe] }
  0x9e   : > { %v702_v32 = vpop.permute.xlu1 %701 }
  0x9f   : > { %v690_v2 = vpop.permute.xlu0 %689  ;;  %v1627_v44 = vsel %vm494_vm0, %v3109_v43, %v1626_v10  ;;  %v1829_v10 = vrot.slane %v3366_v11, 1  ;;  %v2858_v11 = vor.u32 %v2857_v15, %v3273_v53  ;;  %v2487_v15 = vld [vmem:[%s2948_s17 + $0x80] sm:$0x1] }
  0xa0   : > { %v1876_v16 = vsel %vm1872_vm2, %v3034_v4, %v690_v2  ;;  %v1882_v4 = vsel %vm1872_vm2, %v2951_v0, %v3277_v46  ;;  %v1057_v0 = vshrl.u32 %v3270_v33, 16  ;;  %v1061_v46 = vrot.slane %v1059_v40, 1  ;;  %v2782_v2 = vld [vmem:[%s2948_s17 + $0x78] sm:$0xf0] }
  0xa1   : > { %v3383_v37 = vsel %vm1905_vm3, %v1876_v16, %v819_v60  ;;  %v2789_v60 = vld [vmem:[%s2948_s17 + $0xa8] sm:$0xe]  ;;  %v2784_v33 = vor.u32 %v2783_v23, %v2782_v2  ;;  %v1888_v40 = vsel %vm1872_vm2, %v3020_v57, %v702_v32  ;;  %v1817_v57 = vrot.slane %v3371_v42, 1  ;;  %v2714_v23 = vld [vmem:[%s2948_s17 + $0x18] sm:$0xff]  }
  0xa2   : > { %v2790_v5 = vor.u32 %v2789_v60, %v2788_v35  ;;  %v1062_v16 = vor.u32 %v1061_v46, %v1057_v0  ;;  %v2542_v60 = vld [vmem:[%s2948_s17 + $0x20] sm:$0x1]  ;;  %v1492_v32 = vunpack.c.l.b16 %v2546_v14  ;;  %v1523_v53 = vshll.u32 %v2714_v23, 16 }
  0xa3   : > { %1456 = vrot.lane.b32.xlu2 %v3073_v56, %s2910_s22  ;;  %v1816_v0 = vrot.slane %v2784_v33, 1  ;;  %v2821_v14 = vld [vmem:[%s2948_s17] sm:$0xff]  }
  0xa4   : > { %1352 = vrot.lane.b32.xlu1 %v1318_v55, %s2911_s23  ;;  %v1066_v55 = vrot.slane %v1064_v52, 1  ;;  %v3428_v52 = vld [vmem:[%s2948_s17 + $0x48] sm:$0xff]   ;;  %v3436_v42 = vpack.c.b16 %v1492_v32, %v1492_v32 }
  0xa5   : > { %v825_v8 = vpop.permute.xlu2 %824  ;;  %1344 = vrot.lane.b32.xlu0 %v1306_v34, %s2911_s23 }
  0xa6   : > { %v708_v30 = vpop.permute.xlu1 %707  ;;  %v3394_v22 = vsel %vm1905_vm3, %v1882_v4, %v825_v8  ;;  %v1828_v8 = vrot.slane %v2790_v5, 1  ;;  %v1818_v5 = vsel %vm767_vm1, %v1816_v0, %v1817_v57  ;;  %v1576_v57 = vshll.u32 %v3436_v42, 16 }
  0xa7   : > { %v3403_v36 = vpop.permute.xlu0 %705 }
  0xa8   : > { %v1830_v2 = vsel %vm767_vm1, %v1828_v8, %v1829_v10  ;;  %v1874_v8 = vsel %vm1872_vm2, %v2821_v14, %v3333_v62  ;;  %v1281_v10 = vrot.slane %v3339_v26, 1  ;;  %v2770_v14 = vld [vmem:[%s2948_s17 + $0x18] sm:$0xf0] }
  0xab   : > { %1736 = vrot.lane.b32.xlu2 %v1675_v19, %s2912_s24  ;;  %v1067_v19 = vsel %vm494_vm0, %v1062_v16, %v1066_v55  ;;  %v1571_v16 = vshll.u32 %v3428_v52, 16  ;;  %v1894_v55 = vsel %vm1872_vm2, %v3073_v56, %v708_v30 }
  0xac   : > { %1728 = vrot.lane.b32.xlu1 %v1627_v44, %s2912_s24  ;;  %v1488_v44 = vunpack.c.l.b16 %v2542_v60  ;;  %v1569_v60 = vshrl.u32 %v3428_v52, 16 }
  0xad   : > { %v831_v34 = vpop.permute.xlu2 %830  ;;  %1464 = vrot.lane.b32.xlu0 %v3096_v27, %s2910_s22  ;;  %v2861_v27 = vor.u32 %v2860_v59, %v3237_v28  ;;  %v1293_v28 = vrot.slane %v3387_v20, 1  ;;  %v1573_v0 = vrot.slane %v1571_v16, 1  ;;  %v985_v20 = vunpack.c.l.b16 %v2487_v15 }
  0xae   : > { %v3417_v4 = vsel %vm1905_vm3, %v1888_v40, %v831_v34  ;;  %v714_v35 = vpop.permute.xlu1 %713  ;;  %v1292_v34 = vrot.slane %v2858_v11, 1  ;;  %v3447_v59 = vpack.c.b16 %v1488_v44, %v1488_v44  ;;  %v1525_v11 = vrot.slane %v1523_v53, 1 }
  0xaf   : > { %v3425_v46 = vpop.permute.xlu0 %711  ;;  %v1280_v30 = vrot.slane %v2861_v27, 1  ;;  %v1574_v27 = vor.u32 %v1573_v0, %v1569_v60  ;;  %v3463_v16 = vpack.c.b16 %v985_v20, %v985_v20  ;;  %v2491_v60 = vld [vmem:[%s2948_s17 + $0xb0] sm:$0x1]  ;;  %v2822_v0 = vld [vmem:[%s2948_s17 + $0x18] sm:$0xff]   ;;  %v3490_v20 = vld [vmem:[%s2948_s17 + $0x84] sm:$0xf0] }
  0xb0   : > { %v1294_v62 = vsel %vm767_vm1, %v1292_v34, %v1293_v28  ;;  %v1528_v44 = vshll.u32 %v3447_v59, 16  ;;  %v1880_v34 = vsel %vm1872_vm2, %v2974_v24, %v3353_v41  ;;  %v1878_v24 = vsel %vm1872_vm2, %v2822_v0, %v3326_v61  ;;  %v2764_v61 = vld [vmem:[%s2948_s17 + $0xa8] sm:$0xf0]  ;;  %v2759_v0 = vld [vmem:[%s2948_s17 + $0x78] sm:$0xe] }
  0xb1   : > { %v1282_v26 = vsel %vm767_vm1, %v1280_v30, %v1281_v10  ;;  %v1124_v30 = vshll.u32 %v3463_v16, 16  ;;  %v2771_v10 = vld [vmem:[%s2948_s17 + $0x18] sm:$0xe] }
  0xb3   : > { %1208 = vrot.lane.b32.xlu2 %v1067_v19, %s2909_s21 }
  0xb4   : > { %1864 = vrot.lane.b32.xlu1 %v1830_v2, %s2913_s25  ;;  %v1521_v2 = vshrl.u32 %v2714_v23, 16 }
  0xb5   : > { %v837_v33 = vpop.permute.xlu2 %836  ;;  %1856 = vrot.lane.b32.xlu0 %v1818_v5, %s2913_s25  ;;  %v1578_v5 = vrot.slane %v1576_v57, 1  ;;  %v3487_v57 = vld [vmem:[%s2948_s17 + $0x84] sm:$0xff]  }
  0xb6   : > { %v3444_v40 = vsel %vm1905_vm3, %v1894_v55, %v837_v33  ;;  %v817_v56 = vpop.permute.xlu1 %816  ;;  %v1900_v55 = vsel %vm1872_vm2, %v3104_v39, %v714_v35  ;;  %v1526_v53 = vor.u32 %v1525_v11, %v1521_v2  ;;  %v2776_v39 = vld [vmem:[%s2948_s17 + $0x48] sm:$0xf0]  ;;  %v2777_v35 = vld [vmem:[%s2948_s17 + $0x48] sm:$0xe] }
  0xb7   : > { %v1907_v19 = vsel %vm1905_vm3, %v1874_v8, %v817_v56  ;;  %v3457_v32 = vpop.permute.xlu0 %717  ;;  %v1579_v56 = vsel %vm494_vm0, %v1574_v27, %v1578_v5  ;;  %v1126_v27 = vrot.slane %v1124_v30, 1  ;;  %v2765_v5 = vld [vmem:[%s2948_s17 + $0xa8] sm:$0xe] }
  0xbb   : > { %1440 = vrot.lane.b32.xlu2 %v2714_v23, %s2910_s22  ;;  %v1530_v23 = vrot.slane %v1528_v44, 1  ;;  %v2772_v44 = vor.u32 %v2771_v10, %v2770_v14  ;;  %v2766_v10 = vor.u32 %v2765_v5, %v2764_v61  ;;  %v3529_v5 = vld [vmem:[%s2948_s17 + $0xb4] sm:$0xff]  }
  0xbc   : > { %1336 = vrot.lane.b32.xlu1 %v1294_v62, %s2911_s23  ;;  %v2778_v62 = vor.u32 %v2777_v35, %v2776_v39  ;;  %v1805_v39 = vrot.slane %v3436_v42, 1 }
  0xbd   : > { %v843_v33 = vpop.permute.xlu2 %842  ;;  %1328 = vrot.lane.b32.xlu0 %v1282_v26, %s2911_s23  ;;  %v1531_v11 = vsel %vm494_vm0, %v1526_v53, %v1530_v23  ;;  %v989_v26 = vunpack.c.l.b16 %v2491_v60  ;;  %v1792_v14 = vrot.slane %v2772_v44, 1  ;;  %v2758_v60 = vld [vmem:[%s2948_s17 + $0x78] sm:$0xf0] }
  0xbe   : > { %v3469_v15 = vsel %vm1905_vm3, %v1900_v55, %v843_v33  ;;  %v823_v28 = vpop.permute.xlu1 %822  ;;  %v2551_v33 = vld [vmem:[%s2948_s17 + $0x8c] sm:$0x1]  ;;  %v1804_v23 = vrot.slane %v2778_v62, 1  ;;  %v1319_v62 = vrot.slane %v2766_v10, 1 }
  0xbf   : > { %v1913_v8 = vsel %vm1905_vm3, %v1880_v34, %v823_v28  ;;  %v821_v41 = vpop.permute.xlu0 %820  ;;  %v2823_v34 = vld [vmem:[%s2948_s17 + $0x48] sm:$0xff]   ;;  %v1005_v30 = vpack.c.b16 %v989_v26, %v989_v26 }
  0xc0   : > { %v3493_v2 = vsel %vm1905_vm3, %v1878_v24, %v821_v41  ;;  %v1886_v28 = vsel %vm1872_vm2, %v2823_v34, %v3357_v58  ;;  %v1497_v24 = vunpack.c.l.b16 %v2551_v33 }
  0xc1   : > { %v1320_v44 = vrot.slane %v1005_v30, 1  ;;  %v1172_v26 = vshll.u32 %v1005_v30, 16 }
  0xc3   : > { %1720 = vrot.lane.b32.xlu2 %v1579_v56, %s2912_s24  ;;  %v1793_v56 = vrot.slane %v3447_v59, 1  ;;  %v1806_v59 = vsel %vm767_vm1, %v1804_v23, %v1805_v39  ;;  %v1321_v39 = vsel %vm767_vm1, %v1319_v62, %v1320_v44  ;;  %v1898_v44 = vsel %vm1872_vm2, %v3124_v7, %v3425_v46 }
  0xc4   : > { %1712 = vrot.lane.b32.xlu1 %v1531_v11, %s2912_s24  ;;  %v2760_v11 = vor.u32 %v2759_v0, %v2758_v60  ;;  %v2863_v60 = vld [vmem:[%s2948_s17 + $0xb4] sm:$0xe]  ;;  %v1896_v7 = vsel %vm1872_vm2, %v3049_v21, %v3324_v49  ;;  %v2746_v49 = vld [vmem:[%s2948_s17 + $0x18] sm:$0xf0] }
  0xc5   : > { %v929_v55 = vpop.permute.xlu2 %928  ;;  %1448 = vrot.lane.b32.xlu0 %v3428_v52, %s2910_s22  ;;  %v1884_v52 = vsel %vm1872_vm2, %v3007_v50, %v3306_v1  ;;  %v1794_v61 = vsel %vm767_vm1, %v1792_v14, %v1793_v56  ;;  %v2862_v50 = vld [vmem:[%s2948_s17 + $0xb4] sm:$0xf0]  ;;  %v1629_v56 = vshrl.u32 %v3487_v57, 16 }
  0xc6   : > { %v3505_v53 = vsel %vm1938_vm4, %v1907_v19, %v929_v55  ;;  %v829_v35 = vpop.permute.xlu1 %828  ;;  %v1127_v19 = vsel %vm494_vm0, %v3109_v43, %v1126_v27  ;;  %v3525_v43 = vpack.c.b16 %v1497_v24, %v1497_v24  ;;  %v1631_v27 = vshll.u32 %v3487_v57, 16 }
  0xc7   : > { %v1919_v58 = vsel %vm1905_vm3, %v1886_v28, %v829_v35  ;;  %v827_v42 = vpop.permute.xlu0 %826  ;;  %v1892_v55 = vsel %vm1872_vm2, %v3079_v63, %v3403_v36  ;;  %v1307_v34 = vrot.slane %v2760_v11, 1  ;;  %v1308_v28 = vrot.slane %v3463_v16, 1  ;;  %v2824_v36 = vld [vmem:[%s2948_s17 + $0x60] sm:$0xff]   ;;  %v2555_v16 = vld [vmem:[%s2948_s17 + $0xbc] sm:$0x1] }
  0xc8   : > { %v3520_v41 = vsel %vm1905_vm3, %v1884_v52, %v827_v42  ;;  %v1174_v35 = vrot.slane %v1172_v26, 1  ;;  %v1633_v30 = vrot.slane %v1631_v27, 1  ;;  %v1636_v63 = vshll.u32 %v3525_v43, 16  ;;  %v2866_v52 = vld [vmem:[%s2948_s17 + $0x84] sm:$0xe] }
  0xc9   : > { %v1501_v11 = vunpack.c.l.b16 %v2555_v16  ;;  %v1820_v16 = vrot.slane %v3525_v43, 1 }
  0xca   : > { %v1175_v24 = vsel %vm494_vm0, %v3128_v17, %v1174_v35  ;;  %v1634_v42 = vor.u32 %v1633_v30, %v1629_v56  ;;  %v1679_v17 = vshll.u32 %v3529_v5, 16  ;;  %v1677_v35 = vshrl.u32 %v3529_v5, 16 }
  0xcb   : > { %1218 = vrot.lane.b32.xlu2 %v1127_v19, %s2909_s21  ;;  %v1309_v19 = vsel %vm767_vm1, %v1307_v34, %v1308_v28  ;;  %v2864_v34 = vor.u32 %v2863_v60, %v2862_v50 }
  0xcc   : > { %1848 = vrot.lane.b32.xlu1 %v1806_v59, %s2913_s25  ;;  %v1638_v59 = vrot.slane %v1636_v63, 1  ;;  %v1681_v56 = vrot.slane %v1679_v17, 1  ;;  %v3609_v17 = vld [vmem:[%s2948_s17 + $0x54] sm:$0xff]  }
  0xcd   : > { %v935_v1 = vpop.permute.xlu2 %934  ;;  %1840 = vrot.lane.b32.xlu0 %v1794_v61, %s2913_s25  ;;  %v2483_v61 = vld [vmem:[%s2948_s17 + $0x50] sm:$0x1]  ;;  %v1831_v30 = vrot.slane %v2864_v34, 1  ;;  %v3616_v34 = vld [vmem:[%s2948_s17 + $0x24] sm:$0xff]  }
  0xce   : > { %v3537_v33 = vsel %vm1938_vm4, %v1913_v8, %v935_v1  ;;  %v835_v23 = vpop.permute.xlu1 %834  ;;  %v1890_v8 = vsel %vm1872_vm2, %v2824_v36, %v3289_v12  ;;  %v1639_v1 = vsel %vm494_vm0, %v1634_v42, %v1638_v59 }
  0xcf   : > { %v1925_v14 = vsel %vm1905_vm3, %v1892_v55, %v835_v23  ;;  %v833_v10 = vpop.permute.xlu0 %832  ;;  %v1517_v55 = vpack.c.b16 %v1501_v11, %v1501_v11  ;;  %v2867_v23 = vor.u32 %v2866_v52, %v3490_v20  ;;  %v2825_v11 = vld [vmem:[%s2948_s17 + $0xa8] sm:$0xff]  }
  0xd0   : > { %v3551_v0 = vsel %vm1905_vm3, %v1890_v8, %v833_v10  ;;  %v2747_v8 = vld [vmem:[%s2948_s17 + $0x18] sm:$0xe] }
  0xd1   : > { %v1832_v63 = vrot.slane %v1517_v55, 1  ;;  %v1684_v36 = vshll.u32 %v1517_v55, 16  ;;  %v1819_v20 = vrot.slane %v2867_v23, 1  ;;  %v2748_v59 = vor.u32 %v2747_v8, %v2746_v49  ;;  %v2543_v49 = vld [vmem:[%s2948_s17 + $0x2c] sm:$0x1] }
  0xd3   : > { %1354 = vrot.lane.b32.xlu2 %v1321_v39, %s2911_s23  ;;  %v981_v39 = vunpack.c.l.b16 %v2483_v61  ;;  %v1833_v42 = vsel %vm767_vm1, %v1831_v30, %v1832_v63  ;;  %v1686_v43 = vrot.slane %v1684_v36, 1  ;;  %v3612_v61 = vld [vmem:[%s2948_s17 + $0x54] sm:$0xf0]  ;;  %v2752_v30 = vld [vmem:[%s2948_s17 + $0x48] sm:$0xf0] }
  0xd4   : > { %1346 = vrot.lane.b32.xlu1 %v1309_v19, %s2911_s23  ;;  %v1904_v19 = vsel %vm1872_vm2, %v3143_v48, %v3457_v32  ;;  %v1902_v48 = vsel %vm1872_vm2, %v2825_v11, %v3349_v13  ;;  %v2753_v63 = vld [vmem:[%s2948_s17 + $0x48] sm:$0xe]  ;;  %v2869_v36 = vld [vmem:[%s2948_s17 + $0x24] sm:$0xe] }
  0xd5   : > { %v941_v12 = vpop.permute.xlu2 %940  ;;  %1226 = vrot.lane.b32.xlu0 %v1175_v24, %s2909_s21  ;;  %v3590_v60 = vpack.c.b16 %v981_v39, %v981_v39  ;;  %v1682_v24 = vor.u32 %v1681_v56, %v1677_v35  ;;  %v2547_v35 = vld [vmem:[%s2948_s17 + $0x5c] sm:$0x1] }
  0xd6   : > { %v3560_v62 = vsel %vm1938_vm4, %v1919_v58, %v941_v12  ;;  %v841_v26 = vpop.permute.xlu1 %840  ;;  %v2479_v58 = vld [vmem:[%s2948_s17 + $0x20] sm:$0x1]  ;;  %v1821_v12 = vsel %vm767_vm1, %v1819_v20, %v1820_v16  ;;  %v1493_v16 = vunpack.c.l.b16 %v2547_v35  ;;  %v1179_v35 = vshll.u32 %v3314_v47, 16 }
  0xd7   : > { %v3569_v27 = vsel %vm1905_vm3, %v1898_v44, %v841_v26  ;;  %v839_v46 = vpop.permute.xlu0 %838  ;;  %v977_v50 = vunpack.c.l.b16 %v2479_v58  ;;  %v1076_v44 = vshll.u32 %v3590_v60, 16  ;;  %v1687_v13 = vsel %vm494_vm0, %v1682_v24, %v1686_v43  ;;  %v2868_v58 = vld [vmem:[%s2948_s17 + $0x24] sm:$0xf0] }
  0xd8   : > { %v3577_v28 = vsel %vm1905_vm3, %v1896_v7, %v839_v46  ;;  %v3648_v43 = vpack.c.b16 %v1493_v16, %v1493_v16 }
  0xd9   : > { %v993_v52 = vpack.c.b16 %v977_v50, %v977_v50  ;;  %v1078_v46 = vrot.slane %v1076_v44, 1 }
  0xdb   : > { %1730 = vrot.lane.b32.xlu2 %v1639_v1, %s2912_s24  ;;  %v1028_v26 = vshll.u32 %v993_v52, 16  ;;  %v1283_v1 = vrot.slane %v2748_v59, 1  ;;  %v1284_v55 = vrot.slane %v993_v52, 1  ;;  %v1079_v20 = vsel %vm494_vm0, %v3039_v9, %v1078_v46  ;;  %v2492_v52 = vld [vmem:[%s2948_s17 + $0xbc] sm:$0x1] }
  0xdc   : > { %1466 = vrot.lane.b32.xlu1 %v3529_v5, %s2910_s22  ;;  %v1535_v59 = vshll.u32 %v3616_v34, 16  ;;  %v990_v44 = vunpack.c.l.b16 %v2492_v52  ;;  %v1181_v52 = vrot.slane %v1179_v35, 1  ;;  %v2552_v35 = vld [vmem:[%s2948_s17 + $0x98] sm:$0x1] }
  0xdd   : > { %v947_v21 = vpop.permute.xlu2 %946  ;;  %1458 = vrot.lane.b32.xlu0 %v3487_v57, %s2910_s22  ;;  %v1030_v39 = vrot.slane %v1028_v26, 1  ;;  %v1285_v50 = vsel %vm767_vm1, %v1283_v1, %v1284_v55 }
  0xde   : > { %v3587_v10 = vsel %vm1938_vm4, %v1925_v14, %v947_v21  ;;  %v847_v5 = vpop.permute.xlu1 %846 }
  0xdf   : > { %v1937_v14 = vsel %vm1905_vm3, %v1904_v19, %v847_v5  ;;  %v845_v32 = vpop.permute.xlu0 %844  ;;  %v1031_v19 = vsel %vm494_vm0, %v2986_v31, %v1030_v39  ;;  %v1489_v5 = vunpack.c.l.b16 %v2543_v49  ;;  %v2488_v31 = vld [vmem:[%s2948_s17 + $0x8c] sm:$0x1]  ;;  %v1537_v39 = vrot.slane %v1535_v59, 1 }
  0xe0   : > { %v3603_v57 = vsel %vm1905_vm3, %v1902_v48, %v845_v32  ;;  %v2870_v48 = vor.u32 %v2869_v36, %v2868_v58  ;;  %v1588_v58 = vshll.u32 %v3648_v43, 16  ;;  %v986_v46 = vunpack.c.l.b16 %v2488_v31 }
  0xe1   : > { %v1131_v36 = vshll.u32 %v3300_v25, 16 }
  0xe2   : > { %v1590_v49 = vrot.slane %v1588_v58, 1 }
  0xe3   : > { %1866 = vrot.lane.b32.xlu2 %v1833_v42, %s2913_s25  ;;  %v1133_v59 = vrot.slane %v1131_v36, 1 }
  0xe4   : > { %1858 = vrot.lane.b32.xlu1 %v1821_v12, %s2913_s25  ;;  %v1296_v12 = vrot.slane %v3590_v60, 1  ;;  %v1533_v60 = vshrl.u32 %v3616_v34, 16 }
  0xe5   : > { %v3620_v7 = vpop.permute.xlu2 %952  ;;  %1738 = vrot.lane.b32.xlu0 %v1687_v13, %s2912_s24  ;;  %v1581_v13 = vshrl.u32 %v3609_v17, 16 }
  0xe6   : > { %v933_v23 = vpop.permute.xlu1 %932 }
  0xe7   : > { %v3626_v56 = vsel %vm1938_vm4, %v3493_v2, %v933_v23  ;;  %v931_v21 = vpop.permute.xlu0 %930  ;;  %v2754_v2 = vor.u32 %v2753_v63, %v2752_v30  ;;  %v3669_v63 = vpack.c.b16 %v990_v44, %v990_v44 }
  0xe8   : > { %v3635_v8 = vsel %vm1938_vm4, %v3383_v37, %v931_v21  ;;  %v1583_v37 = vshll.u32 %v3609_v17, 16 }
  0xe9   : > { %v1295_v11 = vrot.slane %v2754_v2, 1 }
  0xea   : > { %v1585_v55 = vrot.slane %v1583_v37, 1 }
  0xeb   : > { %1330 = vrot.lane.b32.xlu2 %v1285_v50, %s2911_s23  ;;  %v1297_v50 = vsel %vm767_vm1, %v1295_v11, %v1296_v12  ;;  %v2875_v12 = vld [vmem:[%s2948_s17 + $0xb4] sm:$0xe] }
  0xec   : > { %1210 = vrot.lane.b32.xlu1 %v1079_v20, %s2909_s21  ;;  %v3677_v20 = vpack.c.b16 %v986_v46, %v986_v46  ;;  %v2556_v46 = vld [vmem:[%s2948_s17 + $0xc8] sm:$0x1] }
  0xed   : > { %v959_v24 = vpop.permute.xlu2 %958  ;;  %1202 = vrot.lane.b32.xlu0 %v1031_v19, %s2909_s21  ;;  %v1538_v19 = vor.u32 %v1537_v39, %v1533_v60  ;;  %v1808_v39 = vrot.slane %v3648_v43, 1 }
  0xee   : > { %v3645_v42 = vsel %vm1938_vm4, %v1937_v14, %v959_v24  ;;  %v939_v9 = vpop.permute.xlu1 %938  ;;  %v1505_v14 = vpack.c.b16 %v1489_v5, %v1489_v5  ;;  %v1177_v24 = vshrl.u32 %v3314_v47, 16  ;;  %v1136_v31 = vshll.u32 %v3677_v20, 16 }
  0xef   : > { %v3655_v32 = vsel %vm1938_vm4, %v3520_v41, %v939_v9  ;;  %v937_v26 = vpop.permute.xlu0 %936  ;;  %v1795_v41 = vrot.slane %v2870_v48, 1  ;;  %v1129_v9 = vshrl.u32 %v3300_v25, 16 }
  0xf0   : > { %v3661_v1 = vsel %vm1938_vm4, %v3394_v22, %v937_v26  ;;  %v1796_v23 = vrot.slane %v1505_v14, 1  ;;  %v1540_v30 = vshll.u32 %v1505_v14, 16  ;;  %v2872_v22 = vld [vmem:[%s2948_s17 + $0x54] sm:$0xe]  ;;  %v2140_v14 = vld [vmem:[%s4199_s1 + $0x10] sm:$0x3]  ;;  %v1182_v44 = vor.u32 %v1181_v52, %v1177_v24 }
  0xf1   : > { %v2873_v47 = vor.u32 %v2872_v22, %v3612_v61  ;;  %v1134_v58 = vor.u32 %v1133_v59, %v1129_v9  ;;  %v1502_v22 = vunpack.c.l.b16 %v2556_v46  ;;  %v2719_v24 = vld [vmem:[%s2948_s17 + $0x90] sm:$0xff]  }
  0xf2   : > { %v1797_v2 = vsel %vm767_vm1, %v1795_v41, %v1796_v23  ;;  %v1542_v5 = vrot.slane %v1540_v30, 1  ;;  %v1138_v41 = vrot.slane %v1136_v31, 1  ;;  %v1643_v9 = vshll.u32 %v2719_v24, 16 }
  0xf3   : > { %1450 = vrot.lane.b32.xlu2 %v3609_v17, %s2910_s22  ;;  %v1586_v17 = vor.u32 %v1585_v55, %v1581_v13  ;;  %v2154_v13 = vunpack.c.l.b16 %v2140_v14  ;;  %v1807_v60 = vrot.slane %v2873_v47, 1  ;;  %v1189_v47 = vshrl.u32 %v3336_v6, 16 }
  0xf4   : > { %1442 = vrot.lane.b32.xlu1 %v3616_v34, %s2910_s22  ;;  %v1184_v34 = vshll.u32 %v3669_v63, 16  ;;  %v1543_v25 = vsel %vm494_vm0, %v1538_v19, %v1542_v5  ;;  %v1139_v43 = vsel %vm494_vm0, %v1134_v58, %v1138_v41  ;;  %v1498_v19 = vunpack.c.l.b16 %v2552_v35 }
  0xf5   : > { %v3675_v21 = vpop.permute.xlu2 %1224  ;;  %1338 = vrot.lane.b32.xlu0 %v1297_v50, %s2911_s23  ;;  %v1591_v48 = vsel %vm494_vm0, %v1586_v17, %v1590_v49  ;;  %v2157_v61 = vpack.c.b16 %v2154_v13, %v2154_v13  ;;  %v1191_v5 = vshll.u32 %v3336_v6, 16  ;;  %v1641_v58 = vshrl.u32 %v2719_v24, 16 }
  0xf6   : > { %v3680_v16 = vpop.permute.xlu1 %944  ;;  %v1186_v26 = vrot.slane %v1184_v34, 1  ;;  %v3726_v34 = vpack.c.b16 %v1502_v22, %v1502_v22  ;;  %v3733_v31 = vpack.c.b16 %v1498_v19, %v1498_v19  ;;  %v1645_v41 = vrot.slane %v1643_v9, 1  ;;  %v2881_v9 = vld [vmem:[%s2948_s17 + $0x54] sm:$0xe] }
  0xf7   : > { %v943_v37 = vpop.permute.xlu0 %942  ;;  %v2195_v36 = vsel %vm2193_vm5, %v2157_v61, 0 }
  0xf8   : > { %v3688_v11 = vsel %vm1938_vm4, %v3417_v4, %v943_v37  ;;  %v2878_v4 = vld [vmem:[%s2948_s17 + $0x84] sm:$0xe]  ;;  %v1187_v30 = vsel %vm494_vm0, %v1182_v44, %v1186_v26  ;;  %2795 = vmatpush.bf16.msra.mxu2 %v2195_v36  ;;  %2796 = vmatpush.bf16.msra.mxu3 %v2195_v36  ;;  %v2480_v37 = vld [vmem:[%s2948_s17 + $0x2c] sm:$0x1]  ;;  %v1696_v26 = vshll.u32 %v3726_v34, 16 }
  0xf9   : > { %2202 = vmatpush.bf16.msra.mxu0 %v2195_v36  ;;  %2794 = vmatpush.bf16.msra.mxu1 %v2195_v36  ;;  %v2879_v52 = vor.u32 %v2878_v4, %v3303_v45  ;;  %v2601_v45 = vld [vmem:[%s4199_s1] sm:$0xff]  ;;  %v978_v4 = vunpack.c.l.b16 %v2480_v37  ;;  %v2484_v37 = vld [vmem:[%s2948_s17 + $0x5c] sm:$0x1] }
  0xfb   : > { %1842 = vrot.lane.b32.xlu2 %v1797_v2, %s2913_s25  ;;  %v2876_v2 = vor.u32 %v2875_v12, %v3317_v54  ;;  %v1193_v12 = vrot.slane %v1191_v5, 1 }
  0xfc   : > { %1722 = vrot.lane.b32.xlu1 %v1591_v48, %s2912_s24  ;;  %v1323_v48 = vrot.slane %v3669_v63, 1  ;;  %v1311_v63 = vrot.slane %v3677_v20, 1 }
  0xfd   : > { %v3701_v55 = vpop.permute.xlu2 %1456  ;;  %1714 = vrot.lane.b32.xlu0 %v1543_v25, %s2912_s24  ;;  %v1322_v59 = vrot.slane %v2876_v2, 1  ;;  %v1310_v25 = vrot.slane %v2879_v52, 1  ;;  %v3754_v20 = vor.u32 %v1193_v12, %v1189_v47  ;;  %v2785_v2 = vld [vmem:[%s2948_s17 + $0x90] sm:$0xf0]  ;;  %v2786_v52 = vld [vmem:[%s2948_s17 + $0x90] sm:$0xe] }
  0xfe   : > { %v951_v23 = vpop.permute.xlu1 %950  ;;  %v2884_v47 = vld [vmem:[%s2948_s17 + $0x24] sm:$0xe] }
  0xff   : > { %v3709_v50 = vsel %vm1938_vm4, %v3577_v28, %v951_v23  ;;  %v949_v17 = vpop.permute.xlu0 %948  ;;  %v2602_v28 = vld [vmem:[%s4199_s1 + $0x8] sm:$0xff]  ;;  %v1324_v61 = vsel %vm767_vm1, %v1322_v59, %v1323_v48  ;;  %v1648_v23 = vshll.u32 %v3733_v31, 16 }
 0x100   : > { %v3714_v49 = vsel %vm1938_vm4, %v3444_v40, %v949_v17  ;;  %v1809_v40 = vsel %vm767_vm1, %v1807_v60, %v1808_v39  ;;  %2798 = vmatpush.bf16.msra.mxu2 %v2602_v28  ;;  %2799 = vmatpush.bf16.msra.mxu3 %v2602_v28  ;;  %v1698_v60 = vrot.slane %v1696_v26, 1  ;;  %v3757_v39 = vpack.c.b16 %v978_v4, %v978_v4  ;;  %v2791_v17 = vld [vmem:[%s2948_s17 + $0xc0] sm:$0xf0] }
 0x101   : > { %2203 = vmatpush.bf16.msra.mxu0 %v2602_v28  ;;  %2797 = vmatpush.bf16.msra.mxu1 %v2602_v28  ;;  %v1650_v22 = vrot.slane %v1648_v23, 1  ;;  %v1033_v28 = vshrl.u32 %v3251_v29, 16  ;;  %v1835_v4 = vrot.slane %v3726_v34, 1  ;;  %v1083_v23 = vshll.u32 %v3262_v3, 16 }
 0x102   : > { %v1699_v19 = vsel %vm494_vm0, %v3754_v20, %v1698_v60  ;;  %v2882_v60 = vor.u32 %v2881_v9, %v3265_v38 }
 0x103   : > { %1228 = vrot.lane.b32.xlu2 %v1187_v30, %s2909_s21  ;;  %v1646_v30 = vor.u32 %v1645_v41, %v1641_v58  ;;  %v1823_v41 = vrot.slane %v3733_v31, 1  ;;  %v1085_v38 = vrot.slane %v1083_v23, 1  ;;  %v2779_v23 = vld [vmem:[%s2948_s17 + $0x60] sm:$0xf0] }
 0x104   : > { %1220 = vrot.lane.b32.xlu1 %v1139_v43, %s2909_s21  ;;  %2801 = vmatpush.bf16.msra.mxu2 %v2601_v45  ;;  %v2792_v43 = vld [vmem:[%s2948_s17 + $0xc0] sm:$0xe] }
 0x105   : > { %v3729_v54 = vpop.permute.xlu2 %1736  ;;  %1850 = vrot.lane.b32.xlu0 %v1809_v40, %s2913_s25  ;;  %2802 = vmatpush.bf16.msra.mxu3 %v2601_v45  ;;  %v1651_v59 = vsel %vm494_vm0, %v1646_v30, %v1650_v22  ;;  %v2793_v48 = vor.u32 %v2792_v43, %v2791_v17  ;;  %v3792_v30 = vld [vmem:[%s2948_s17 + $0x30] sm:$0xff]   ;;  %v2885_v17 = vor.u32 %v2884_v47, %v3254_v51 }
 0x106   : > { %v957_v14 = vpop.permute.xlu1 %956  ;;  %2204 = vmatpush.bf16.msra.mxu0 %v2601_v45  ;;  %2800 = vmatpush.bf16.msra.mxu1 %v2601_v45  ;;  %v2787_v45 = vor.u32 %v2786_v52, %v2785_v2  ;;  %v1547_v2 = vshll.u32 %v3792_v30, 16  ;;  %v1287_v52 = vrot.slane %v3757_v39, 1  ;;  %v1545_v9 = vshrl.u32 %v3792_v30, 16 }
 0x107   : > { %v3742_v44 = vsel %vm1938_vm4, %v3603_v57, %v957_v14  ;;  %v955_v13 = vpop.permute.xlu0 %954  ;;  %v1035_v57 = vshll.u32 %v3251_v29, 16  ;;  %v2544_v29 = vld [vmem:[%s2948_s17 + $0x38] sm:$0x1]  ;;  %v1834_v26 = vrot.slane %v2793_v48, 1  ;;  %v1286_v51 = vrot.slane %v2885_v17, 1 }
 0x108   : > { %v3748_v46 = vsel %vm1938_vm4, %v3469_v15, %v955_v13  ;;  %v1312_v15 = vsel %vm767_vm1, %v1310_v25, %v1311_v63  ;;  %v982_v25 = vunpack.c.l.b16 %v2484_v37  ;;  %v1822_v58 = vrot.slane %v2787_v45, 1  ;;  %v2773_v17 = vld [vmem:[%s2948_s17 + $0x30] sm:$0xf0] }
 0x109   : > { %v1037_v5 = vrot.slane %v1035_v57, 1  ;;  %v1836_v34 = vsel %vm767_vm1, %v1834_v26, %v1835_v4  ;;  %v1288_v26 = vsel %vm767_vm1, %v1286_v51, %v1287_v52 }
 0x10b   : > { %1460 = vrot.lane.b32.xlu2 %v2719_v24, %s2910_s22  ;;  %v1040_v24 = vshll.u32 %v3757_v39, 16  ;;  %v1038_v12 = vor.u32 %v1037_v5, %v1033_v28  ;;  %v1081_v28 = vshrl.u32 %v3262_v3, 16 }
 0x10c   : > { %1356 = vrot.lane.b32.xlu1 %v1324_v61, %s2911_s23  ;;  %v1490_v61 = vunpack.c.l.b16 %v2544_v29  ;;  %v1956_v29 = vsel %vm1938_vm4, %v3551_v0, %v3680_v16 }
 0x10d   : > { %v3760_v35 = vpop.permute.xlu2 %1208  ;;  %1348 = vrot.lane.b32.xlu0 %v1312_v15, %s2911_s23  ;;  %v1042_v14 = vrot.slane %v1040_v24, 1  ;;  %v998_v15 = vpack.c.b16 %v982_v25, %v982_v25  ;;  %v1086_v45 = vor.u32 %v1085_v38, %v1081_v28 }
 0x10e   : > { %v3763_v36 = vpop.permute.xlu1 %1216  ;;  %v3798_v43 = vpack.c.b16 %v1490_v61, %v1490_v61 }
 0x10f   : > { %v3773_v40 = vpop.permute.xlu0 %1200  ;;  %v1043_v57 = vsel %vm494_vm0, %v1038_v12, %v1042_v14  ;;  %v1299_v31 = vrot.slane %v998_v15, 1  ;;  %v1088_v5 = vshll.u32 %v998_v15, 16  ;;  %v1964_v12 = vsel %vm1938_vm4, %v3569_v27, %v3620_v7  ;;  %v2548_v14 = vld [vmem:[%s2948_s17 + $0x68] sm:$0x1] }
 0x110   : > { %v1552_v48 = vshll.u32 %v3798_v43, 16  ;;  %v1997_v25 = vsel %vm1971_vm6, %v1964_v12, %v3675_v21  ;;  %v1989_v21 = vsel %vm1971_vm6, %v1956_v29, %v3763_v36  ;;  %v1494_v16 = vunpack.c.l.b16 %v2548_v14  ;;  %v2761_v12 = vld [vmem:[%s2948_s17 + $0x90] sm:$0xf0] }
 0x111   : > { %v1090_v47 = vrot.slane %v1088_v5, 1 }
 0x112   : > { %v1554_v7 = vrot.slane %v1552_v48, 1 }
 0x113   : > { %1740 = vrot.lane.b32.xlu2 %v1699_v19, %s2912_s24  ;;  %v1298_v19 = vrot.slane %v2882_v60, 1  ;;  %v1091_v0 = vsel %vm494_vm0, %v1086_v45, %v1090_v47 }
 0x114   : > { %1732 = vrot.lane.b32.xlu1 %v1651_v59, %s2912_s24  ;;  %v1549_v59 = vrot.slane %v1547_v2, 1 }
 0x115   : > { %v3782_v63 = vpop.permute.xlu2 %1440  ;;  %1468 = vrot.lane.b32.xlu0 %v3336_v6, %s2910_s22  ;;  %v1824_v6 = vsel %vm767_vm1, %v1822_v58, %v1823_v41  ;;  %v1300_v3 = vsel %vm767_vm1, %v1298_v19, %v1299_v31  ;;  %v2717_v58 = vld [vmem:[%s2948_s17 + $0x60] sm:$0xff]   ;;  %v1510_v19 = vpack.c.b16 %v1494_v16, %v1494_v16  ;;  %v3864_v16 = vld [vmem:[%s2948_s17 + $0xcc] sm:$0xff]  }
 0x116   : > { %v1353_v13 = vpop.permute.xlu1 %1352  ;;  %v1550_v27 = vor.u32 %v1549_v59, %v1545_v9  ;;  %v1595_v36 = vshll.u32 %v2717_v58, 16 }
 0x117   : > { %v1345_v22 = vpop.permute.xlu0 %1344  ;;  %v2030_v4 = vsel %vm2004_vm7, %v1997_v25, %v1353_v13  ;;  %v1600_v45 = vshll.u32 %v1510_v19, 16  ;;  %v1799_v25 = vrot.slane %v3798_v43, 1 }
 0x118   : > { %v2022_v61 = vsel %vm2004_vm7, %v1989_v21, %v1345_v22  ;;  %v2774_v22 = vld [vmem:[%s2948_s17 + $0x30] sm:$0xe]  ;;  %v1597_v59 = vrot.slane %v1595_v36, 1 }
 0x119   : > { %v2055_v31 = vsel %vm2037_vm8, %v2022_v61, %v3701_v55  ;;  %v2775_v52 = vor.u32 %v2774_v22, %v2773_v17  ;;  %v1593_v55 = vshrl.u32 %v2717_v58, 16 }
 0x11b   : > { %1204 = vrot.lane.b32.xlu2 %v1043_v57, %s2909_s21  ;;  %v2780_v57 = vld [vmem:[%s2948_s17 + $0x60] sm:$0xe]  ;;  %v1798_v14 = vrot.slane %v2775_v52, 1 }
 0x11c   : > { %1868 = vrot.lane.b32.xlu1 %v1836_v34, %s2913_s25  ;;  %v1555_v34 = vsel %vm494_vm0, %v1550_v27, %v1554_v7  ;;  %v2781_v28 = vor.u32 %v2780_v57, %v2779_v23  ;;  %v1602_v7 = vrot.slane %v1600_v45, 1 }
 0x11d   : > { %v3803_v24 = vpop.permute.xlu2 %1720  ;;  %1860 = vrot.lane.b32.xlu0 %v1824_v6, %s2913_s25  ;;  %v2493_v6 = vld [vmem:[%s2948_s17 + $0xc8] sm:$0x1] }
 0x11e   : > { %v1729_v37 = vpop.permute.xlu1 %1728  ;;  %v991_v9 = vunpack.c.l.b16 %v2493_v6  ;;  %v1810_v48 = vrot.slane %v2781_v28, 1  ;;  %v2767_v6 = vld [vmem:[%s2948_s17 + $0xc0] sm:$0xf0] }
 0x11f   : > { %v1465_v39 = vpop.permute.xlu0 %1464  ;;  %v2088_v38 = vsel %vm2070_vm9, %v2055_v31, %v1729_v37  ;;  %v2768_v31 = vld [vmem:[%s2948_s17 + $0xc0] sm:$0xe] }
 0x120   : > { %v2063_v41 = vsel %vm2037_vm8, %v2030_v4, %v1465_v39  ;;  %v2762_v39 = vld [vmem:[%s2948_s17 + $0x90] sm:$0xe]  ;;  %v3855_v29 = vpack.c.b16 %v991_v9, %v991_v9  ;;  %v2769_v9 = vor.u32 %v2768_v31, %v2767_v6  ;;  %v2890_v31 = vld [vmem:[%s2948_s17 + $0xcc] sm:$0xe] }
 0x121   : > { %v2096_v60 = vsel %vm2070_vm9, %v2063_v41, %v3729_v54  ;;  %v2489_v54 = vld [vmem:[%s2948_s17 + $0x98] sm:$0x1]  ;;  %v2763_v21 = vor.u32 %v2762_v39, %v2761_v12  ;;  %v1703_v12 = vshll.u32 %v3864_v16, 16 }
 0x122   : > { %v987_v37 = vunpack.c.l.b16 %v2489_v54  ;;  %v1196_v43 = vshll.u32 %v3855_v29, 16  ;;  %v1325_v39 = vrot.slane %v2769_v9, 1 }
 0x123   : > { %1340 = vrot.lane.b32.xlu2 %v1300_v3, %s2911_s23  ;;  %v1811_v3 = vrot.slane %v1510_v19, 1  ;;  %v1313_v23 = vrot.slane %v2763_v21, 1 }
 0x124   : > { %1332 = vrot.lane.b32.xlu1 %v1288_v26, %s2911_s23  ;;  %v1598_v26 = vor.u32 %v1597_v59, %v1593_v55  ;;  %v1198_v17 = vrot.slane %v1196_v43, 1 }
 0x125   : > { %v3829_v13 = vpop.permute.xlu2 %1218  ;;  %1212 = vrot.lane.b32.xlu0 %v1091_v0, %s2909_s21  ;;  %v1812_v27 = vsel %vm767_vm1, %v1810_v48, %v1811_v3  ;;  %v1800_v0 = vsel %vm767_vm1, %v1798_v14, %v1799_v25  ;;  %v1973_v3 = vsel %vm1971_vm6, %v3505_v53, %v3773_v40  ;;  %v1326_v25 = vrot.slane %v3855_v29, 1 }
 0x126   : > { %v1865_v15 = vpop.permute.xlu1 %1864  ;;  %v1603_v61 = vsel %vm494_vm0, %v1598_v26, %v1602_v7  ;;  %v1199_v52 = vsel %vm494_vm0, %v3754_v20, %v1198_v17  ;;  %v2485_v20 = vld [vmem:[%s2948_s17 + $0x68] sm:$0x1]  ;;  %v1705_v29 = vrot.slane %v1703_v12, 1 }
 0x127   : > { %v2129_v2 = vsel %vm2103_vm10, %v2096_v60, %v1865_v15  ;;  %v1857_v5 = vpop.permute.xlu0 %1856  ;;  %v3871_v15 = vld [vmem:[%s2948_s17 + $0x9c] sm:$0xff]   ;;  %v983_v21 = vunpack.c.l.b16 %v2485_v20 }
 0x128   : > { %2594 = vmatmul.msk.bf16.vlgmr.msra.gmra.mxu3 %vm2160_vm11, %v2129_v2  ;;  %v2121_v51 = vsel %vm2103_vm10, %v2088_v38, %v1857_v5  ;;  %v2886_v60 = vld [vmem:[%s2948_s17 + $0x9c] sm:$0xf0]  ;;  %v2557_v2 = vld [vmem:[%s2948_s17 + $0xd4] sm:$0x1]  ;;  %v2553_v38 = vld [vmem:[%s2948_s17 + $0xa4] sm:$0x1]  ;;  %v1981_v5 = vsel %vm1971_vm6, %v3661_v1, %v3760_v35 }
 0x129   : > { %2590 = vmatmul.msk.bf16.vlgmr.msra.gmra.mxu2 %vm2160_vm11, %v2121_v51  ;;  %v2887_v51 = vld [vmem:[%s2948_s17 + $0x9c] sm:$0xe]  ;;  %v1503_v55 = vunpack.c.l.b16 %v2557_v2  ;;  %v1499_v48 = vunpack.c.l.b16 %v2553_v38  ;;  %v3924_v6 = vpack.c.b16 %v983_v21, %v983_v21  ;;  %v2756_v20 = vld [vmem:[%s2948_s17 + $0x60] sm:$0xe]  ;;  %v2750_v21 = vld [vmem:[%s2948_s17 + $0x30] sm:$0xe] }
 0x12b   : > { %1716 = vrot.lane.b32.xlu2 %v1555_v34, %s2912_s24  ;;  %v3903_v14 = vpack.c.b16 %v1503_v55, %v1503_v55  ;;  %v1515_v26 = vpack.c.b16 %v1499_v48, %v1499_v48  ;;  %v3943_v48 = vld [vmem:[%s2948_s17 + $0x3c] sm:$0xf0] }
 0x12c   : > { %1452 = vrot.lane.b32.xlu1 %v2717_v58, %s2910_s22  ;;  %v1003_v58 = vpack.c.b16 %v987_v37, %v987_v37 }
 0x12d   : > { %v3850_v47 = vpop.permute.xlu2 %1354  ;;  %1444 = vrot.lane.b32.xlu0 %v3792_v30, %s2910_s22  ;;  %v3867_v30 = vld [vmem:[%s2948_s17 + $0xcc] sm:$0xf0]  ;;  %v1826_v17 = vrot.slane %v1515_v26, 1 }
 0x12e   : > { %v1337_v4 = vpop.permute.xlu1 %1336  ;;  %v1314_v57 = vrot.slane %v1003_v58, 1  ;;  %v1148_v36 = vshll.u32 %v1003_v58, 16  ;;  %v2888_v58 = vor.u32 %v2887_v51, %v2886_v60 }
 0x12f   : > { %v1329_v41 = vpop.permute.xlu0 %1328  ;;  %v2014_v59 = vsel %vm2004_vm7, %v1981_v5, %v1337_v4  ;;  %v2481_v4 = vld [vmem:[%s2948_s17 + $0x38] sm:$0x1] }
 0x130   : > { %v1315_v19 = vsel %vm767_vm1, %v1313_v23, %v1314_v57  ;;  %v1150_v28 = vrot.slane %v1148_v36, 1  ;;  %v2006_v35 = vsel %vm2004_vm7, %v1973_v3, %v1329_v41  ;;  %v979_v23 = vunpack.c.l.b16 %v2481_v4 }
 0x131   : > { %v1653_v57 = vshrl.u32 %v3871_v15, 16  ;;  %v1825_v60 = vrot.slane %v2888_v58, 1  ;;  %v2749_v58 = vld [vmem:[%s2948_s17 + $0x30] sm:$0xf0] }
 0x132   : > { %v1151_v1 = vsel %vm494_vm0, %v3156_v18, %v1150_v28  ;;  %v1655_v18 = vshll.u32 %v3871_v15, 16  ;;  %v3929_v28 = vpack.c.b16 %v979_v23, %v979_v23 }
 0x133   : > { %1852 = vrot.lane.b32.xlu2 %v1812_v27, %s2913_s25  ;;  %v2039_v27 = vsel %vm2037_vm8, %v2006_v35, %v3782_v63  ;;  %v1327_v63 = vsel %vm767_vm1, %v1325_v39, %v1326_v25  ;;  %v2755_v35 = vld [vmem:[%s2948_s17 + $0x60] sm:$0xf0]  ;;  %v3951_v39 = vld [vmem:[%s2948_s17 + $0x6c] sm:$0xff]  }
 0x134   : > { %1844 = vrot.lane.b32.xlu1 %v1800_v0, %s2913_s25  ;;  %v1657_v36 = vrot.slane %v1655_v18, 1  ;;  %v1052_v55 = vshll.u32 %v3929_v28, 16  ;;  %v2545_v18 = vld [vmem:[%s2948_s17 + $0x44] sm:$0x1]  ;;  %v4206_v25 = vld [vmem:[#allocation3_spill] sm:$0xff] }
 0x135   : > { %v3875_v34 = vpop.permute.xlu2 %1730  ;;  %1724 = vrot.lane.b32.xlu0 %v1603_v61, %s2912_s24  ;;  %v1708_v61 = vshll.u32 %v3903_v14, 16 }
 0x136   : > { %v1713_v22 = vpop.permute.xlu1 %1712  ;;  %v1658_v38 = vor.u32 %v1657_v36, %v1653_v57  ;;  %v1054_v12 = vrot.slane %v1052_v55, 1  ;;  %v2751_v36 = vor.u32 %v2750_v21, %v2749_v58 }
 0x137   : > { %v1449_v54 = vpop.permute.xlu0 %1448  ;;  %v2072_v41 = vsel %vm2070_vm9, %v2039_v27, %v1713_v22  ;;  %v1660_v22 = vshll.u32 %v1515_v26, 16  ;;  %v2757_v27 = vor.u32 %v2756_v20, %v2755_v35 }
 0x138   : > { %v2047_v45 = vsel %vm2037_vm8, %v2014_v59, %v1449_v54  ;;  %v1827_v54 = vsel %vm767_vm1, %v1825_v60, %v1826_v17  ;;  %v3940_v59 = vld [vmem:[%s2948_s17 + $0x3c] sm:$0xff]  }
 0x139   : > { %v2080_v40 = vsel %vm2070_vm9, %v2047_v45, %v3803_v24  ;;  %v1701_v24 = vshrl.u32 %v3864_v16, 16  ;;  %v1662_v51 = vrot.slane %v1660_v22, 1  ;;  %v1301_v57 = vrot.slane %v2757_v27, 1 }
 0x13a   : > { %v1559_v22 = vshll.u32 %v3940_v59, 16 }
 0x13b   : > { %1350 = vrot.lane.b32.xlu2 %v1315_v19, %s2911_s23  ;;  %v1706_v2 = vor.u32 %v1705_v29, %v1701_v24  ;;  %v1710_v19 = vrot.slane %v1708_v61, 1  ;;  %v1663_v3 = vsel %vm494_vm0, %v1658_v38, %v1662_v51  ;;  %v4207_v24 = vld [vmem:[#allocation2_spill] sm:$0xff]  ;;  %v1491_v29 = vunpack.c.l.b16 %v2545_v18  ;;  %v2549_v61 = vld [vmem:[%s2948_s17 + $0x74] sm:$0x1] }
 0x13c   : > { %1230 = vrot.lane.b32.xlu1 %v1199_v52, %s2909_s21  ;;  %v1495_v60 = vunpack.c.l.b16 %v2549_v61  ;;  %v1289_v38 = vrot.slane %v2751_v36, 1  ;;  %v1561_v55 = vrot.slane %v1559_v22, 1 }
 0x13d   : > { %v3900_v37 = vpop.permute.xlu2 %1866  ;;  %1222 = vrot.lane.b32.xlu0 %v1151_v1, %s2909_s21  ;;  %v1711_v9 = vsel %vm494_vm0, %v1706_v2, %v1710_v19  ;;  %v2891_v1 = vor.u32 %v2890_v31, %v3867_v30  ;;  %v1838_v30 = vrot.slane %v3903_v14, 1  ;;  %v1507_v17 = vpack.c.b16 %v1491_v29, %v1491_v29 }
 0x13e   : > { %v1849_v53 = vpop.permute.xlu1 %1848  ;;  %v1607_v19 = vshll.u32 %v3951_v39, 16 }
 0x13f   : > { %v2113_v7 = vsel %vm2103_vm10, %v2080_v40, %v1849_v53  ;;  %v1841_v0 = vpop.permute.xlu0 %1840  ;;  %v3954_v53 = vld [vmem:[%s2948_s17 + $0x6c] sm:$0xf0]  ;;  %v1837_v4 = vrot.slane %v2891_v1, 1  ;;  %v1802_v61 = vrot.slane %v1507_v17, 1 }
 0x140   : > { %2586 = vmatmul.msk.bf16.vlgmr.msra.gmra.mxu1 %vm2160_vm11, %v2113_v7  ;;  %v2105_v43 = vsel %vm2103_vm10, %v2072_v41, %v1841_v0  ;;  %v1991_v41 = vsel %vm1971_vm6, %v3587_v10, %v3829_v13  ;;  %v1302_v13 = vrot.slane %v3924_v6, 1  ;;  %v1609_v1 = vrot.slane %v1607_v19, 1 }
 0x141   : > { %2582 = vmatmul.msk.bf16.vlgmr.msra.gmra.mxu0 %vm2160_vm11, %v2105_v43  ;;  %v1055_v43 = vsel %vm494_vm0, %v4207_v24, %v1054_v12 }
 0x143   : > { %1470 = vrot.lane.b32.xlu2 %v3864_v16, %s2910_s22 }
 0x144   : > { %1462 = vrot.lane.b32.xlu1 %v3871_v15, %s2910_s22  ;;  %v1100_v15 = vshll.u32 %v3924_v6, 16  ;;  %v1290_v6 = vrot.slane %v3929_v28, 1  ;;  %v1605_v28 = vshrl.u32 %v3951_v39, 16 }
 0x145   : > { %1358 = vrot.lane.b32.xlu0 %v1327_v63, %s2911_s23  ;;  %v3932_v5 = vpop.permute.xlu2 %1330  ;;  %v1839_v63 = vsel %vm767_vm1, %v1837_v4, %v1838_v30 }
 0x146   : > { %v1347_v16 = vpop.permute.xlu1 %1346  ;;  %v1102_v45 = vrot.slane %v1100_v15, 1  ;;  %v1303_v15 = vsel %vm767_vm1, %v1301_v57, %v1302_v13  ;;  %v1291_v12 = vsel %vm767_vm1, %v1289_v38, %v1290_v6  ;;  %v1610_v18 = vor.u32 %v1609_v1, %v1605_v28 }
 0x147   : > { %v1227_v52 = vpop.permute.xlu0 %1226  ;;  %v2024_v23 = vsel %vm2004_vm7, %v1991_v41, %v1347_v16 }
 0x148   : > { %v1103_v26 = vsel %vm494_vm0, %v4206_v25, %v1102_v45  ;;  %v1999_v10 = vsel %vm1971_vm6, %v3748_v46, %v1227_v52  ;;  %v2893_v45 = vld [vmem:[%s2948_s17 + $0x6c] sm:$0xe] }
 0x149   : > { %v2032_v46 = vsel %vm2004_vm7, %v1999_v10, %v3850_v47  ;;  %v1564_v47 = vshll.u32 %v1507_v17, 16 }
 0x14b   : > { %1862 = vrot.lane.b32.xlu2 %v1827_v54, %s2913_s25 }
 0x14c   : > { %1742 = vrot.lane.b32.xlu1 %v1711_v9, %s2912_s24  ;;  %v1557_v9 = vshrl.u32 %v3940_v59, 16 }
 0x14d   : > { %1734 = vrot.lane.b32.xlu0 %v1663_v3, %s2912_s24  ;;  %v3966_v0 = vpop.permute.xlu2 %1450 }
 0x14e   : > { %v1467_v40 = vpop.permute.xlu1 %1466 }
 0x14f   : > { %v1459_v7 = vpop.permute.xlu0 %1458  ;;  %v2065_v54 = vsel %vm2037_vm8, %v2032_v46, %v1467_v40  ;;  %v2896_v40 = vld [vmem:[%s2948_s17 + $0x3c] sm:$0xe] }
 0x150   : > { %v2057_v14 = vsel %vm2037_vm8, %v2024_v23, %v1459_v7  ;;  %v2894_v7 = vor.u32 %v2893_v45, %v3954_v53  ;;  %v2897_v58 = vor.u32 %v2896_v40, %v3943_v48 }
 0x151   : > { %v2090_v2 = vsel %vm2070_vm9, %v2057_v14, %v3875_v34  ;;  %v1511_v34 = vpack.c.b16 %v1495_v60, %v1495_v60 }
 0x152   : > { %v1813_v41 = vrot.slane %v2894_v7, 1  ;;  %v1801_v29 = vrot.slane %v2897_v58, 1 }
 0x153   : > { %1214 = vrot.lane.b32.xlu2 %v1103_v26, %s2909_s21  ;;  %v1612_v35 = vshll.u32 %v1511_v34, 16  ;;  %v1562_v26 = vor.u32 %v1561_v55, %v1557_v9  ;;  %v1814_v24 = vrot.slane %v1511_v34, 1 }
 0x154   : > { %1206 = vrot.lane.b32.xlu1 %v1055_v43, %s2909_s21  ;;  %v1803_v53 = vsel %vm767_vm1, %v1801_v29, %v1802_v61 }
 0x155   : > { %1870 = vrot.lane.b32.xlu0 %v1839_v63, %s2913_s25  ;;  %v1843_v20 = vpop.permute.xlu2 %1842  ;;  %v1614_v25 = vrot.slane %v1612_v35, 1  ;;  %v1815_v14 = vsel %vm767_vm1, %v1813_v41, %v1814_v24 }
 0x156   : > { %v1859_v31 = vpop.permute.xlu1 %1858 }
 0x157   : > { %v2123_v16 = vsel %vm2103_vm10, %v2090_v2, %v1859_v31  ;;  %v1739_v51 = vpop.permute.xlu0 %1738 }
 0x158   : > { %2591 = vmatmul.msk.bf16.gmra.mxu2 %vm2160_vm11, %v2123_v16  ;;  %v2098_v52 = vsel %vm2070_vm9, %v2065_v54, %v1739_v51 }
 0x159   : > { %v2131_v3 = vsel %vm2103_vm10, %v2098_v52, %v3900_v37  ;;  %v1566_v37 = vrot.slane %v1564_v47, 1 }
 0x15a   : > { %2595 = vmatmul.msk.bf16.gmra.mxu3 %vm2160_vm11, %v2131_v3 }
 0x15b   : > { %1446 = vrot.lane.b32.xlu2 %v3940_v59, %s2910_s22  ;;  %v1615_v59 = vsel %vm494_vm0, %v1610_v18, %v1614_v25  ;;  %v1567_v27 = vsel %vm494_vm0, %v1562_v26, %v1566_v37 }
 0x15c   : > { %1342 = vrot.lane.b32.xlu1 %v1303_v15, %s2911_s23 }
 0x15d   : > { %1334 = vrot.lane.b32.xlu0 %v1291_v12, %s2911_s23  ;;  %v1229_v21 = vpop.permute.xlu2 %1228 }
 0x15e   : > { %v1211_v4 = vpop.permute.xlu1 %1210  ;;  %v2001_v51 = vsel %vm1971_vm6, %v3742_v44, %v1229_v21 }
 0x15f   : > { %v1203_v30 = vpop.permute.xlu0 %1202  ;;  %v1983_v17 = vsel %vm1971_vm6, %v3655_v32, %v1211_v4 }
 0x160   : > { %v1975_v63 = vsel %vm1971_vm6, %v3635_v8, %v1203_v30 }
 0x163   : > { %1726 = vrot.lane.b32.xlu2 %v1615_v59, %s2912_s24 }
 0x164   : > { %1718 = vrot.lane.b32.xlu1 %v1567_v27, %s2912_s24 }
 0x165   : > { %1454 = vrot.lane.b32.xlu0 %v3951_v39, %s2910_s22  ;;  %v1461_v57 = vpop.permute.xlu2 %1460  ;;  %v2008_v39 = vsel %vm2004_vm7, %v1975_v63, %v3932_v5 }
 0x166   : > { %v1443_v43 = vpop.permute.xlu1 %1442 }
 0x167   : > { %v1339_v23 = vpop.permute.xlu0 %1338  ;;  %v2041_v36 = vsel %vm2037_vm8, %v2008_v39, %v1443_v43 }
 0x168   : > { %v2016_v8 = vsel %vm2004_vm7, %v1983_v17, %v1339_v23 }
 0x169   : > { %v2049_v31 = vsel %vm2037_vm8, %v2016_v8, %v3966_v0 }
 0x16c   : > { %1854 = vrot.lane.b32.xlu1 %v1815_v14, %s2913_s25 }
 0x16d   : > { %1846 = vrot.lane.b32.xlu0 %v1803_v53, %s2913_s25  ;;  %v1741_v19 = vpop.permute.xlu2 %1740 }
 0x16e   : > { %v1723_v48 = vpop.permute.xlu1 %1722 }
 0x16f   : > { %v1715_v10 = vpop.permute.xlu0 %1714  ;;  %v2082_v5 = vsel %vm2070_vm9, %v2049_v31, %v1723_v48 }
 0x170   : > { %v2074_v13 = vsel %vm2070_vm9, %v2041_v36, %v1715_v10 }
 0x171   : > { %v2107_v60 = vsel %vm2103_vm10, %v2074_v13, %v1843_v20 }
 0x172   : > { %2583 = vmatmul.msk.bf16.gmra.mxu0 %vm2160_vm11, %v2107_v60 }
 0x175   : > { %v1205_v6 = vpop.permute.xlu2 %1204 }
 0x176   : > { %v1221_v22 = vpop.permute.xlu1 %1220  ;;  %v1977_v18 = vsel %vm1971_vm6, %v3626_v56, %v1205_v6  ;;  %v4060_v56 = vld [vmem:[%s4200_s2] ss:$0 sm:$0xff] }
 0x177   : > { %v1851_v2 = vpop.permute.xlu0 %1850  ;;  %v1993_v0 = vsel %vm1971_vm6, %v3714_v49, %v1221_v22 }
 0x178   : > { %v2115_v46 = vsel %vm2103_vm10, %v2082_v5, %v1851_v2 }
 0x179   : > { %2587 = vmatmul.msk.bf16.gmra.mxu1 %vm2160_vm11, %v2115_v46 }
 0x17d   : > { %v1341_v9 = vpop.permute.xlu2 %1340 }
 0x17e   : > { %v1357_v16 = vpop.permute.xlu1 %1356 }
 0x17f   : > { %v1349_v38 = vpop.permute.xlu0 %1348  ;;  %v2034_v15 = vsel %vm2004_vm7, %v2001_v51, %v1357_v16 }
 0x180   : > { %v2026_v52 = vsel %vm2004_vm7, %v1993_v0, %v1349_v38 }
 0x181   : > { %v2059_v3 = vsel %vm2037_vm8, %v2026_v52, %v1461_v57 }
 0x185   : > { %v1717_v35 = vpop.permute.xlu2 %1716 }
 0x186   : > { %v1733_v32 = vpop.permute.xlu1 %1732 }
 0x187   : > { %v1469_v54 = vpop.permute.xlu0 %1468  ;;  %v2092_v28 = vsel %vm2070_vm9, %v2059_v3, %v1733_v32 }
 0x188   : > { %v2067_v34 = vsel %vm2037_vm8, %v2034_v15, %v1469_v54 }
 0x189   : > { %v2100_v47 = vsel %vm2070_vm9, %v2067_v34, %v1741_v19 }
 0x18d   : > { %v1853_v25 = vpop.permute.xlu2 %1852 }
 0x18e   : > { %v1869_v55 = vpop.permute.xlu1 %1868 }
 0x18f   : > { %v2133_v45 = vsel %vm2103_vm10, %v2100_v47, %v1869_v55  ;;  %v1861_v44 = vpop.permute.xlu0 %1860 }
 0x190   : > { %2596 = vmatmul.msk.bf16.gmra.mxu3 %vm2160_vm11, %v2133_v45  ;;  %v2125_v1 = vsel %vm2103_vm10, %v2092_v28, %v1861_v44 }
 0x191   : > { %2592 = vmatmul.msk.bf16.gmra.mxu2 %vm2160_vm11, %v2125_v1 }
 0x195   : > { %v1351_v24 = vpop.permute.xlu2 %1350 }
 0x196   : > { %v1333_v49 = vpop.permute.xlu1 %1332 }
 0x197   : > { %v1213_v20 = vpop.permute.xlu0 %1212  ;;  %v2010_v26 = vsel %vm2004_vm7, %v1977_v18, %v1333_v49 }
 0x198   : > { %v1985_v4 = vsel %vm1971_vm6, %v3560_v62, %v1213_v20 }
 0x199   : > { %v2018_v27 = vsel %vm2004_vm7, %v1985_v4, %v1341_v9 }
 0x19d   : > { %v1471_v13 = vpop.permute.xlu2 %1470 }
 0x19e   : > { %v1453_v12 = vpop.permute.xlu1 %1452 }
 0x19f   : > { %v1445_v40 = vpop.permute.xlu0 %1444  ;;  %v2051_v58 = vsel %vm2037_vm8, %v2018_v27, %v1453_v12 }
 0x1a0   : > { %v2043_v37 = vsel %vm2037_vm8, %v2010_v26, %v1445_v40 }
 0x1a1   : > { %v2076_v30 = vsel %vm2070_vm9, %v2043_v37, %v1717_v35 }
 0x1a5   : > { %v1863_v32 = vpop.permute.xlu2 %1862 }
 0x1a6   : > { %v1845_v59 = vpop.permute.xlu1 %1844 }
 0x1a7   : > { %v2109_v7 = vsel %vm2103_vm10, %v2076_v30, %v1845_v59  ;;  %v1725_v21 = vpop.permute.xlu0 %1724 }
 0x1a8   : > { %2584 = vmatmul.msk.bf16.gmra.mxu0 %vm2160_vm11, %v2109_v7  ;;  %v2084_v41 = vsel %vm2070_vm9, %v2051_v58, %v1725_v21 }
 0x1a9   : > { %v2117_v62 = vsel %vm2103_vm10, %v2084_v41, %v1853_v25 }
 0x1aa   : > { %2588 = vmatmul.msk.bf16.gmra.mxu1 %vm2160_vm11, %v2117_v62 }
 0x1ab   : > { %v2266_v43 = vpop.f32.mrf.mxu3 }
 0x1ac   : > { %v2267_v29 = vadd.f32 %v4060_v56, %v2266_v43  ;;  %v2246_v61 = vpop.f32.mrf.mxu2 }
 0x1ad   : > { %v2247_v23 = vadd.f32 %v4060_v56, %v2246_v61  ;;  %v1215_v25 = vpop.permute.xlu2 %1214 }
 0x1ae   : > { %v2310_v14 = vmax.f32 %v2267_v29, 0.0  ;;  %v1231_v53 = vpop.permute.xlu1 %1230  ;;  %v1987_v41 = vsel %vm1971_vm6, %v3688_v11, %v1215_v25 }
 0x1af   : > { %v2302_v63 = vmax.f32 %v2247_v23, 0.0  ;;  %v1223_v57 = vpop.permute.xlu0 %1222  ;;  %v2003_v3 = vsel %vm1971_vm6, %v3645_v42, %v1231_v53 }
 0x1b0   : > { %v2342_v48 = vpack.c.bf16 %v2310_v14, %v2310_v14  ;;  %v1995_v46 = vsel %vm1971_vm6, %v3709_v50, %v1223_v57 }
 0x1b1   : > { %v2334_v39 = vpack.c.bf16 %v2302_v63, %v2302_v63  ;;  %v2028_v54 = vsel %vm2004_vm7, %v1995_v46, %v1351_v24 }
 0x1b2   : > { %2375 = vst.msk [vmem:[%s4071_s10 + $0x60] sm:$0xf] %vm2350_vm12, %v2342_v48 }
 0x1b3   : > { %v2268_v36 = vpop.f32.mrf.mxu3  ;;  %2367 = vst.msk [vmem:[%s4071_s10 + $0x40] sm:$0xf] %vm2350_vm12, %v2334_v39 }
 0x1b4   : > { %v2269_v10 = vadd.f32 %v4060_v56, %v2268_v36  ;;  %v2248_v60 = vpop.f32.mrf.mxu2 }
 0x1b5   : > { %v2249_v17 = vadd.f32 %v4060_v56, %v2248_v60  ;;  %v1447_v7 = vpop.permute.xlu2 %1446 }
 0x1b6   : > { %v2311_v8 = vmax.f32 %v2269_v10, 0.0  ;;  %v1463_v22 = vpop.permute.xlu1 %1462 }
 0x1b7   : > { %v2303_v31 = vmax.f32 %v2249_v17, 0.0  ;;  %v1359_v2 = vpop.permute.xlu0 %1358  ;;  %v2061_v15 = vsel %vm2037_vm8, %v2028_v54, %v1463_v22 }
 0x1b8   : > { %v2343_v5 = vpack.c.bf16 %v2311_v8, %v2311_v8  ;;  %v2036_v45 = vsel %vm2004_vm7, %v2003_v3, %v1359_v2 }
 0x1b9   : > { %v2335_v19 = vpack.c.bf16 %v2303_v31, %v2303_v31  ;;  %v2069_v35 = vsel %vm2037_vm8, %v2036_v45, %v1471_v13 }
 0x1ba   : > { %2376 = vst.msk [vmem:[%s4071_s10 + $0x64] sm:$0xf] %vm2350_vm12, %v2343_v5 }
 0x1bb   : > { %2368 = vst.msk [vmem:[%s4071_s10 + $0x44] sm:$0xf] %vm2350_vm12, %v2335_v19 }
 0x1bd   : > { %v2226_v16 = vpop.f32.mrf.mxu1  ;;  %v1727_v29 = vpop.permute.xlu2 %1726 }
 0x1be   : > { %v2227_v38 = vadd.f32 %v4060_v56, %v2226_v16  ;;  %v1743_v6 = vpop.permute.xlu1 %1742  ;;  %v2206_v51 = vpop.f32.mrf.mxu0 }
 0x1bf   : > { %v2207_v0 = vadd.f32 %v4060_v56, %v2206_v51  ;;  %v1735_v52 = vpop.permute.xlu0 %1734  ;;  %v2102_v42 = vsel %vm2070_vm9, %v2069_v35, %v1743_v6 }
 0x1c0   : > { %v2294_v34 = vmax.f32 %v2227_v38, 0.0  ;;  %v2094_v50 = vsel %vm2070_vm9, %v2061_v15, %v1735_v52 }
 0x1c1   : > { %v2286_v9 = vmax.f32 %v2207_v0, 0.0  ;;  %v2127_v47 = vsel %vm2103_vm10, %v2094_v50, %v1863_v32 }
 0x1c2   : > { %v2326_v55 = vpack.c.bf16 %v2294_v34, %v2294_v34  ;;  %2593 = vmatmul.msk.bf16.gmra.mxu2 %vm2160_vm11, %v2127_v47 }
 0x1c3   : > { %v2318_v28 = vpack.c.bf16 %v2286_v9, %v2286_v9 }
 0x1c4   : > { %2359 = vst.msk [vmem:[%s4071_s10 + $0x20] sm:$0xf] %vm2350_vm12, %v2326_v55 }
 0x1c5   : > { %v2228_v44 = vpop.f32.mrf.mxu1  ;;  %2351 = vst.msk [vmem:[%s4071_s10] sm:$0xf] %vm2350_vm12, %v2318_v28 }
 0x1c6   : > { %v2229_v1 = vadd.f32 %v4060_v56, %v2228_v44  ;;  %v1207_v49 = vpop.permute.xlu1 %1206  ;;  %v2208_v20 = vpop.f32.mrf.mxu0 }
 0x1c7   : > { %v2209_v12 = vadd.f32 %v4060_v56, %v2208_v20  ;;  %v1871_v18 = vpop.permute.xlu0 %1870  ;;  %v1979_v24 = vsel %vm1971_vm6, %v3537_v33, %v1207_v49 }
 0x1c8   : > { %v2295_v40 = vmax.f32 %v2229_v1, 0.0  ;;  %v2135_v26 = vsel %vm2103_vm10, %v2102_v42, %v1871_v18 }
 0x1c9   : > { %v2287_v37 = vmax.f32 %v2209_v12, 0.0  ;;  %2597 = vmatmul.msk.bf16.gmra.mxu3 %vm2160_vm11, %v2135_v26 }
 0x1ca   : > { %v2327_v4 = vpack.c.bf16 %v2295_v40, %v2295_v40 }
 0x1cb   : > { %v2319_v59 = vpack.c.bf16 %v2287_v37, %v2287_v37 }
 0x1cc   : > { %2360 = vst.msk [vmem:[%s4071_s10 + $0x24] sm:$0xf] %vm2350_vm12, %v2327_v4 }
 0x1cd   : > { %2352 = vst.msk [vmem:[%s4071_s10 + $0x4] sm:$0xf] %vm2350_vm12, %v2319_v59 }
 0x1ce   : > { %v1343_v30 = vpop.permute.xlu1 %1342 }
 0x1cf   : > { %v1335_v27 = vpop.permute.xlu0 %1334  ;;  %v2020_v62 = vsel %vm2004_vm7, %v1987_v41, %v1343_v30 }
 0x1d0   : > { %v2012_v23 = vsel %vm2004_vm7, %v1979_v24, %v1335_v27 }
 0x1d1   : > { %v2045_v57 = vsel %vm2037_vm8, %v2012_v23, %v1447_v7 }
 0x1d6   : > { %v1719_v58 = vpop.permute.xlu1 %1718 }
 0x1d7   : > { %v1455_v21 = vpop.permute.xlu0 %1454  ;;  %v2078_v36 = vsel %vm2070_vm9, %v2045_v57, %v1719_v58 }
 0x1d8   : > { %v2053_v43 = vsel %vm2037_vm8, %v2020_v62, %v1455_v21 }
 0x1d9   : > { %v2086_v53 = vsel %vm2070_vm9, %v2053_v43, %v1727_v29 }
 0x1db   : > { %v2251_v61 = vpop.f32.mrf.mxu2 }
 0x1dc   : > { %v2252_v14 = vadd.f32 %v4060_v56, %v2251_v61 }
 0x1dd   : > { %v2271_v48 = vpop.f32.mrf.mxu3 }
 0x1de   : > { %v2304_v63 = vmax.f32 %v2252_v14, 0.0  ;;  %v1855_v11 = vpop.permute.xlu1 %1854  ;;  %v2272_v39 = vadd.f32 %v4060_v56, %v2271_v48 }
 0x1df   : > { %v2119_v33 = vsel %vm2103_vm10, %v2086_v53, %v1855_v11  ;;  %v1847_v13 = vpop.permute.xlu0 %1846 }
 0x1e0   : > { %v2336_v10 = vpack.c.bf16 %v2304_v63, %v2304_v63  ;;  %2589 = vmatmul.msk.bf16.gmra.mxu1 %vm2160_vm11, %v2119_v33  ;;  %v2312_v60 = vmax.f32 %v2272_v39, 0.0  ;;  %v2111_v17 = vsel %vm2103_vm10, %v2078_v36, %v1847_v13 }
 0x1e1   : > { %2585 = vmatmul.msk.bf16.gmra.mxu0 %vm2160_vm11, %v2111_v17 }
 0x1e2   : > { %2369 = vst.msk [vmem:[%s4071_s10 + $0x48] sm:$0xf] %vm2350_vm12, %v2336_v10  ;;  %v2344_v8 = vpack.c.bf16 %v2312_v60, %v2312_v60 }
 0x1e3   : > { %v2253_v22 = vpop.f32.mrf.mxu2 }
 0x1e4   : > { %v2254_v31 = vadd.f32 %v4060_v56, %v2253_v22  ;;  %2377 = vst.msk [vmem:[%s4071_s10 + $0x68] sm:$0xf] %vm2350_vm12, %v2344_v8 }
 0x1e5   : > { %v2273_v2 = vpop.f32.mrf.mxu3 }
 0x1e6   : > { %v2305_v5 = vmax.f32 %v2254_v31, 0.0  ;;  %v2274_v19 = vadd.f32 %v4060_v56, %v2273_v2 }
 0x1e8   : > { %v2337_v46 = vpack.c.bf16 %v2305_v5, %v2305_v5  ;;  %v2313_v16 = vmax.f32 %v2274_v19, 0.0 }
 0x1ea   : > { %2370 = vst.msk [vmem:[%s4071_s10 + $0x4c] sm:$0xf] %vm2350_vm12, %v2337_v46  ;;  %v2345_v38 = vpack.c.bf16 %v2313_v16, %v2313_v16 }
 0x1ec   : > { %2378 = vst.msk [vmem:[%s4071_s10 + $0x6c] sm:$0xf] %vm2350_vm12, %v2345_v38 }
 0x1ef   : > { %v2211_v6 = vpop.f32.mrf.mxu0 }
 0x1f0   : > { %v2212_v32 = vadd.f32 %v4060_v56, %v2211_v6 }
 0x1f2   : > { %v2288_v54 = vmax.f32 %v2212_v32, 0.0 }
 0x1f4   : > { %v2320_v51 = vpack.c.bf16 %v2288_v54, %v2288_v54 }
 0x1f6   : > { %2353 = vst.msk [vmem:[%s4071_s10 + $0x8] sm:$0xf] %vm2350_vm12, %v2320_v51  ;;  %v2231_v15 = vpop.f32.mrf.mxu1 }
 0x1f7   : > { %v2232_v0 = vadd.f32 %v4060_v56, %v2231_v15  ;;  %v2213_v34 = vpop.f32.mrf.mxu0 }
 0x1f8   : > { %v2214_v52 = vadd.f32 %v4060_v56, %v2213_v34 }
 0x1f9   : > { %v2296_v50 = vmax.f32 %v2232_v0, 0.0 }
 0x1fa   : > { %v2289_v9 = vmax.f32 %v2214_v52, 0.0 }
 0x1fb   : > { %v2328_v55 = vpack.c.bf16 %v2296_v50, %v2296_v50 }
 0x1fc   : > { %v2321_v47 = vpack.c.bf16 %v2289_v9, %v2289_v9 }
 0x1fd   : > { %2361 = vst.msk [vmem:[%s4071_s10 + $0x28] sm:$0xf] %vm2350_vm12, %v2328_v55 }
 0x1fe   : > { %2354 = vst.msk [vmem:[%s4071_s10 + $0xc] sm:$0xf] %vm2350_vm12, %v2321_v47  ;;  %v2233_v3 = vpop.f32.mrf.mxu1 }
 0x1ff   : > { %v2234_v45 = vadd.f32 %v4060_v56, %v2233_v3 }
 0x201   : > { %v2297_v28 = vmax.f32 %v2234_v45, 0.0 }
 0x203   : > { %v2329_v44 = vpack.c.bf16 %v2297_v28, %v2297_v28 }
 0x205   : > { %2362 = vst.msk [vmem:[%s4071_s10 + $0x2c] sm:$0xf] %vm2350_vm12, %v2329_v44 }
 0x213   : > { %v2276_v1 = vpop.f32.mrf.mxu3 }
 0x214   : > { %v2277_v49 = vadd.f32 %v4060_v56, %v2276_v1  ;;  %v2256_v35 = vpop.f32.mrf.mxu2 }
 0x215   : > { %v2257_v20 = vadd.f32 %v4060_v56, %v2256_v35 }
 0x216   : > { %v2314_v42 = vmax.f32 %v2277_v49, 0.0 }
 0x217   : > { %v2306_v12 = vmax.f32 %v2257_v20, 0.0 }
 0x218   : > { %v2346_v40 = vpack.c.bf16 %v2314_v42, %v2314_v42 }
 0x219   : > { %v2338_v18 = vpack.c.bf16 %v2306_v12, %v2306_v12 }
 0x21a   : > { %2379 = vst.msk [vmem:[%s4071_s10 + $0x70] sm:$0xf] %vm2350_vm12, %v2346_v40 }
 0x21b   : > { %v2278_v25 = vpop.f32.mrf.mxu3  ;;  %2371 = vst.msk [vmem:[%s4071_s10 + $0x50] sm:$0xf] %vm2350_vm12, %v2338_v18 }
 0x21c   : > { %v2279_v26 = vadd.f32 %v4060_v56, %v2278_v25  ;;  %v2258_v37 = vpop.f32.mrf.mxu2 }
 0x21d   : > { %v2259_v4 = vadd.f32 %v4060_v56, %v2258_v37 }
 0x21e   : > { %v2315_v59 = vmax.f32 %v2279_v26, 0.0 }
 0x21f   : > { %v2307_v30 = vmax.f32 %v2259_v4, 0.0 }
 0x220   : > { %v2347_v27 = vpack.c.bf16 %v2315_v59, %v2315_v59 }
 0x221   : > { %v2339_v7 = vpack.c.bf16 %v2307_v30, %v2307_v30 }
 0x222   : > { %2380 = vst.msk [vmem:[%s4071_s10 + $0x74] sm:$0xf] %vm2350_vm12, %v2347_v27 }
 0x223   : > { %2372 = vst.msk [vmem:[%s4071_s10 + $0x54] sm:$0xf] %vm2350_vm12, %v2339_v7 }
 0x225   : > { %v2216_v58 = vpop.f32.mrf.mxu0 }
 0x226   : > { %v2217_v21 = vadd.f32 %v4060_v56, %v2216_v58 }
 0x227   : > { %v2236_v62 = vpop.f32.mrf.mxu1 }
 0x228   : > { %v2290_v41 = vmax.f32 %v2217_v21, 0.0  ;;  %v2237_v24 = vadd.f32 %v4060_v56, %v2236_v62 }
 0x22a   : > { %v2322_v43 = vpack.c.bf16 %v2290_v41, %v2290_v41  ;;  %v2298_v29 = vmax.f32 %v2237_v24, 0.0 }
 0x22c   : > { %2355 = vst.msk [vmem:[%s4071_s10 + $0x10] sm:$0xf] %vm2350_vm12, %v2322_v43  ;;  %v2330_v61 = vpack.c.bf16 %v2298_v29, %v2298_v29 }
 0x22d   : > { %v2218_v23 = vpop.f32.mrf.mxu0 }
 0x22e   : > { %v2219_v14 = vadd.f32 %v4060_v56, %v2218_v23  ;;  %2363 = vst.msk [vmem:[%s4071_s10 + $0x30] sm:$0xf] %vm2350_vm12, %v2330_v61 }
 0x22f   : > { %v2238_v63 = vpop.f32.mrf.mxu1 }
 0x230   : > { %v2291_v53 = vmax.f32 %v2219_v14, 0.0  ;;  %v2239_v48 = vadd.f32 %v4060_v56, %v2238_v63 }
 0x232   : > { %v2323_v11 = vpack.c.bf16 %v2291_v53, %v2291_v53  ;;  %v2299_v57 = vmax.f32 %v2239_v48, 0.0 }
 0x234   : > { %2356 = vst.msk [vmem:[%s4071_s10 + $0x14] sm:$0xf] %vm2350_vm12, %v2323_v11  ;;  %v2331_v39 = vpack.c.bf16 %v2299_v57, %v2299_v57 }
 0x236   : > { %2364 = vst.msk [vmem:[%s4071_s10 + $0x34] sm:$0xf] %vm2350_vm12, %v2331_v39 }
 0x245   : > { %v2261_v33 = vpop.f32.mrf.mxu2 }
 0x246   : > { %v2262_v36 = vadd.f32 %v4060_v56, %v2261_v33 }
 0x248   : > { %v2308_v10 = vmax.f32 %v2262_v36, 0.0 }
 0x24a   : > { %v2340_v13 = vpack.c.bf16 %v2308_v10, %v2308_v10 }
 0x24c   : > { %2373 = vst.msk [vmem:[%s4071_s10 + $0x58] sm:$0xf] %vm2350_vm12, %v2340_v13  ;;  %v2281_v60 = vpop.f32.mrf.mxu3 }
 0x24d   : > { %v2282_v17 = vadd.f32 %v4060_v56, %v2281_v60  ;;  %v2263_v8 = vpop.f32.mrf.mxu2 }
 0x24e   : > { %v2264_v22 = vadd.f32 %v4060_v56, %v2263_v8 }
 0x24f   : > { %v2316_v31 = vmax.f32 %v2282_v17, 0.0 }
 0x250   : > { %v2309_v5 = vmax.f32 %v2264_v22, 0.0 }
 0x251   : > { %v2348_v2 = vpack.c.bf16 %v2316_v31, %v2316_v31 }
 0x252   : > { %v2341_v19 = vpack.c.bf16 %v2309_v5, %v2309_v5 }
 0x253   : > { %2381 = vst.msk [vmem:[%s4071_s10 + $0x78] sm:$0xf] %vm2350_vm12, %v2348_v2 }
 0x254   : > { %2374 = vst.msk [vmem:[%s4071_s10 + $0x5c] sm:$0xf] %vm2350_vm12, %v2341_v19  ;;  %v2283_v46 = vpop.f32.mrf.mxu3 }
 0x255   : > { %v2284_v16 = vadd.f32 %v4060_v56, %v2283_v46 }
 0x257   : > { %v2317_v38 = vmax.f32 %v2284_v16, 0.0 }
 0x259   : > { %v2349_v6 = vpack.c.bf16 %v2317_v38, %v2317_v38 }
 0x25b   : > { %2382 = vst.msk [vmem:[%s4071_s10 + $0x7c] sm:$0xf] %vm2350_vm12, %v2349_v6 }
 0x25d   : > { %v2241_v32 = vpop.f32.mrf.mxu1 }
 0x25e   : > { %v2242_v54 = vadd.f32 %v4060_v56, %v2241_v32  ;;  %v2221_v51 = vpop.f32.mrf.mxu0 }
 0x25f   : > { %v2222_v15 = vadd.f32 %v4060_v56, %v2221_v51 }
 0x260   : > { %v2300_v0 = vmax.f32 %v2242_v54, 0.0 }
 0x261   : > { %v2292_v34 = vmax.f32 %v2222_v15, 0.0 }
 0x262   : > { %v2332_v52 = vpack.c.bf16 %v2300_v0, %v2300_v0 }
 0x263   : > { %v2324_v50 = vpack.c.bf16 %v2292_v34, %v2292_v34 }
 0x264   : > { %2365 = vst.msk [vmem:[%s4071_s10 + $0x38] sm:$0xf] %vm2350_vm12, %v2332_v52 }
 0x265   : > { %v2243_v9 = vpop.f32.mrf.mxu1  ;;  %2357 = vst.msk [vmem:[%s4071_s10 + $0x18] sm:$0xf] %vm2350_vm12, %v2324_v50 }
 0x266   : > { %v2244_v55 = vadd.f32 %v4060_v56, %v2243_v9  ;;  %v2223_v47 = vpop.f32.mrf.mxu0 }
 0x267   : > { %v2224_v3 = vadd.f32 %v4060_v56, %v2223_v47 }
 0x268   : > { %v2301_v45 = vmax.f32 %v2244_v55, 0.0 }
 0x269   : > { %v2293_v28 = vmax.f32 %v2224_v3, 0.0 }
 0x26a   : > { %v2333_v44 = vpack.c.bf16 %v2301_v45, %v2301_v45 }
 0x26b   : > { %v2325_v1 = vpack.c.bf16 %v2293_v28, %v2293_v28 }
 0x26c   : > { %2366 = vst.msk [vmem:[%s4071_s10 + $0x3c] sm:$0xf] %vm2350_vm12, %v2333_v44 }
 0x26d   : > { %2358 = vst.msk [vmem:[%s4071_s10 + $0x1c] sm:$0xf] %vm2350_vm12, %v2325_v1 }
 0x26e PF: > { %s13_s12 = sadd.s32 1, %s2904_s12  }
 0x26f   : > { %p10_p4 = scmp.ge.s32.totalorder %s13_s12, 4  }
 0x271   :  { %12 = sbr.rel (!%p10_p4) target bundleno = 1 (0x1), region = 64 }

// kernel: mtsl_forward.9
= control target key start
LH: loop header
LB: loop body
LE: loop exit
PB: predicated region body
PF: predicated region fallthrough
CT: control target
= control target key end

     0   :  { %s351_s12 = smov 0   ;;  %s377_s0 = inlined_call_operand.vmem [shape: f32[2,4,24], index: 0, kind: input, shape index: {}]   ;;  %s378_s1 = inlined_call_operand.vmem [shape: bf16[24,96], index: 1, kind: input, shape index: {}]   ;;  %s379_s2 = inlined_call_operand.vmem [shape: bf16[16,4], index: 2, kind: input, shape index: {}]   ;;  %s380_s3 = inlined_call_operand.vmem [shape: f32[2,16,96], index: 3, kind: output, shape index: {}]  }
   0x1 LB: > { %s292_s13 = sadd.s32 4294967295, %s329_s12   ;;  %p296_p0 = scmp.ge.s32.totalorder %s329_s12, 1  ;;  %s329_s12 = sphi %s351_s12, %s13_s12  }
   0x2   : > { %p136_p1 = scmp.lt.s32.totalorder %s329_s12, 3 }
   0x4   : > { %p137_p2 = pnand %p296_p0, %p136_p1 }
   0x5   : > { %p159_p3 = scmp.lt.s32.totalorder (!%p137_p2), %s292_s13, 1 }
   0x6   : > { %140 = sbr.rel (%p137_p2) target bundleno = 291 (0x123), region = 32 }
   0xb   : > { %v173_v0 = vld [vmem:[%s378_s1 + $0x8] sm:$0xf]  ;;  %vm187_vm0 = vcmask 1043456   ;;  %s382_s13 = smov (!%p159_p3, %s292_s13), 1  ;;  %v313_v4 = vld [vmem:[%s378_s1] sm:$0xff]  ;;  %vm183_vm1 = vcmask 195584  }
   0xc   : > { %v179_v1 = vunpack.c.l.b16 %v173_v0  ;;  %s297_s16 = sshll.u32 %s382_s13, 2  ;;  %vm216_vm2 = vcmask 1041408   ;;  %v314_v10 = vld [vmem:[%s379_s2] sm:$0xff]  ;;  %vm212_vm3 = vcmask 31744   ;;  %s312_s24 = sshll.u32 %s382_s13, 4  ;;  %vm234_vm4 = vcmask 785408  }
   0xd   : > { %s162_s19 = scalar_lea.vmem %s377_s0, %s297_s16  ;;  %s167_s27 = scalar_lea.vmem %s380_s3, %s312_s24 }
   0xe   : > { %v181_v2 = vpack.c.b16 %v179_v1, %v179_v1  ;;  %v169_v5 = vld [vmem:[%s162_s19] sm:$0xf] }
   0xf   : > { %v170_v6 = vpack.c.bf16 %v169_v5, %v169_v5 }
  0x10   : > { %v189_v3 = vsel %vm187_vm0, %v181_v2, 0 }
  0x11   : > { %197 = vmatpush.bf16.msra.mxu0 %v189_v3 }
  0x15   : > { %198 = vmatpush.bf16.msra.mxu0 %v313_v4 }
  0x18   : > { %304 = vmatmul.msk.bf16.vlgmr.msra.gmra.mxu0 %vm183_vm1, %v170_v6 }
  0x95   : > { %v200_v7 = vpop.f32.mrf.mxu0 }
  0x96   : > { %v206_v8 = vpack.c.bf16 %v200_v7, %v200_v7 }
  0x98   : > { %v218_v9 = vsel %vm216_vm2, %v206_v8, 0 }
  0x99   : > { %227 = vmatpush.bf16.msra.mxu1 %v218_v9 }
  0x9c   : > { %309 = vmatmul.msk.bf16.vlgmr.msra.gmra.mxu1 %vm212_vm3, %v314_v10 }
  0x9d   : > { %v202_v11 = vpop.f32.mrf.mxu0 }
 0x119   : > { %v229_v12 = vpop.f32.mrf.mxu1 }
 0x11a   : > { %235 = vst.msk [vmem:[%s167_s27] sm:$0xff] %vm234_vm4, %v229_v12 }
 0x121   : > { %v231_v13 = vpop.f32.mrf.mxu1 }
 0x122   : > { %236 = vst.msk [vmem:[%s167_s27 + $0x8] sm:$0xff] %vm234_vm4, %v231_v13 }
 0x123 PF: > { %s13_s12 = sadd.s32 1, %s329_s12  }
 0x124   : > { %p10_p4 = scmp.ge.s32.totalorder %s13_s12, 4  }
 0x126   :  { %12 = sbr.rel (!%p10_p4) target bundleno = 1 (0x1), region = 62 }

// kernel: mtsl_forward.8
= control target key start
LH: loop header
LB: loop body
LE: loop exit
PB: predicated region body
PF: predicated region fallthrough
CT: control target
= control target key end

     0   :  { %s1099_s18 = smov 0   ;;  %s1327_s0 = inlined_call_operand.vmem [shape: bf16[2,6,6,32], index: 0, kind: input, shape index: {}]   ;;  %s1328_s1 = inlined_call_operand.vmem [shape: bf16[288,32], index: 1, kind: input, shape index: {}]   ;;  %s1329_s2 = inlined_call_operand.vmem [shape: f32[1,32], index: 2, kind: input, shape index: {}]   ;;  %s1330_s3 = inlined_call_operand.vmem [shape: bf16[32,6], index: 3, kind: input, shape index: {}]   ;;  %s1331_s4 = inlined_call_operand.vmem [shape: f32[1,6], index: 4, kind: input, shape index: {}]   ;;  %s1332_s5 = inlined_call_operand.vmem [shape: f32[2,4,4,6], index: 5, kind: output, shape index: {}]  }
   0x1 LB: > { %s903_s19 = sadd.s32 4294967295, %s1064_s18   ;;  %p907_p0 = scmp.ge.s32.totalorder %s1064_s18, 1  ;;  %s1064_s18 = sphi %s1099_s18, %s15_s18  }
   0x2   : > { %p187_p1 = scmp.lt.s32.totalorder %s1064_s18, 3 }
   0x4   : > { %p188_p2 = pnand %p907_p0, %p187_p1 }
   0x5   : > { %p215_p3 = scmp.lt.s32.totalorder (!%p188_p2), %s903_s19, 1  ;;  %s1066_s24 = smov (!%p188_p2), 64  }
   0x6   : > { %191 = sbr.rel (%p188_p2) target bundleno = 497 (0x1f1), region = 40  ;;  %s1067_s25 = smov (!%p188_p2), 32  }
   0x7   : > { %s1068_s26 = smov (!%p188_p2), 96  }
   0xb   : > { %s1334_s19 = smov (!%p215_p3, %s903_s19), 1  ;;  %vm504_vm0 = vcmask 261120   ;;  %vm517_vm1 = vcmask 523264   ;;  %vm526_vm2 = vcmask 785408   ;;  %vm575_vm3 = vcmask 1041408  }
   0xc   : > { %s1044_s20 = smul.u32 24, %s1334_s19  ;;  %vm578_vm4 = vcmask 1043456   ;;  %vm843_vm5 = vcmask 44032  }
   0xe   : > { %s1113_s23 = scalar_lea.vmem %s1327_s0, %s1044_s20 }
   0xf   : > { %v921_v0 = vld [vmem:[%s1113_s23 + $0xc] sm:$0x6]  ;;  %v919_v1 = vld [vmem:[%s1113_s23 + $0x4] sm:$0x6]  ;;  %v922_v2 = vld [vmem:[%s1113_s23 + $0x10] sm:$0x6] }
  0x10   : > { %v402_v3 = vunpack.c.l.b16 %v921_v0  ;;  %v400_v4 = vunpack.c.l.b16 %v919_v1  ;;  %v920_v5 = vld [vmem:[%s1113_s23 + $0x8] sm:$0x6]  ;;  %v403_v7 = vunpack.c.l.b16 %v922_v2  ;;  %v924_v12 = vld [vmem:[%s1113_s23 + $0xc] sm:$0x3]  ;;  %v230_v14 = vld [vmem:[%s1113_s23] sm:$0x7] }
  0x11   : > { %v923_v6 = vld [vmem:[%s1113_s23 + $0x8] sm:$0x3]  ;;  %v401_v11 = vunpack.c.l.b16 %v920_v5  ;;  %v425_v18 = vunpack.c.l.b16 %v924_v12  ;;  %v268_v20 = vunpack.c.l.b16 %v230_v14  ;;  %v233_v21 = vld [vmem:[%s1113_s23 + $0xc] sm:$0x7]  ;;  %v231_v23 = vld [vmem:[%s1113_s23 + $0x4] sm:$0x7] }
  0x12   : > { %v424_v8 = vunpack.c.l.b16 %v923_v6  ;;  %v406_v9 = vpack.c.b16 %v402_v3, %v402_v3  ;;  %v404_v10 = vpack.c.b16 %v400_v4, %v400_v4  ;;  %v407_v17 = vpack.c.b16 %v403_v7, %v403_v7  ;;  %v232_v22 = vld [vmem:[%s1113_s23 + $0x8] sm:$0x7]  ;;  %v926_v32 = vld [vmem:[%s1113_s23 + $0x14] sm:$0x3]  ;;  %v925_v33 = vld [vmem:[%s1113_s23 + $0x10] sm:$0x3] }
  0x13   : > { %v405_v19 = vpack.c.b16 %v401_v11, %v401_v11  ;;  %v272_v24 = vpack.c.b16 %v268_v20, %v268_v20  ;;  %v429_v26 = vpack.c.b16 %v425_v18, %v425_v18  ;;  %v271_v27 = vunpack.c.l.b16 %v233_v21  ;;  %v928_v36 = vld [vmem:[%s1113_s23 + $0xc] sm:$0x7]  ;;  %v927_v42 = vld [vmem:[%s1113_s23 + $0x8] sm:$0x7]  ;;  %v929_v43 = vld [vmem:[%s1113_s23 + $0x10] sm:$0x7] }
  0x14   : > { %v428_v13 = vpack.c.b16 %v424_v8, %v424_v8  ;;  %v410_v15 = vrot.slane %v406_v9, 1  ;;  %v408_v16 = vrot.slane %v404_v10, 1  ;;  %v411_v25 = vrot.slane %v407_v17, 1  ;;  %v930_v62 = vld [vmem:[%s1113_s23 + $0x14] sm:$0x7] }
  0x15   : > { %v409_v28 = vrot.slane %v405_v19, 1  ;;  %v270_v29 = vunpack.c.l.b16 %v232_v22  ;;  %v269_v30 = vunpack.c.l.b16 %v231_v23  ;;  %v279_v31 = vshll.u32 %v272_v24, 16  ;;  %v234_v14 = vld [vmem:[%s1113_s23] sm:$0x6] }
  0x16   : > { %432 = vrot.lane.b32.xlu2 %v428_v13, %s1066_s24  ;;  %416 = vrot.lane.b32.xlu1 %v410_v15, %s1067_s25  ;;  %v277_v34 = vshrl.u32 %v272_v24, 16  ;;  %v275_v37 = vpack.c.b16 %v271_v27, %v271_v27  ;;  %v427_v38 = vunpack.c.l.b16 %v926_v32  ;;  %v426_v39 = vunpack.c.l.b16 %v925_v33  ;;  %v235_v13 = vld [vmem:[%s1113_s23 + $0x4] sm:$0x6] }
  0x17   : > { %412 = vrot.lane.b32.xlu0 %v408_v16, %s1067_s25  ;;  %v281_v35 = vrot.slane %v279_v31, 1  ;;  %v274_v40 = vpack.c.b16 %v270_v29, %v270_v29  ;;  %v273_v41 = vpack.c.b16 %v269_v30, %v269_v30  ;;  %v445_v44 = vunpack.c.l.b16 %v928_v36  ;;  %v911_v32 = vld [vmem:[%s1113_s23 + $0x4] sm:$0x3] }
  0x18   : > { %v444_v46 = vunpack.c.l.b16 %v927_v42  ;;  %v300_v47 = vshll.u32 %v275_v37, 16  ;;  %v446_v48 = vunpack.c.l.b16 %v929_v43  ;;  %v431_v49 = vpack.c.b16 %v427_v38, %v427_v38 }
  0x19   : > { %v282_v45 = vor.u32 %v281_v35, %v277_v34  ;;  %v430_v50 = vpack.c.b16 %v426_v39, %v426_v39  ;;  %v293_v51 = vshll.u32 %v274_v40, 16  ;;  %v286_v52 = vshll.u32 %v273_v41, 16  ;;  %v914_v39 = vld [vmem:[%s1113_s23 + $0x10] sm:$0x3] }
  0x1a   : > { %v449_v53 = vpack.c.b16 %v445_v44, %v445_v44  ;;  %v448_v54 = vpack.c.b16 %v444_v46, %v444_v46  ;;  %v298_v55 = vshrl.u32 %v275_v37, 16  ;;  %v302_v56 = vrot.slane %v300_v47, 1 }
  0x1b   : > { %v450_v57 = vpack.c.b16 %v446_v48, %v446_v48  ;;  %v291_v58 = vshrl.u32 %v274_v40, 16  ;;  %v295_v59 = vrot.slane %v293_v51, 1  ;;  %v284_v60 = vshrl.u32 %v273_v41, 16  ;;  %v913_v40 = vld [vmem:[%s1113_s23 + $0xc] sm:$0x3] }
  0x1c   : > { %v288_v61 = vrot.slane %v286_v52, 1  ;;  %v303_v63 = vor.u32 %v302_v56, %v298_v55  ;;  %v447_v0 = vunpack.c.l.b16 %v930_v62  ;;  %v462_v4 = vshll.u32 %v449_v53, 16  ;;  %v912_v41 = vld [vmem:[%s1113_s23 + $0x8] sm:$0x3]  ;;  %v1030_v55 = vld [vmem:[%s1328_s1 + $0x30] sm:$0xff] }
  0x1d   : > { %v469_v1 = vshll.u32 %v450_v57, 16  ;;  %v296_v2 = vor.u32 %v295_v59, %v291_v58  ;;  %v455_v5 = vshll.u32 %v448_v54, 16  ;;  %v460_v6 = vshrl.u32 %v449_v53, 16  ;;  %v1031_v53 = vld [vmem:[%s1328_s1 + $0x38] sm:$0xff]  ;;  %v1038_v56 = vld [vmem:[%s1328_s1 + $0x70] sm:$0xff]  ;;  %v1037_v62 = vld [vmem:[%s1328_s1 + $0x68] sm:$0xff] }
  0x1e   : > { %434 = vrot.lane.b32.xlu2 %v429_v26, %s1066_s24  ;;  %418 = vrot.lane.b32.xlu1 %v411_v25, %s1067_s25  ;;  %v289_v3 = vor.u32 %v288_v61, %v284_v60  ;;  %v467_v7 = vshrl.u32 %v450_v57, 16  ;;  %v464_v9 = vrot.slane %v462_v4, 1  ;;  %v453_v10 = vshrl.u32 %v448_v54, 16  ;;  %v237_v25 = vld [vmem:[%s1113_s23 + $0xc] sm:$0x6]  ;;  %v1039_v54 = vld [vmem:[%s1328_s1 + $0x78] sm:$0xff] }
  0x1f   : > { %414 = vrot.lane.b32.xlu0 %v409_v28, %s1067_s25  ;;  %v471_v8 = vrot.slane %v469_v1, 1  ;;  %v457_v11 = vrot.slane %v455_v5, 1  ;;  %v451_v12 = vpack.c.b16 %v447_v0, %v447_v0  ;;  %v317_v16 = vunpack.c.l.b16 %v235_v13  ;;  %v236_v26 = vld [vmem:[%s1113_s23 + $0x8] sm:$0x6]  ;;  %755 = vmatpush.bf16.msra.mxu0 %v1031_v53  ;;  %v915_v60 = vld [vmem:[%s1113_s23 + $0x4] sm:$0x7] }
  0x20   : > { %v465_v17 = vor.u32 %v464_v9, %v460_v6  ;;  %v316_v19 = vunpack.c.l.b16 %v234_v14  ;;  %v319_v30 = vunpack.c.l.b16 %v237_v25  ;;  %v318_v31 = vunpack.c.l.b16 %v236_v26  ;;  %769 = vmatpush.bf16.msra.mxu1 %v1039_v54  ;;  %v1029_v61 = vld [vmem:[%s1328_s1 + $0x28] sm:$0xff]  ;;  %v1028_v0 = vld [vmem:[%s1328_s1 + $0x20] sm:$0xff]  ;;  %v1027_v6 = vld [vmem:[%s1328_s1 + $0x18] sm:$0xff] }
  0x21   : > { %v472_v15 = vor.u32 %v471_v8, %v467_v7  ;;  %v458_v18 = vor.u32 %v457_v11, %v453_v10  ;;  %v476_v20 = vshll.u32 %v451_v12, 16  ;;  %v321_v21 = vpack.c.b16 %v317_v16, %v317_v16  ;;  %v1036_v1 = vld [vmem:[%s1328_s1 + $0x60] sm:$0xff]  ;;  %v1035_v7 = vld [vmem:[%s1328_s1 + $0x58] sm:$0xff]  ;;  %v918_v8 = vld [vmem:[%s1113_s23 + $0x10] sm:$0x7] }
  0x22   : > { %v320_v22 = vpack.c.b16 %v316_v19, %v316_v19  ;;  %v474_v23 = vshrl.u32 %v451_v12, 16  ;;  %v340_v33 = vunpack.c.l.b16 %v911_v32  ;;  %v323_v34 = vpack.c.b16 %v319_v30, %v319_v30  ;;  %v917_v11 = vld [vmem:[%s1113_s23 + $0xc] sm:$0x7]  ;;  %v1026_v14 = vld [vmem:[%s1328_s1 + $0x10] sm:$0xff]  ;;  %v931_v26 = vld [vmem:[%s1113_s23 + $0x8] sm:$0x6] }
  0x23   : > { %v478_v24 = vrot.slane %v476_v20, 1  ;;  %v325_v27 = vrot.slane %v321_v21, 1  ;;  %v322_v35 = vpack.c.b16 %v318_v31, %v318_v31  ;;  %v343_v42 = vunpack.c.l.b16 %v914_v39  ;;  %756 = vmatpush.bf16.msra.mxu0 %v1030_v55  ;;  %v1025_v21 = vld [vmem:[%s1328_s1 + $0x8] sm:$0xff]  ;;  %v1040_v32 = vld [vmem:[%s1328_s1 + $0x80] sm:$0xff] }
  0x24   : > { %v324_v28 = vrot.slane %v320_v22, 1  ;;  %v344_v36 = vpack.c.b16 %v340_v33, %v340_v33  ;;  %v327_v37 = vrot.slane %v323_v34, 1  ;;  %v342_v43 = vunpack.c.l.b16 %v913_v40  ;;  %770 = vmatpush.bf16.msra.mxu1 %v1038_v56  ;;  %v1033_v22 = vld [vmem:[%s1328_s1 + $0x48] sm:$0xff] }
  0x25   : > { %v479_v29 = vor.u32 %v478_v24, %v474_v23  ;;  %v326_v38 = vrot.slane %v322_v35, 1  ;;  %v341_v44 = vunpack.c.l.b16 %v912_v41  ;;  %v363_v10 = vunpack.c.l.b16 %v918_v8  ;;  %v1041_v23 = vld [vmem:[%s1328_s1 + $0x88] sm:$0xff] }
  0x26   : > { %304 = vrot.lane.b32.xlu2 %v282_v45, %s1067_s25  ;;  %438 = vrot.lane.b32.xlu1 %v431_v49, %s1066_s24  ;;  %v347_v45 = vpack.c.b16 %v343_v42, %v343_v42  ;;  %v346_v46 = vpack.c.b16 %v342_v43, %v342_v43  ;;  %v362_v19 = vunpack.c.l.b16 %v917_v11  ;;  %v492_v35 = vunpack.c.l.b16 %v931_v26  ;;  %v226_v42 = vld [vmem:[%s1113_s23] sm:$0x3] }
  0x27   : > { %436 = vrot.lane.b32.xlu0 %v430_v50, %s1066_s24  ;;  %v345_v47 = vpack.c.b16 %v341_v44, %v341_v44  ;;  %757 = vmatpush.bf16.msra.mxu0 %v1029_v61  ;;  %v367_v20 = vpack.c.b16 %v363_v10, %v363_v10  ;;  %v932_v10 = vld [vmem:[%s1113_s23 + $0xc] sm:$0x6] }
  0x28   : > { %771 = vmatpush.bf16.msra.mxu1 %v1037_v62  ;;  %v366_v30 = vpack.c.b16 %v362_v19, %v362_v19  ;;  %789 = vmatpush.bf16.msra.mxu2 %v1041_v23  ;;  %v496_v41 = vpack.c.b16 %v492_v35, %v492_v35 }
  0x29   : > { %v392_v31 = vshll.u32 %v367_v20, 16  ;;  %v390_v39 = vshrl.u32 %v367_v20, 16  ;;  %v493_v20 = vunpack.c.l.b16 %v932_v10 }
  0x2a   : > { %v383_v53 = vshrl.u32 %v366_v30, 16  ;;  %v935_v62 = vrot.slane %v496_v41, 5 }
  0x2b   : > { %758 = vmatpush.bf16.msra.mxu0 %v1028_v0  ;;  %v394_v40 = vrot.slane %v392_v31, 1 }
  0x2c   : > { %772 = vmatpush.bf16.msra.mxu1 %v1036_v1  ;;  %790 = vmatpush.bf16.msra.mxu2 %v1040_v32  ;;  %v497_v32 = vpack.c.b16 %v493_v20, %v493_v20 }
  0x2d   : > { %v395_v54 = vor.u32 %v394_v40, %v390_v39 }
  0x2e   : > { %310 = vrot.lane.b32.xlu2 %v303_v63, %s1067_s25  ;;  %308 = vrot.lane.b32.xlu1 %v296_v2, %s1067_s25  ;;  %v360_v63 = vunpack.c.l.b16 %v915_v60  ;;  %v936_v39 = vrot.slane %v497_v32, 5 }
  0x2f   : > { %306 = vrot.lane.b32.xlu0 %v289_v3, %s1067_s25  ;;  %759 = vmatpush.bf16.msra.mxu0 %v1027_v6 }
  0x30   : > { %v364_v4 = vpack.c.b16 %v360_v63, %v360_v63  ;;  %773 = vmatpush.bf16.msra.mxu1 %v1035_v7 }
  0x32   : > { %v371_v9 = vshll.u32 %v364_v4, 16  ;;  %v369_v16 = vshrl.u32 %v364_v4, 16 }
  0x33   : > { %760 = vmatpush.bf16.msra.mxu0 %v1026_v14 }
  0x36   : > { %484 = vrot.lane.b32.xlu2 %v472_v15, %s1068_s26  ;;  %482 = vrot.lane.b32.xlu1 %v465_v17, %s1068_s26  ;;  %v1034_v15 = vld [vmem:[%s1328_s1 + $0x50] sm:$0xff]  ;;  %v373_v17 = vrot.slane %v371_v9, 1 }
  0x37   : > { %480 = vrot.lane.b32.xlu0 %v458_v18, %s1068_s26  ;;  %v916_v18 = vld [vmem:[%s1113_s23 + $0x8] sm:$0x7]  ;;  %774 = vmatpush.bf16.msra.mxu1 %v1034_v15  ;;  %v933_v9 = vld [vmem:[%s1113_s23 + $0x10] sm:$0x6]  ;;  %v229_v15 = vld [vmem:[%s1113_s23 + $0xc] sm:$0x3] }
  0x38   : > { %v361_v24 = vunpack.c.l.b16 %v916_v18  ;;  %761 = vmatpush.bf16.msra.mxu0 %v1025_v21  ;;  %v494_v19 = vunpack.c.l.b16 %v933_v9 }
  0x3a   : > { %v498_v31 = vpack.c.b16 %v494_v19, %v494_v19 }
  0x3b   : > { %775 = vmatpush.bf16.msra.mxu1 %v1033_v22 }
  0x3e   : > { %330 = vrot.lane.b32.xlu2 %v325_v27, %s1066_s24  ;;  %328 = vrot.lane.b32.xlu1 %v324_v28, %s1066_s24  ;;  %v374_v27 = vor.u32 %v373_v17, %v369_v16  ;;  %v1024_v28 = vld [vmem:[%s1328_s1] sm:$0xff] }
  0x3f   : > { %486 = vrot.lane.b32.xlu0 %v479_v29, %s1068_s26  ;;  %v1032_v29 = vld [vmem:[%s1328_s1 + $0x40] sm:$0xff]  ;;  %762 = vmatpush.bf16.msra.mxu0 %v1024_v28 }
  0x40   : > { %776 = vmatpush.bf16.msra.mxu1 %v1032_v29  ;;  %v227_v29 = vld [vmem:[%s1113_s23 + $0x4] sm:$0x3] }
  0x46   : > { %348 = vrot.lane.b32.xlu2 %v344_v36, %s1068_s26  ;;  %334 = vrot.lane.b32.xlu1 %v327_v37, %s1066_s24  ;;  %v365_v36 = vpack.c.b16 %v361_v24, %v361_v24 }
  0x47   : > { %332 = vrot.lane.b32.xlu0 %v326_v38, %s1066_s24  ;;  %v385_v38 = vshll.u32 %v366_v30, 16  ;;  %s1023_s24 = sshll.u32 %s1334_s19, 4 }
  0x48   : > { %v378_v43 = vshll.u32 %v365_v36, 16  ;;  %v376_v55 = vshrl.u32 %v365_v36, 16  ;;  %s224_s29 = scalar_lea.vmem %s1332_s5, %s1023_s24 }
  0x4e   : > { %354 = vrot.lane.b32.xlu2 %v347_v45, %s1068_s26  ;;  %352 = vrot.lane.b32.xlu1 %v346_v46, %s1068_s26  ;;  %v934_v46 = vld [vmem:[%s1113_s23 + $0x14] sm:$0x6] }
  0x4f   : > { %350 = vrot.lane.b32.xlu0 %v345_v47, %s1068_s26  ;;  %v495_v63 = vunpack.c.l.b16 %v934_v46 }
  0x51   : > { %v499_v8 = vpack.c.b16 %v495_v63, %v495_v63 }
  0x53   : > { %v938_v23 = vrot.slane %v499_v8, 5 }
  0x70   : > { %v1163_v48 = vpop.permute.xlu2 %432 }
  0x78   : > { %v1165_v49 = vpop.permute.xlu2 %434 }
  0x80   : > { %v1167_v50 = vpop.permute.xlu2 %304 }
  0x81   : > { %v507_v56 = vsel %vm504_vm0, %v226_v42, %v1167_v50 }
  0x88   : > { %v1169_v51 = vpop.permute.xlu1 %416  ;;  %v1189_v59 = vpop.permute.xlu2 %310 }
  0x89   : > { %v1171_v52 = vpop.permute.xlu0 %412 }
  0x8a   : > { %v537_v37 = vsel %vm504_vm0, %v374_v27, %v1171_v52  ;;  %v387_v52 = vrot.slane %v385_v38, 1  ;;  %v937_v38 = vrot.slane %v498_v31, 5 }
  0x8b   : > { %v548_v44 = vsel %vm517_vm1, %v537_v37, %v1163_v48  ;;  %v380_v48 = vrot.slane %v378_v43, 1 }
  0x8c   : > { %v388_v11 = vor.u32 %v387_v52, %v383_v53  ;;  %v1043_v52 = vld [vmem:[%s1330_s3 + $0x8] sm:$0xff] }
  0x8d   : > { %v381_v14 = vor.u32 %v380_v48, %v376_v55  ;;  %829 = vmatpush.bf16.msra.mxu3 %v1043_v52 }
  0x8e   : > { %v543_v24 = vsel %vm504_vm0, %v388_v11, %v1169_v51  ;;  %v1057_v11 = vld [vmem:[%s1331_s4] ss:$0 sm:$0xff] }
  0x90   : > { %v1185_v57 = vpop.permute.xlu1 %418  ;;  %v1208_v5 = vpop.permute.xlu2 %484 }
  0x91   : > { %v1187_v58 = vpop.permute.xlu0 %414  ;;  %v546_v7 = vsel %vm504_vm0, %v395_v54, %v1185_v57  ;;  %v516_v57 = vsel %vm504_vm0, %v229_v15, %v1189_v59  ;;  %v1042_v54 = vld [vmem:[%s1330_s3] sm:$0xff] }
  0x92   : > { %v540_v26 = vsel %vm504_vm0, %v381_v14, %v1187_v58  ;;  %830 = vmatpush.bf16.msra.mxu3 %v1042_v54 }
  0x93   : > { %v550_v51 = vsel %vm517_vm1, %v540_v26, %v1165_v49 }
  0x98   : > { %v1204_v2 = vpop.permute.xlu1 %438  ;;  %v1238_v25 = vpop.permute.xlu2 %330 }
  0x99   : > { %v1206_v3 = vpop.permute.xlu0 %436  ;;  %v554_v16 = vsel %vm517_vm1, %v546_v7, %v1204_v2 }
  0x9a   : > { %v552_v28 = vsel %vm517_vm1, %v543_v24, %v1206_v3 }
  0x9b   : > { %v560_v58 = vsel %vm526_vm2, %v552_v28, %v1208_v5 }
  0x9c   : > { %v571_v40 = vrot.slane %v560_v58, 6 }
  0xa0   : > { %v1218_v12 = vpop.permute.xlu1 %308  ;;  %v349_v45 = vpop.permute.xlu2 %348 }
  0xa1   : > { %v1220_v13 = vpop.permute.xlu0 %306 }
  0xa2   : > { %v510_v36 = vsel %vm504_vm0, %v227_v29, %v1220_v13 }
  0xa3   : > { %v521_v49 = vsel %vm517_vm1, %v510_v36, %v1238_v25 }
  0xa8   : > { %v1250_v33 = vpop.permute.xlu1 %482  ;;  %v355_v18 = vpop.permute.xlu2 %354 }
  0xa9   : > { %v481_v34 = vpop.permute.xlu0 %480  ;;  %v558_v3 = vsel %vm526_vm2, %v550_v51, %v1250_v33 }
  0xaa   : > { %v556_v47 = vsel %vm526_vm2, %v548_v44, %v481_v34  ;;  %v228_v34 = vld [vmem:[%s1113_s23 + $0x8] sm:$0x3]  ;;  %v569_v41 = vrot.slane %v558_v3, 6 }
  0xab   : > { %v567_v0 = vrot.slane %v556_v47, 6  ;;  %v513_v37 = vsel %vm504_vm0, %v228_v34, %v1218_v12 }
  0xb0   : > { %v329_v60 = vpop.permute.xlu1 %328 }
  0xb1   : > { %v487_v61 = vpop.permute.xlu0 %486  ;;  %v519_v1 = vsel %vm517_vm1, %v507_v56, %v329_v60  ;;  %v1056_v60 = vld [vmem:[%s1329_s2] ss:$0 sm:$0xff] }
  0xb2   : > { %v528_v4 = vsel %vm526_vm2, %v519_v1, %v349_v45  ;;  %v562_v17 = vsel %vm526_vm2, %v554_v16, %v487_v61 }
  0xb3   : > { %v577_v6 = vsel %vm575_vm3, %v528_v4, %v567_v0  ;;  %v573_v2 = vrot.slane %v562_v17, 6 }
  0xb4   : > { %v580_v50 = vsel %vm578_vm4, %v577_v6, %v935_v62 }
  0xb5   : > { %633 = vst [vmem:[#allocation1] ss:$4 sm:$0xff] %v580_v50 }
  0xb8   : > { %v335_v21 = vpop.permute.xlu1 %334 }
  0xb9   : > { %v333_v22 = vpop.permute.xlu0 %332  ;;  %v525_v27 = vsel %vm517_vm1, %v516_v57, %v335_v21 }
  0xba   : > { %v534_v30 = vsel %vm526_vm2, %v525_v27, %v355_v18  ;;  %v523_v42 = vsel %vm517_vm1, %v513_v37, %v333_v22 }
  0xbb   : > { %v590_v59 = vsel %vm575_vm3, %v534_v30, %v573_v2 }
  0xbc   : > { %v592_v35 = vsel %vm578_vm4, %v590_v59, %v938_v23 }
  0xbd   : > { %639 = vst [vmem:[#allocation1 + $0x3] ss:$4 sm:$0xff] %v592_v35 }
  0xc0   : > { %v353_v5 = vpop.permute.xlu1 %352 }
  0xc1   : > { %v351_v43 = vpop.permute.xlu0 %350  ;;  %v532_v13 = vsel %vm526_vm2, %v523_v42, %v353_v5 }
  0xc2   : > { %v530_v44 = vsel %vm526_vm2, %v521_v49, %v351_v43  ;;  %v586_v33 = vsel %vm575_vm3, %v532_v13, %v571_v40 }
  0xc3   : > { %v582_v45 = vsel %vm575_vm3, %v530_v44, %v569_v41  ;;  %v588_v12 = vsel %vm578_vm4, %v586_v33, %v937_v38 }
  0xc4   : > { %v584_v46 = vsel %vm578_vm4, %v582_v45, %v936_v39  ;;  %637 = vst [vmem:[#allocation1 + $0x2] ss:$4 sm:$0xff] %v588_v12 }
  0xc5   : > { %635 = vst [vmem:[#allocation1 + $0x1] ss:$4 sm:$0xff] %v584_v46 }
  0xcc   : > { %v640_v25 = vld.sshfl [vmem:[#allocation1] sm:$0xff pattern:$0x73625140]  ;;  %v641_v47 = vld.sshfl [vmem:[#allocation1 + $0x8] sm:$0xff pattern:$0x73625140] }
  0xcd   : > { %763 = vmatmul.bf16.vlgmr.msra.gmra.mxu0 %v640_v25  ;;  %777 = vmatmul.bf16.vlgmr.msra.gmra.mxu1 %v641_v47  ;;  %v642_v53 = vld.sshfl [vmem:[#allocation1 + $0x10] sm:$0xff pattern:$0x73625140] }
  0xce   : > { %1011 = vmatmul.msk.bf16.vlgmr.msra.gmra.mxu2 %vm504_vm0, %v642_v53 }
 0x14a   : > { %v764_v55 = vpop.f32.mrf.mxu0  ;;  %v778_v56 = vpop.f32.mrf.mxu1 }
 0x14b   : > { %v765_v62 = vadd.f32 %v1056_v60, %v764_v55 }
 0x14d   : > { %v779_v0 = vadd.f32 %v778_v56, %v765_v62 }
 0x151   : > { %v792_v61 = vpop.f32.mrf.mxu2 }
 0x152   : > { %v766_v63 = vpop.f32.mrf.mxu0  ;;  %v780_v1 = vpop.f32.mrf.mxu1  ;;  %v793_v4 = vadd.f32 %v792_v61, %v779_v0 }
 0x153   : > { %v767_v48 = vadd.f32 %v1056_v60, %v766_v63 }
 0x154   : > { %v797_v8 = vmax.f32 %v793_v4, 0.0 }
 0x155   : > { %v781_v6 = vadd.f32 %v780_v1, %v767_v48 }
 0x159   : > { %v794_v7 = vpop.f32.mrf.mxu2 }
 0x15a   : > { %v795_v50 = vadd.f32 %v794_v7, %v781_v6 }
 0x15c   : > { %v798_v9 = vmax.f32 %v795_v50, 0.0 }
 0x15e   : > { %v799_v10 = vpack.c.bf16 %v798_v9, %v797_v8 }
 0x160   : > { %1020 = vmatmul.msk.bf16.vlgmr.msra.gmra.mxu3 %vm504_vm0, %v799_v10 }
 0x1e3   : > { %v832_v14 = vpop.f32.mrf.mxu3 }
 0x1e4   : > { %v833_v15 = vadd.f32 %v1057_v11, %v832_v14 }
 0x1e6   : > { %v839_v16 = vrot.slane %v833_v15, 4  ;;  %844 = vst.msk [vmem:[%s224_s29] sm:$0xf] %vm843_vm5, %v833_v15 }
 0x1e8   : > { %845 = vst.msk [vmem:[%s224_s29 + $0x4] sm:$0xf] %vm843_vm5, %v839_v16 }
 0x1eb   : > { %v834_v17 = vpop.f32.mrf.mxu3 }
 0x1ec   : > { %v835_v18 = vadd.f32 %v1057_v11, %v834_v17 }
 0x1ee   : > { %v840_v19 = vrot.slane %v835_v18, 4  ;;  %846 = vst.msk [vmem:[%s224_s29 + $0x8] sm:$0xf] %vm843_vm5, %v835_v18 }
 0x1f0   : > { %847 = vst.msk [vmem:[%s224_s29 + $0xc] sm:$0xf] %vm843_vm5, %v840_v19 }
 0x1f1 PF: > { %s15_s18 = sadd.s32 1, %s1064_s18  }
 0x1f2   : > { %p12_p4 = scmp.ge.s32.totalorder %s15_s18, 4  }
 0x1f4   :  { %14 = sbr.rel (!%p12_p4) target bundleno = 1 (0x1), region = 75 }

</bundles_post_ra>
